<compile_context>
chip_gen: v7x
topology: tpu7x:2x2x1
jax: 0.10.0
libtpu: 0.0.40
codegen_flags: <defaults>
</compile_context>

<pallas_src>
from functools import partial

import jax
import jax.numpy as jnp
from jax.experimental import pallas as pl
from jax.experimental.pallas import tpu as pltpu


# ----------------------------- kernels ---------------------------------------


def _finish(x_f32, sel_pre, state, wcf_ref, cw_ref, b2_ref, out_ref, state_ref,
            mm_dtype):
    # adjusted = SiLU(selective_fc(x)) * x * control_weight + state
    silu = sel_pre * jax.nn.sigmoid(sel_pre)                 # EUP sigmoid
    adjusted = silu * x_f32 * cw_ref[...] + state
    # output = fc2(C(adjusted)) == adjusted @ (C^T @ fc2^T) + fc2_b (host-fused)
    out = jnp.dot(adjusted.astype(mm_dtype), wcf_ref[...],
                  preferred_element_type=jnp.float32) + b2_ref[...]
    out_ref[...] = out.astype(out_ref.dtype)
    state_ref[...] = state.astype(state_ref.dtype)


def conba_kernel_fused(x_ref, prev_ref, wbig_ref, wcf_ref,
                       bsel_ref, cw_ref, b2_ref, out_ref, state_ref):
    """Single MXU pass: [x | prev] @ [[Wsel^T, B^T], [0, A^T]]  (K = N = 2D)."""
    D = out_ref.shape[-1]
    mm = wbig_ref.dtype
    x = x_ref[...]                                            # (TB, D)
    xp = jnp.concatenate([x.astype(mm), prev_ref[...].astype(mm)], axis=-1)
    cat = jnp.dot(xp, wbig_ref[...], preferred_element_type=jnp.float32)
    sel_pre = cat[:, :D] + bsel_ref[...]                      # x @ Wsel^T + b
    state = cat[:, D:]                                        # A(prev) + B(x)
    _finish(x.astype(jnp.float32), sel_pre, state, wcf_ref, cw_ref, b2_ref,
            out_ref, state_ref, mm)


def conba_kernel_split(x_ref, prev_ref, wcat_ref, a_t_ref, wcf_ref,
                       bsel_ref, cw_ref, b2_ref, out_ref, state_ref):
    """Separate A matmul (no zero-block FLOPs; preferred for large D)."""
    D = out_ref.shape[-1]
    mm = wcat_ref.dtype
    x = x_ref[...]
    cat = jnp.dot(x.astype(mm), wcat_ref[...],
                  preferred_element_type=jnp.float32)         # (TB, 2D)
    sel_pre = cat[:, :D] + bsel_ref[...]
    state = jnp.dot(prev_ref[...].astype(mm), a_t_ref[...],
                    preferred_element_type=jnp.float32) + cat[:, D:]
    _finish(x.astype(jnp.float32), sel_pre, state, wcf_ref, cw_ref, b2_ref,
            out_ref, state_ref, mm)


# ----------------------------- helpers ----------------------------------------


def _round_up(n, m):
    return ((n + m - 1) // m) * m


def _vmem_capacity_bytes():
    try:
        return int(pltpu.get_tpu_info().vmem_capacity_bytes)
    except Exception:
        return 64 << 20   # conservative (v7x per-core VMEM)


_HAS_BUFFERED = hasattr(pl, "Buffered")


# ----------------------------- pallas_call wrapper ---------------------------


@partial(jax.jit,
         static_argnames=("tb", "fuse", "buffer1", "vmem_limit", "out_dtype"))
def _forward(x, prev, weights, bsel, cw, b2, *,
             tb, fuse, buffer1, vmem_limit, out_dtype):
    B, D = x.shape
    grid = (pl.cdiv(B, tb),)

    act_spec = pl.BlockSpec((tb, D), lambda i: (i, 0))
    # Weight-stationary blocks: constant index_map, optionally single-buffered.
    wkw = {}
    if buffer1 and _HAS_BUFFERED:
        wkw = dict(pipeline_mode=pl.Buffered(1))

    def wspec(shape):
        return pl.BlockSpec(shape, lambda i: (0, 0), **wkw)

    row_spec = wspec((1, D))
    if fuse:
        kernel = conba_kernel_fused
        w_specs = [wspec((2 * D, 2 * D)), wspec((D, D))]
        flops = 2 * B * (2 * D) * (2 * D) + 2 * B * D * D
    else:
        kernel = conba_kernel_split
        w_specs = [wspec((D, 2 * D)), wspec((D, D)), wspec((D, D))]
        flops = 2 * B * D * (2 * D) + 2 * B * D * D + 2 * B * D * D

    w_bytes = sum(int(w.size) * w.dtype.itemsize for w in weights)
    bytes_accessed = (w_bytes + 3 * D * 4
                      + B * D * (x.dtype.itemsize + prev.dtype.itemsize
                                 + 2 * jnp.dtype(out_dtype).itemsize))

    return pl.pallas_call(
        kernel,
        out_shape=(jax.ShapeDtypeStruct((B, D), out_dtype),
                   jax.ShapeDtypeStruct((B, D), out_dtype)),
        grid=grid,
        in_specs=[act_spec, act_spec, *w_specs, row_spec, row_spec, row_spec],
        out_specs=(act_spec, act_spec),
        compiler_params=pltpu.CompilerParams(
            dimension_semantics=("parallel",),
            vmem_limit_bytes=int(vmem_limit)),
        cost_estimate=pl.CostEstimate(
            flops=int(flops),
            transcendentals=int(B * D),
            bytes_accessed=int(bytes_accessed)),
    )(x, prev, *weights, bsel, cw, b2)


# ----------------------------- user-facing API --------------------------------


def prepare_params(params, matmul_dtype=jnp.bfloat16, fuse_state=None):
    """One-time host prep: transpose / fuse weights (NOT in the per-call path)."""
    D = params["A_w"].shape[0]
    if fuse_state is None:
        fuse_state = D <= 512     # fill the 256-wide MXU of v6e/v7x at small D
    wsel_t = params["selective_fc_w"].T                  # (D, D)
    b_t = params["B_w"].T                                # (D, D)
    a_t = params["A_w"].T                                # (D, D)
    w_cf = (params["C_w"].T @ params["fc2_w"].T).astype(matmul_dtype)   # C->fc2
    if fuse_state:
        top = jnp.concatenate([wsel_t, b_t], axis=1)                    # (D, 2D)
        bot = jnp.concatenate([jnp.zeros_like(a_t), a_t], axis=1)       # (D, 2D)
        weights = (jnp.concatenate([top, bot], axis=0).astype(matmul_dtype),
                   w_cf)                                                # (2D,2D),(D,D)
    else:
        weights = (jnp.concatenate([wsel_t, b_t], axis=1).astype(matmul_dtype),
                   a_t.astype(matmul_dtype), w_cf)
    return {
        "fuse_state": bool(fuse_state),
        "weights": weights,
        "bsel": params["selective_fc_b"].reshape(1, D).astype(jnp.float32),
        "cw": params["control_weight"].reshape(1, D).astype(jnp.float32),
        "b2": params["fc2_b"].reshape(1, D).astype(jnp.float32),
    }


def conba_no_feedback(x, prepped, previous_state=None, max_block_b=1024,
                      out_dtype=None):
    """x: (B, D) or (B, ...) flattened to (B, -1). Returns (output, state)."""
    if x.ndim > 2:
        x = x.reshape(x.shape[0], -1)
    B, D = x.shape
    if previous_state is None:
        previous_state = jnp.zeros_like(x)
    out_dtype = jnp.dtype(x.dtype if out_dtype is None else out_dtype)

    fuse = prepped["fuse_state"]
    weights = prepped["weights"]

    # --- VMEM-budget-driven batch tile -------------------------------------
    cap = _vmem_capacity_bytes()
    usable = max(32 << 20, min(int(cap * 0.85), cap - (8 << 20)))
    w_bytes = sum(int(w.size) * w.dtype.itemsize for w in weights)
    bias_bytes = 3 * D * 4 * 2
    io_item = (x.dtype.itemsize + previous_state.dtype.itemsize
               + 2 * out_dtype.itemsize)
    # per batch row: double-buffered activation streams + ~10 f32(D) temporaries
    per_row = D * (2 * io_item) + 10 * D * 4
    avail = usable - w_bytes - bias_bytes - (4 << 20)

    sub = 16 if min(x.dtype.itemsize, out_dtype.itemsize) < 4 else 8
    tb = max(sub, (avail // per_row) // sub * sub)
    tb = min(tb, max(sub, max_block_b // sub * sub))
    if B > 2 * sub:
        # keep >= 2 grid steps so the "parallel" axis can split over v7x's 2 TCs
        tb = min(tb, _round_up((B + 1) // 2, sub))
    tb = min(tb, _round_up(B, sub))

    args = (x, previous_state, weights,
            prepped["bsel"], prepped["cw"], prepped["b2"])
    try:
        return _forward(*args, tb=int(tb), fuse=fuse, buffer1=True,
                        vmem_limit=int(usable), out_dtype=out_dtype)
    except Exception:
        # pl.Buffered(1) (single-buffered weights) not supported by this jax
        # version / backend -> retry with default double-buffered weights.
        return _forward(*args, tb=int(tb), fuse=fuse, buffer1=False,
                        vmem_limit=int(usable), out_dtype=out_dtype)


# ----------------------------- reference & demo ------------------------------


def init_params(key, input_dim):
    ks = jax.random.split(key, 7)
    bound = 1.0 / jnp.sqrt(input_dim)  # PyTorch Linear default init range
    def u(k, shape):
        return jax.random.uniform(k, shape, jnp.float32, -bound, bound)
    return {
        "selective_fc_w": u(ks[0], (input_dim, input_dim)),
        "selective_fc_b": u(ks[1], (input_dim,)),
        "control_weight": jnp.ones((input_dim,), jnp.float32),
        "A_w": u(ks[2], (input_dim, input_dim)),
        "B_w": u(ks[3], (input_dim, input_dim)),
        "C_w": u(ks[4], (input_dim, input_dim)),
        "fc2_w": u(ks[5], (input_dim, input_dim)),
        "fc2_b": u(ks[6], (input_dim,)),
    }


def reference_forward(x, params, previous_state=None):
    """Pure-JAX f32 reference mirroring the PyTorch module."""
    if x.ndim > 2:
        x = x.reshape(x.shape[0], -1)
    if previous_state is None:
        previous_state = jnp.zeros_like(x)
    state = previous_state @ params["A_w"].T + x @ params["B_w"].T
    pre = x @ params["selective_fc_w"].T + params["selective_fc_b"]
    selective = (pre * jax.nn.sigmoid(pre)) * x
    adjusted = selective * params["control_weight"] + state
    out = adjusted @ params["C_w"].T
    out = out @ params["fc2_w"].T + params["fc2_b"]
    return out, state


if __name__ == "__main__":
    key = jax.random.PRNGKey(0)
    k_x, k_s, k_p = jax.random.split(key, 3)

    B, D = 512, 128  # D multiple of 128 -> lane-aligned concat/slices
    x = jax.random.normal(k_x, (B, D), jnp.float32)
    prev_state = jax.random.normal(k_s, (B, D), jnp.float32)
    params = init_params(k_p, D)

    ref_out, ref_state = reference_forward(x, params, previous_state=prev_state)

    # Exercise both the MXU-fused (K=2D) path and the split-A path.
    for fuse in (True, False):
        prepped = prepare_params(params, fuse_state=fuse)
        out, state = conba_no_feedback(x, prepped, previous_state=prev_state)
        out, state = jax.block_until_ready((out, state))
        # bf16 matmul operands (f32 accumulation) vs f32 reference -> loose tols.
        assert jnp.allclose(out, ref_out, atol=5e-2, rtol=5e-2), \
            f"output mismatch (fuse={fuse})"
        assert jnp.allclose(state, ref_state, atol=5e-2, rtol=5e-2), \
            f"state mismatch (fuse={fuse})"

    print("KERNEL_OK")
</pallas_src>

<mosaic_0001>
module attributes {stable_mosaic.version = 11 : i64} {
  func.func @conba_kernel_fused(%arg0: i32, %arg1: memref<256x128xf32, #tpu.memory_space<vmem>>, %arg2: memref<256x128xf32, #tpu.memory_space<vmem>>, %arg3: memref<256x256xbf16, #tpu.memory_space<vmem>>, %arg4: memref<128x128xbf16, #tpu.memory_space<vmem>>, %arg5: memref<1x128xf32, #tpu.memory_space<vmem>>, %arg6: memref<1x128xf32, #tpu.memory_space<vmem>>, %arg7: memref<1x128xf32, #tpu.memory_space<vmem>>, %arg8: memref<256x128xf32, #tpu.memory_space<vmem>>, %arg9: memref<256x128xf32, #tpu.memory_space<vmem>>) attributes {dimension_semantics = [#tpu.dimension_semantics<parallel>], iteration_bounds = array<i64: 2>, scalar_prefetch = 0 : i64, scratch_operands = 0 : i64, tpu.core_type = #tpu.core_type<tc>, window_params = [{transform_indices = @transform_0, window_bounds = array<i64: 256, 128>}, {transform_indices = @transform_1, window_bounds = array<i64: 256, 128>}, {pipeline_mode = #tpu.pipeline_mode<synchronous>, transform_indices = @transform_2, window_bounds = array<i64: 256, 256>}, {pipeline_mode = #tpu.pipeline_mode<synchronous>, transform_indices = @transform_3, window_bounds = array<i64: 128, 128>}, {pipeline_mode = #tpu.pipeline_mode<synchronous>, transform_indices = @transform_4, window_bounds = array<i64: 1, 128>}, {pipeline_mode = #tpu.pipeline_mode<synchronous>, transform_indices = @transform_5, window_bounds = array<i64: 1, 128>}, {pipeline_mode = #tpu.pipeline_mode<synchronous>, transform_indices = @transform_6, window_bounds = array<i64: 1, 128>}, {transform_indices = @transform_7, window_bounds = array<i64: 256, 128>}, {transform_indices = @transform_8, window_bounds = array<i64: 256, 128>}]} {
    %c0 = arith.constant 0 : index
    %c0_0 = arith.constant 0 : index
    %0 = vector.load %arg1[%c0, %c0_0] : memref<256x128xf32, #tpu.memory_space<vmem>>, vector<256x128xf32>
    %1 = arith.truncf %0 : vector<256x128xf32> to vector<256x128xbf16>
    %c0_1 = arith.constant 0 : index
    %c0_2 = arith.constant 0 : index
    %2 = vector.load %arg2[%c0_1, %c0_2] : memref<256x128xf32, #tpu.memory_space<vmem>>, vector<256x128xf32>
    %3 = arith.truncf %2 : vector<256x128xf32> to vector<256x128xbf16>
    %4 = tpu.concatenate %1, %3 in 1 : vector<256x128xbf16>, vector<256x128xbf16> -> vector<256x256xbf16>
    %c0_3 = arith.constant 0 : index
    %c0_4 = arith.constant 0 : index
    %5 = vector.load %arg3[%c0_3, %c0_4] : memref<256x256xbf16, #tpu.memory_space<vmem>>, vector<256x256xbf16>
    %cst = arith.constant dense<0.000000e+00> : vector<256x256xf32>
    %6 = tpu.matmul %4, %5, %cst {dimension_numbers = #tpu.dot_dimension_numbers<[1], [0], [0], [1], [0, 0, 1, 1], [], []>} : vector<256x256xbf16>, vector<256x256xbf16>, vector<256x256xf32> -> vector<256x256xf32>
    %7 = vector.extract_strided_slice %6 {offsets = [0, 0], sizes = [256, 128], strides = [1, 1]} : vector<256x256xf32> to vector<256x128xf32>
    %c0_5 = arith.constant 0 : index
    %c0_6 = arith.constant 0 : index
    %8 = vector.load %arg5[%c0_5, %c0_6] : memref<1x128xf32, #tpu.memory_space<vmem>>, vector<1x128xf32>
    %9 = vector.broadcast %8 : vector<1x128xf32> to vector<256x128xf32>
    %10 = arith.addf %7, %9 : vector<256x128xf32>
    %11 = vector.extract_strided_slice %6 {offsets = [0, 128], sizes = [256, 128], strides = [1, 1]} : vector<256x256xf32> to vector<256x128xf32>
    %12 = arith.negf %10 : vector<256x128xf32>
    %13 = math.exp %12 : vector<256x128xf32>
    %cst_7 = arith.constant 1.000000e+00 : f32
    %14 = vector.broadcast %cst_7 : f32 to vector<256x128xf32>
    %15 = arith.addf %14, %13 : vector<256x128xf32>
    %16 = arith.divf %14, %15 : vector<256x128xf32>
    %17 = arith.mulf %10, %16 : vector<256x128xf32>
    %18 = arith.mulf %17, %0 : vector<256x128xf32>
    %c0_8 = arith.constant 0 : index
    %c0_9 = arith.constant 0 : index
    %19 = vector.load %arg6[%c0_8, %c0_9] : memref<1x128xf32, #tpu.memory_space<vmem>>, vector<1x128xf32>
    %20 = vector.broadcast %19 : vector<1x128xf32> to vector<256x128xf32>
    %21 = arith.mulf %18, %20 : vector<256x128xf32>
    %22 = arith.addf %21, %11 : vector<256x128xf32>
    %23 = arith.truncf %22 : vector<256x128xf32> to vector<256x128xbf16>
    %c0_10 = arith.constant 0 : index
    %c0_11 = arith.constant 0 : index
    %24 = vector.load %arg4[%c0_10, %c0_11] : memref<128x128xbf16, #tpu.memory_space<vmem>>, vector<128x128xbf16>
    %cst_12 = arith.constant dense<0.000000e+00> : vector<256x128xf32>
    %25 = tpu.matmul %23, %24, %cst_12 {dimension_numbers = #tpu.dot_dimension_numbers<[1], [0], [0], [1], [0, 0, 1, 1], [], []>} : vector<256x128xbf16>, vector<128x128xbf16>, vector<256x128xf32> -> vector<256x128xf32>
    %c0_13 = arith.constant 0 : index
    %c0_14 = arith.constant 0 : index
    %26 = vector.load %arg7[%c0_13, %c0_14] : memref<1x128xf32, #tpu.memory_space<vmem>>, vector<1x128xf32>
    %27 = vector.broadcast %26 : vector<1x128xf32> to vector<256x128xf32>
    %28 = arith.addf %25, %27 : vector<256x128xf32>
    %c0_15 = arith.constant 0 : index
    %c0_16 = arith.constant 0 : index
    %29 = vector.load %arg8[%c0_15, %c0_16] : memref<256x128xf32, #tpu.memory_space<vmem>>, vector<256x128xf32>
    tpu.vector_store %arg8[%c0_15, %c0_16], %28 {strides = array<i32>} : memref<256x128xf32, #tpu.memory_space<vmem>>, vector<256x128xf32>,
    %c0_17 = arith.constant 0 : index
    %c0_18 = arith.constant 0 : index
    %30 = vector.load %arg9[%c0_17, %c0_18] : memref<256x128xf32, #tpu.memory_space<vmem>>, vector<256x128xf32>
    tpu.vector_store %arg9[%c0_17, %c0_18], %11 {strides = array<i32>} : memref<256x128xf32, #tpu.memory_space<vmem>>, vector<256x128xf32>,
    return
  }
  func.func @transform_0(%arg0: i32) -> (i32, i32) {
    %c0_i32 = arith.constant 0 : i32
    %c0_i32_0 = arith.constant 0 : i32
    return %arg0, %c0_i32 : i32, i32
  }
  func.func @transform_1(%arg0: i32) -> (i32, i32) {
    %c0_i32 = arith.constant 0 : i32
    %c0_i32_0 = arith.constant 0 : i32
    return %arg0, %c0_i32 : i32, i32
  }
  func.func @transform_2(%arg0: i32) -> (i32, i32) {
    %c0_i32 = arith.constant 0 : i32
    %c0_i32_0 = arith.constant 0 : i32
    %c0_i32_1 = arith.constant 0 : i32
    return %c0_i32, %c0_i32_0 : i32, i32
  }
  func.func @transform_3(%arg0: i32) -> (i32, i32) {
    %c0_i32 = arith.constant 0 : i32
    %c0_i32_0 = arith.constant 0 : i32
    %c0_i32_1 = arith.constant 0 : i32
    return %c0_i32, %c0_i32_0 : i32, i32
  }
  func.func @transform_4(%arg0: i32) -> (i32, i32) {
    %c0_i32 = arith.constant 0 : i32
    %c0_i32_0 = arith.constant 0 : i32
    %c0_i32_1 = arith.constant 0 : i32
    return %c0_i32, %c0_i32_0 : i32, i32
  }
  func.func @transform_5(%arg0: i32) -> (i32, i32) {
    %c0_i32 = arith.constant 0 : i32
    %c0_i32_0 = arith.constant 0 : i32
    %c0_i32_1 = arith.constant 0 : i32
    return %c0_i32, %c0_i32_0 : i32, i32
  }
  func.func @transform_6(%arg0: i32) -> (i32, i32) {
    %c0_i32 = arith.constant 0 : i32
    %c0_i32_0 = arith.constant 0 : i32
    %c0_i32_1 = arith.constant 0 : i32
    return %c0_i32, %c0_i32_0 : i32, i32
  }
  func.func @transform_7(%arg0: i32) -> (i32, i32) {
    %c0_i32 = arith.constant 0 : i32
    %c0_i32_0 = arith.constant 0 : i32
    return %arg0, %c0_i32 : i32, i32
  }
  func.func @transform_8(%arg0: i32) -> (i32, i32) {
    %c0_i32 = arith.constant 0 : i32
    %c0_i32_0 = arith.constant 0 : i32
    return %arg0, %c0_i32 : i32, i32
  }
}

module attributes {stable_mosaic.version = 11 : i64} {
  func.func @conba_kernel_fused(%arg0: i32, %arg1: memref<256x128xf32, #tpu.memory_space<vmem>>, %arg2: memref<256x128xf32, #tpu.memory_space<vmem>>, %arg3: memref<256x256xbf16, #tpu.memory_space<vmem>>, %arg4: memref<128x128xbf16, #tpu.memory_space<vmem>>, %arg5: memref<1x128xf32, #tpu.memory_space<vmem>>, %arg6: memref<1x128xf32, #tpu.memory_space<vmem>>, %arg7: memref<1x128xf32, #tpu.memory_space<vmem>>, %arg8: memref<256x128xf32, #tpu.memory_space<vmem>>, %arg9: memref<256x128xf32, #tpu.memory_space<vmem>>) attributes {dimension_semantics = [#tpu.dimension_semantics<parallel>], iteration_bounds = array<i64: 2>, scalar_prefetch = 0 : i64, scratch_operands = 0 : i64, tpu.core_type = #tpu.core_type<tc>, window_params = [{transform_indices = @transform_0, window_bounds = array<i64: 256, 128>}, {transform_indices = @transform_1, window_bounds = array<i64: 256, 128>}, {pipeline_mode = #tpu.pipeline_mode<synchronous>, transform_indices = @transform_2, window_bounds = array<i64: 256, 256>}, {pipeline_mode = #tpu.pipeline_mode<synchronous>, transform_indices = @transform_3, window_bounds = array<i64: 128, 128>}, {pipeline_mode = #tpu.pipeline_mode<synchronous>, transform_indices = @transform_4, window_bounds = array<i64: 1, 128>}, {pipeline_mode = #tpu.pipeline_mode<synchronous>, transform_indices = @transform_5, window_bounds = array<i64: 1, 128>}, {pipeline_mode = #tpu.pipeline_mode<synchronous>, transform_indices = @transform_6, window_bounds = array<i64: 1, 128>}, {transform_indices = @transform_7, window_bounds = array<i64: 256, 128>}, {transform_indices = @transform_8, window_bounds = array<i64: 256, 128>}]} {
    %c0 = arith.constant 0 : index
    %c0_0 = arith.constant 0 : index
    %0 = vector.load %arg1[%c0, %c0_0] : memref<256x128xf32, #tpu.memory_space<vmem>>, vector<256x128xf32>
    %1 = arith.truncf %0 : vector<256x128xf32> to vector<256x128xbf16>
    %c0_1 = arith.constant 0 : index
    %c0_2 = arith.constant 0 : index
    %2 = vector.load %arg2[%c0_1, %c0_2] : memref<256x128xf32, #tpu.memory_space<vmem>>, vector<256x128xf32>
    %3 = arith.truncf %2 : vector<256x128xf32> to vector<256x128xbf16>
    %4 = tpu.concatenate %1, %3 in 1 : vector<256x128xbf16>, vector<256x128xbf16> -> vector<256x256xbf16>
    %c0_3 = arith.constant 0 : index
    %c0_4 = arith.constant 0 : index
    %5 = vector.load %arg3[%c0_3, %c0_4] : memref<256x256xbf16, #tpu.memory_space<vmem>>, vector<256x256xbf16>
    %cst = arith.constant dense<0.000000e+00> : vector<256x256xf32>
    %6 = tpu.matmul %4, %5, %cst {dimension_numbers = #tpu.dot_dimension_numbers<[1], [0], [0], [1], [0, 0, 1, 1], [], []>} : vector<256x256xbf16>, vector<256x256xbf16>, vector<256x256xf32> -> vector<256x256xf32>
    %7 = vector.extract_strided_slice %6 {offsets = [0, 0], sizes = [256, 128], strides = [1, 1]} : vector<256x256xf32> to vector<256x128xf32>
    %c0_5 = arith.constant 0 : index
    %c0_6 = arith.constant 0 : index
    %8 = vector.load %arg5[%c0_5, %c0_6] : memref<1x128xf32, #tpu.memory_space<vmem>>, vector<1x128xf32>
    %9 = vector.broadcast %8 : vector<1x128xf32> to vector<256x128xf32>
    %10 = arith.addf %7, %9 : vector<256x128xf32>
    %11 = vector.extract_strided_slice %6 {offsets = [0, 128], sizes = [256, 128], strides = [1, 1]} : vector<256x256xf32> to vector<256x128xf32>
    %12 = arith.negf %10 : vector<256x128xf32>
    %13 = math.exp %12 : vector<256x128xf32>
    %cst_7 = arith.constant 1.000000e+00 : f32
    %14 = vector.broadcast %cst_7 : f32 to vector<256x128xf32>
    %15 = arith.addf %14, %13 : vector<256x128xf32>
    %16 = arith.divf %14, %15 : vector<256x128xf32>
    %17 = arith.mulf %10, %16 : vector<256x128xf32>
    %18 = arith.mulf %17, %0 : vector<256x128xf32>
    %c0_8 = arith.constant 0 : index
    %c0_9 = arith.constant 0 : index
    %19 = vector.load %arg6[%c0_8, %c0_9] : memref<1x128xf32, #tpu.memory_space<vmem>>, vector<1x128xf32>
    %20 = vector.broadcast %19 : vector<1x128xf32> to vector<256x128xf32>
    %21 = arith.mulf %18, %20 : vector<256x128xf32>
    %22 = arith.addf %21, %11 : vector<256x128xf32>
    %23 = arith.truncf %22 : vector<256x128xf32> to vector<256x128xbf16>
    %c0_10 = arith.constant 0 : index
    %c0_11 = arith.constant 0 : index
    %24 = vector.load %arg4[%c0_10, %c0_11] : memref<128x128xbf16, #tpu.memory_space<vmem>>, vector<128x128xbf16>
    %cst_12 = arith.constant dense<0.000000e+00> : vector<256x128xf32>
    %25 = tpu.matmul %23, %24, %cst_12 {dimension_numbers = #tpu.dot_dimension_numbers<[1], [0], [0], [1], [0, 0, 1, 1], [], []>} : vector<256x128xbf16>, vector<128x128xbf16>, vector<256x128xf32> -> vector<256x128xf32>
    %c0_13 = arith.constant 0 : index
    %c0_14 = arith.constant 0 : index
    %26 = vector.load %arg7[%c0_13, %c0_14] : memref<1x128xf32, #tpu.memory_space<vmem>>, vector<1x128xf32>
    %27 = vector.broadcast %26 : vector<1x128xf32> to vector<256x128xf32>
    %28 = arith.addf %25, %27 : vector<256x128xf32>
    %c0_15 = arith.constant 0 : index
    %c0_16 = arith.constant 0 : index
    %29 = vector.load %arg8[%c0_15, %c0_16] : memref<256x128xf32, #tpu.memory_space<vmem>>, vector<256x128xf32>
    tpu.vector_store %arg8[%c0_15, %c0_16], %28 {strides = array<i32>} : memref<256x128xf32, #tpu.memory_space<vmem>>, vector<256x128xf32>,
    %c0_17 = arith.constant 0 : index
    %c0_18 = arith.constant 0 : index
    %30 = vector.load %arg9[%c0_17, %c0_18] : memref<256x128xf32, #tpu.memory_space<vmem>>, vector<256x128xf32>
    tpu.vector_store %arg9[%c0_17, %c0_18], %11 {strides = array<i32>} : memref<256x128xf32, #tpu.memory_space<vmem>>, vector<256x128xf32>,
    return
  }
  func.func @transform_0(%arg0: i32) -> (i32, i32) {
    %c0_i32 = arith.constant 0 : i32
    %c0_i32_0 = arith.constant 0 : i32
    return %arg0, %c0_i32 : i32, i32
  }
  func.func @transform_1(%arg0: i32) -> (i32, i32) {
    %c0_i32 = arith.constant 0 : i32
    %c0_i32_0 = arith.constant 0 : i32
    return %arg0, %c0_i32 : i32, i32
  }
  func.func @transform_2(%arg0: i32) -> (i32, i32) {
    %c0_i32 = arith.constant 0 : i32
    %c0_i32_0 = arith.constant 0 : i32
    %c0_i32_1 = arith.constant 0 : i32
    return %c0_i32, %c0_i32_0 : i32, i32
  }
  func.func @transform_3(%arg0: i32) -> (i32, i32) {
    %c0_i32 = arith.constant 0 : i32
    %c0_i32_0 = arith.constant 0 : i32
    %c0_i32_1 = arith.constant 0 : i32
    return %c0_i32, %c0_i32_0 : i32, i32
  }
  func.func @transform_4(%arg0: i32) -> (i32, i32) {
    %c0_i32 = arith.constant 0 : i32
    %c0_i32_0 = arith.constant 0 : i32
    %c0_i32_1 = arith.constant 0 : i32
    return %c0_i32, %c0_i32_0 : i32, i32
  }
  func.func @transform_5(%arg0: i32) -> (i32, i32) {
    %c0_i32 = arith.constant 0 : i32
    %c0_i32_0 = arith.constant 0 : i32
    %c0_i32_1 = arith.constant 0 : i32
    return %c0_i32, %c0_i32_0 : i32, i32
  }
  func.func @transform_6(%arg0: i32) -> (i32, i32) {
    %c0_i32 = arith.constant 0 : i32
    %c0_i32_0 = arith.constant 0 : i32
    %c0_i32_1 = arith.constant 0 : i32
    return %c0_i32, %c0_i32_0 : i32, i32
  }
  func.func @transform_7(%arg0: i32) -> (i32, i32) {
    %c0_i32 = arith.constant 0 : i32
    %c0_i32_0 = arith.constant 0 : i32
    return %arg0, %c0_i32 : i32, i32
  }
  func.func @transform_8(%arg0: i32) -> (i32, i32) {
    %c0_i32 = arith.constant 0 : i32
    %c0_i32_0 = arith.constant 0 : i32
    return %arg0, %c0_i32 : i32, i32
  }
}

</mosaic_0001>

<bundles_post_ra>
// kernel: _forward.1
= control target key start
LH: loop header
LB: loop body
LE: loop exit
PB: predicated region body
PF: predicated region fallthrough
CT: control target
= control target key end

     0   :  { %s3515_s0 = inlined_call_operand.hbm [shape: f32[512,128], index: 0, kind: input, shape index: {}]   ;;  %s3516_s1 = inlined_call_operand.hbm [shape: f32[512,128], index: 1, kind: input, shape index: {}]   ;;  %s3517_s2 = inlined_call_operand.hbm [shape: bf16[256,256], index: 2, kind: input, shape index: {}]   ;;  %s3518_s3 = inlined_call_operand.hbm [shape: bf16[128,128], index: 3, kind: input, shape index: {}]   ;;  %s3519_s4 = inlined_call_operand.vmem [shape: f32[1,128], index: 4, kind: input, shape index: {}]   ;;  %s3520_s5 = inlined_call_operand.vmem [shape: f32[1,128], index: 5, kind: input, shape index: {}]   ;;  %s3521_s6 = inlined_call_operand.vmem [shape: f32[1,128], index: 6, kind: input, shape index: {}]   ;;  %s3522_s7 = inlined_call_operand.hbm [shape: f32[512,128], index: 7, kind: output, shape index: {0}]   ;;  %s3523_s8 = inlined_call_operand.hbm [shape: f32[512,128], index: 8, kind: output, shape index: {1}]  }
   0x1   :  { %3550 = sst [smem:[#allocation39_spill]] %s3515_s0 }
   0x2   :  { %3551 = sst [smem:[#allocation40_spill]] %s3517_s2 }
   0x3   :  { %3552 = sst [smem:[#allocation41_spill]] %s3518_s3 }
   0x4   :  { %14 = vsyncpa [#allocation3], 0 }
   0x5   :  { %16 = vsyncpa [#allocation3 + $0x1], 0 }
   0x6   :  { %17 = vsyncpa [#allocation6], 0 }
   0x7   :  { %19 = vsyncpa [#allocation6 + $0x1], 0 }
   0x8   :  { %20 = vsyncpa [#allocation9], 0 }
   0x9   :  { %21 = vsyncpa [#allocation4], 0 }
   0xa   :  { %23 = vsyncpa [#allocation4 + $0x1], 0 }
   0xb   :  { %24 = vsyncpa [#allocation12], 0 }
   0xc   :  { %26 = vsyncpa [#allocation12 + $0x1], 0  ;;  %s2511_s27 = smov 0   ;;  %s2513_s28 = smov 0  }
   0xd   :  { %s2515_s29 = smov 0   ;;  %s2517_s30 = smov 0  }
   0xe LB: > { %3553 = sst [smem:[#allocation19_spill]] %s2448_s29  ;;  %s2532_s9 = sadd.s32 4294967295, %s2452_s30   ;;  %s2452_s30 = sphi %s2517_s30, %s3615_s30   ;;  %s2448_s29 = sphi %s2515_s29, %s3612_s29   ;;  %s2444_s28 = sphi %s2513_s28, %s3614_s28   ;;  %s2440_s27 = sphi %s2511_s27, %s3613_s27  }
   0xf   : > { %s1750_s10 = sadd.s32 4294967294, %s2452_s30   ;;  %p52_p0 = scmp.ne.s32.totalorder %s2444_s28, %s2440_s27 }
  0x10   : > { %p3524_p1 = scmp.eq.s32.totalorder %s2532_s9, 0  ;;  %p213_p3 = scmp.eq.s32.totalorder %s1750_s10, 1 }
  0x11   : > { %p1751_p5 = scmp.ge.s32.totalorder %s2452_s30, 1  ;;  %p246_p7 = scmp.lt.s32.totalorder %s2452_s30, 3 }
  0x12   : > { %p2541_p4 = por %p3524_p1, %p52_p0  ;;  %p2546_p6 = por %p213_p3, %p52_p0 }
  0x13   : > { %p2551_p8 = pnand %p1751_p5, %p246_p7  ;;  %s2454_s14 = smov [#allocation7]  }
  0x14   : > { %s3554_s11 = scalar_select %p2541_p4, 1, 0 }
  0x15   : > { %s3555_s12 = scalar_select %p2546_p6, 1, 0 }
  0x16   : > { %s258_s15 = sshll.u32 %s2454_s14, 4  ;;  %p1975_p9 = pneg %p2551_p8  ;;  %s2555_s15 = int_to_ptr.vmem [resolvable:$true] %s258_s15 }
  0x17   : > { %s2455_s17 = smov [#allocation8]   ;;  %s3558_s2 = sld [smem:[#allocation40_spill]] }
  0x18   : > { %p2562_p11 = pnand %p1975_p9, %p3524_p1  ;;  %s271_s18 = sshll.u32 %s2455_s17, 4  ;;  %s2566_s18 = int_to_ptr.vmem [resolvable:$true] %s271_s18 }
  0x1a   : > { %p2228_p13 = pneg %p2562_p11 }
  0x1d   : > { %s2226_s21 = scalar_lea.hbm %s3558_s2, 4096 }
  0x1e   : > { %p2227_p12 = scmp.ne.s32.totalorder %s3558_s2, %s2226_s21  ;;  %p2233_p5 = scmp.lt.u32.totalorder %s2226_s21, %s3558_s2 }
  0x20   : > { %p2229_p0 = pnand %p2228_p13, %p2227_p12 }
  0x22   : > { %p2230_p3 = pneg %p2229_p0 }
  0x24   : > { %p2235_p7 = pnand %p2233_p5, %p2230_p3 }
  0x26   : > { %2238 = shalt.err (!%p2235_p7)
}
  0x27   : > { %s2239_s26 = scalar_lea.vmem %s2555_s15, 4096  ;;  %p2247_p2 = scmp.lt.s32.totalorder %s2555_s15, %s2555_s15 }
  0x28   : > { %p2240_p9 = scmp.ne.s32.totalorder %s2555_s15, %s2239_s26  ;;  %p2248_p12 = scmp.lt.s32.totalorder %s2239_s26, %s2239_s26 }
  0x2a   : > { %p2242_p10 = pnand %p2240_p9, %p2228_p13  ;;  %p2249_p0 = por %p2248_p12, %p2247_p2 }
  0x2c   : > { %p2243_p1 = pneg %p2242_p10 }
  0x2e   : > { %p2250_p6 = pnand %p2249_p0, %p2243_p1 }
  0x30   : > { %2253 = shalt.err (!%p2250_p6)
}
  0x31   : > { %s3525_s10 = smov 128   ;;  %s3527_s14 = smov 8  }
  0x32   : > { %1978 = dma.hbm_to_vmem [thread:$0]  (!%p2562_p11), %s3558_s2, 4096, %s2555_s15, [#allocation6], %s3525_s10, %s3525_s10, %s3527_s14  }
  0x33   : > { %s3559_s3 = sld [smem:[#allocation41_spill]] }
  0x39   : > { %s2254_s22 = scalar_lea.hbm %s3559_s3, 1024 }
  0x3a   : > { %p2255_p1 = scmp.ne.s32.totalorder %s3559_s3, %s2254_s22  ;;  %p2261_p10 = scmp.lt.u32.totalorder %s2254_s22, %s3559_s3 }
  0x3c   : > { %p2257_p2 = pnand %p2255_p1, %p2228_p13 }
  0x3e   : > { %p2258_p6 = pneg %p2257_p2 }
  0x40   : > { %p2263_p3 = pnand %p2261_p10, %p2258_p6 }
  0x42   : > { %2266 = shalt.err (!%p2263_p3)
}
  0x43   : > { %s2267_s15 = scalar_lea.vmem %s2566_s18, 1024  ;;  %p2275_p12 = scmp.lt.s32.totalorder %s2566_s18, %s2566_s18 }
  0x44   : > { %p2268_p5 = scmp.ne.s32.totalorder %s2566_s18, %s2267_s15  ;;  %p2276_p0 = scmp.lt.s32.totalorder %s2267_s15, %s2267_s15 }
  0x46   : > { %p2270_p7 = pnand %p2268_p5, %p2228_p13  ;;  %p2277_p1 = por %p2276_p0, %p2275_p12 }
  0x48   : > { %p2271_p9 = pneg %p2270_p7 }
  0x4a   : > { %p2278_p2 = pnand %p2277_p1, %p2271_p9 }
  0x4c   : > { %2281 = shalt.err (!%p2278_p2)
}
  0x4d   : > { %s2458_s17 = smov 64   ;;  %s2459_s19 = smov 4  }
  0x4e   : > { %1981 = dma.hbm_to_vmem [thread:$0]  (!%p2562_p11), %s3559_s3, 1024, %s2566_s18, [#allocation9], %s2458_s17, %s2458_s17, %s2459_s19  }
  0x4f   : > { %s2624_s22 = sadd.s32 1, %s2452_s30   ;;  %s39_s24 = sadd.s32 1, %s2448_s29 }
  0x50   : > { %s36_s23 = ssub.s32 %s2452_s30, %s2624_s22  ;;  %p46_p6 = scmp.ne.s32.totalorder %s2448_s29, %s2444_s28 }
  0x51   : > { %p37_p13 = scmp.eq.s32.totalorder %s36_s23, 0  ;;  %p47_p10 = scmp.eq.s32.totalorder %s2452_s30, 0 }
  0x52   : > { %p3561_p5 = scmp.eq.s32.totalorder %s2532_s9, 1  ;;  %p1998_p9 = scmp.lt.s32.totalorder %s2452_s30, 2 }
  0x53   : > { %s2633_s25 = scalar_select %p37_p13, %s2448_s29, %s39_s24  }
  0x54   : > { %p48_p3 = por %p47_p10, %p46_p6  ;;  %p2637_p7 = por %p3561_p5, %p46_p6 }
  0x55   : > { %3560 = sst [smem:[#allocation20_spill]] %s2633_s25  ;;  %s294_s16 = sand.u32 1, %s2448_s29  }
  0x56   : > { %s3562_s26 = scalar_select %p2637_p7, 1, 0 }
  0x57   : > { %s1755_s15 = sshll.u32 %s294_s16, 8  ;;  %s1851_s18 = sshll.u32 %s2452_s30, 12 }
  0x58   : > { %s3563_s0 = sld [smem:[#allocation39_spill]]  ;;  %s298_s21 = scalar_lea.vmem [#allocation2], %s1755_s15 }
  0x59   : > { %s305_s23 = sshll.u32 %s298_s21, 4  ;;  %p2651_p11 = pnand %p1998_p9, %p48_p3  ;;  %s2649_s23 = int_to_ptr.vmem [resolvable:$true] %s305_s23 }
  0x5a   : > { %s2658_s17 = scalar_lea.hbm %s3516_s1, %s1851_s18  ;;  %s319_s19 = scalar_lea.vmem [#allocation5], %s1755_s15 }
  0x5b   : > { %s2660_s2 = sshll.u32 %s319_s19, 4  ;;  %s2662_s3 = scalar_lea.sflag [#allocation3], %s294_s16  ;;  %s2694_s2 = int_to_ptr.vmem [resolvable:$true] %s2660_s2 }
  0x5c   : > { %p2284_p0 = pneg %p2651_p11 }
  0x5e   : > { %s2647_s20 = scalar_lea.hbm %s3563_s0, %s1851_s18  ;;  %s2287_s10 = scalar_lea.hbm %s3563_s0, 8192 }
  0x5f   : > { %s2282_s21 = scalar_lea.hbm %s2647_s20, 4096  ;;  %p2288_p13 = scmp.lt.u32.totalorder %s2647_s20, %s3563_s0 }
  0x60   : > { %p2283_p12 = scmp.ne.s32.totalorder %s2647_s20, %s2282_s21  ;;  %p2289_p6 = scmp.lt.u32.totalorder %s2287_s10, %s2282_s21 }
  0x61   : > { %p2291_p3 = scmp.lt.u32.totalorder %s2282_s21, %s2647_s20 }
  0x62   : > { %p2285_p1 = pnand %p2284_p0, %p2283_p12  ;;  %p2290_p10 = por %p2289_p6, %p2288_p13 }
  0x64   : > { %p2286_p2 = pneg %p2285_p1  ;;  %p2292_p5 = por %p2291_p3, %p2290_p10 }
  0x66   : > { %p2293_p9 = pnand %p2292_p5, %p2286_p2 }
  0x68   : > { %2296 = shalt.err (!%p2293_p9)
}
  0x69   : > { %s2297_s16 = scalar_lea.vmem %s2649_s23, 4096  ;;  %s2460_s29 = smov [#allocation2]  }
  0x6a   : > { %p2298_p12 = scmp.ne.s32.totalorder %s2649_s23, %s2297_s16  ;;  %s2302_s25 = sshll.u32 %s2460_s29, 4  ;;  %s2303_s25 = int_to_ptr.vmem [resolvable:$false] %s2302_s25 }
  0x6b   : > { %s2304_s15 = scalar_lea.vmem %s2303_s25, 8192  ;;  %p2305_p4 = scmp.lt.s32.totalorder %s2649_s23, %s2303_s25 }
  0x6c   : > { %p2300_p1 = pnand %p2298_p12, %p2284_p0  ;;  %p2306_p13 = scmp.lt.s32.totalorder %s2304_s15, %s2297_s16 }
  0x6e   : > { %p2301_p7 = pneg %p2300_p1  ;;  %p2307_p6 = por %p2306_p13, %p2305_p4 }
  0x70   : > { %p2308_p10 = pnand %p2307_p6, %p2301_p7 }
  0x72   : > { %2311 = shalt.err (!%p2308_p10)
}
  0x73   : > { %s3565_s19 = smov 8   ;;  %s3566_s21 = smov 128  }
  0x74   : > { %1985 = dma.hbm_to_vmem [thread:$0]  (!%p2651_p11), %s2647_s20, 4096, %s2649_s23, %s2662_s3, %s3566_s21, %s3566_s21, %s3565_s19  }
  0x75   : > { %s315_s10 = sand.u32 1, %s2452_s30   ;;  %s2312_s18 = scalar_lea.hbm %s2658_s17, 4096 }
  0x76   : > { %s2697_s14 = scalar_lea.sflag [#allocation6], %s315_s10  ;;  %p2313_p4 = scmp.ne.s32.totalorder %s2658_s17, %s2312_s18 }
  0x77   : > { %s2317_s25 = scalar_lea.hbm %s3516_s1, 8192  ;;  %p2318_p3 = scmp.lt.u32.totalorder %s2658_s17, %s3516_s1 }
  0x78   : > { %p2315_p7 = pnand %p2313_p4, %p2284_p0  ;;  %p2319_p5 = scmp.lt.u32.totalorder %s2317_s25, %s2312_s18 }
  0x79   : > { %p2321_p12 = scmp.lt.u32.totalorder %s2312_s18, %s2658_s17 }
  0x7a   : > { %p2316_p2 = pneg %p2315_p7  ;;  %p2320_p9 = por %p2319_p5, %p2318_p3 }
  0x7c   : > { %p2322_p1 = por %p2321_p12, %p2320_p9 }
  0x7e   : > { %p2323_p13 = pnand %p2322_p1, %p2316_p2 }
  0x80   : > { %2326 = shalt.err (!%p2323_p13)
}
  0x81   : > { %s2327_s3 = scalar_lea.vmem %s2694_s2, 4096  ;;  %s2461_s20 = smov [#allocation5]  }
  0x82   : > { %p2328_p6 = scmp.ne.s32.totalorder %s2694_s2, %s2327_s3  ;;  %s2332_s23 = sshll.u32 %s2461_s20, 4  ;;  %s2333_s23 = int_to_ptr.vmem [resolvable:$false] %s2332_s23 }
  0x83   : > { %s2334_s0 = scalar_lea.vmem %s2333_s23, 8192  ;;  %p2335_p7 = scmp.lt.s32.totalorder %s2694_s2, %s2333_s23 }
  0x84   : > { %p2330_p10 = pnand %p2328_p6, %p2284_p0  ;;  %p2336_p3 = scmp.lt.s32.totalorder %s2334_s0, %s2327_s3 }
  0x86   : > { %p2331_p4 = pneg %p2330_p10  ;;  %p2337_p5 = por %p2336_p3, %p2335_p7 }
  0x88   : > { %p2338_p9 = pnand %p2337_p5, %p2331_p4 }
  0x8a   : > { %2341 = shalt.err (!%p2338_p9)
}
  0x8b   : > { %1988 = dma.hbm_to_vmem [thread:$0]  (!%p2651_p11), %s2658_s17, 4096, %s2694_s2, %s2697_s14, %s3566_s21, %s3566_s21, %s3565_s19  }
  0x8c   : > { %338 = sbr.rel (%p2551_p8) target bundleno = 812 (0x32c), region = 48 }
  0x93   : > { %s2729_s10 = sand.u32 1, %s2444_s28   ;;  %p3567_p0 = scmp.ne.s32.totalorder %s3554_s11, 0 }
  0x94   : > { %s2732_s18 = sshll.u32 %s2729_s10, 8  ;;  %s341_s24 = scalar_lea.sflag [#allocation3], %s2729_s10 }
  0x95   : > { %s2736_s16 = scalar_lea.vmem [#allocation2], %s2732_s18 }
  0x96   : > { %2415 = dma.done.wait (%p3567_p0), %s341_s24, 4096  }
  0x97   : > { %2417 = vsyncadd (%p3567_p0), %s341_s24, 4294963200  ;;  %s349_s2 = sand.u32 1, %s2532_s9   ;;  %s2744_s17 = scalar_lea.vmem [#allocation5], %s2732_s18 }
  0x98   : > { %s350_s13 = scalar_lea.sflag [#allocation6], %s349_s2 }
  0x99   : > { %2419 = dma.done.wait (%p3567_p0), %s350_s13, 4096  }
  0x9a   : > { %2421 = vsyncadd (%p3567_p0), %s350_s13, 4294963200  ;;  %p3568_p8 = scmp.eq.s32.totalorder %s2532_s9, 0 }
  0x9c   : > { %2423 = dma.done.wait (%p3568_p8), [#allocation6], 4096   ;;  %p3569_p11 = pmov %p3568_p8 }
  0x9d   : > { %p3570_p2 = pmov %p3568_p8 }
  0x9e   : > { %2425 = vsyncadd (%p3569_p11), [#allocation6], 4294963200 }
  0x9f   : > { %2427 = dma.done.wait (%p3570_p2), [#allocation9], 1024   ;;  %p3571_p12 = pmov %p3570_p2 }
  0xa0   : > { %v2042_v0 = vld [vmem:[#allocation7 + $0x4] ss:$8 sps:$4 sm:$0xff]   ;;  %v2044_v1 = vld [vmem:[#allocation7] ss:$8 sps:$4 sm:$0xff]   ;;  %v2045_v2 = vld [vmem:[#allocation7 + $0x14] ss:$8 sps:$4 sm:$0xff]  }
  0xa1   : > { %2429 = vsyncadd (%p3571_p12), [#allocation9], 4294966272  ;;  %697 = vmatprep.subr.bf16.mxu0 %v2042_v0  ;;  %1927 = vmatprep.subr.bf16.mxu1 %v2042_v0  ;;  %v2047_v3 = vld [vmem:[#allocation7 + $0x10] ss:$8 sps:$4 sm:$0xff]   ;;  %v2048_v4 = vld [vmem:[#allocation7 + $0x24] ss:$8 sps:$4 sm:$0xff]  }
  0xa2   : > { %698 = vmatpush1.bf16.msra.mxu0 %v2044_v1  ;;  %1943 = vmatpush1.bf16.msra.mxu1 %v2044_v1  ;;  %v2050_v5 = vld [vmem:[#allocation7 + $0x20] ss:$8 sps:$4 sm:$0xff]   ;;  %v2051_v6 = vld [vmem:[#allocation7 + $0x34] ss:$8 sps:$4 sm:$0xff]   ;;  %v2053_v7 = vld [vmem:[#allocation7 + $0x30] ss:$8 sps:$4 sm:$0xff]  }
  0xa3   : > { %699 = vmatprep.subr.bf16.mxu0 %v2045_v2  ;;  %1928 = vmatprep.subr.bf16.mxu1 %v2045_v2  ;;  %v2054_v8 = vld [vmem:[#allocation7 + $0x44] ss:$8 sps:$4 sm:$0xff]   ;;  %v2056_v9 = vld [vmem:[#allocation7 + $0x40] ss:$8 sps:$4 sm:$0xff]   ;;  %v2057_v10 = vld [vmem:[#allocation7 + $0x54] ss:$8 sps:$4 sm:$0xff]  }
  0xa4   : > { %v2059_v11 = vld [vmem:[#allocation7 + $0x50] ss:$8 sps:$4 sm:$0xff]   ;;  %v2060_v12 = vld [vmem:[#allocation7 + $0x64] ss:$8 sps:$4 sm:$0xff]   ;;  %v2062_v16 = vld [vmem:[#allocation7 + $0x60] ss:$8 sps:$4 sm:$0xff]  }
  0xa5   : > { %v457_v13 = vld [vmem:[%s2744_s17] sm:$0xff]  ;;  %v458_v14 = vld [vmem:[%s2744_s17 + $0x8] sm:$0xff]  ;;  %v2063_v17 = vld [vmem:[#allocation7 + $0x74] ss:$8 sps:$4 sm:$0xff]   ;;  %s2934_s21 = scalar_lea.vmem [#allocation11], %s2732_s18  ;;  %s1853_s25 = sshll.u32 %s2532_s9, 12 }
  0xa6   : > { %700 = vmatpush1.bf16.msra.mxu0 %v2047_v3  ;;  %1944 = vmatpush1.bf16.msra.mxu1 %v2047_v3  ;;  %v489_v15 = vpack.c.bf16 %v458_v14, %v457_v13  ;;  %v2065_v18 = vld [vmem:[#allocation7 + $0x70] ss:$8 sps:$4 sm:$0xff]   ;;  %v2066_v19 = vld [vmem:[#allocation7 + $0x84] ss:$8 sps:$4 sm:$0xff]   ;;  %v2068_v23 = vld [vmem:[#allocation7 + $0x80] ss:$8 sps:$4 sm:$0xff]   ;;  %s3356_s20 = scalar_lea.hbm %s3523_s8, %s1853_s25 }
  0xa7   : > { %701 = vmatprep.subr.bf16.mxu0 %v2048_v4  ;;  %1929 = vmatprep.subr.bf16.mxu1 %v2048_v4  ;;  %v481_v20 = vld [vmem:[%s2744_s17 + $0xc0] sm:$0xff]  ;;  %v482_v21 = vld [vmem:[%s2744_s17 + $0xc8] sm:$0xff]  ;;  %v2069_v24 = vld [vmem:[#allocation7 + $0x94] ss:$8 sps:$4 sm:$0xff]   ;;  %s1603_s23 = sshll.u32 %s2934_s21, 4  ;;  %s1574_s0 = scalar_lea.sflag [#allocation12], %s2729_s10  ;;  %s3359_s23 = int_to_ptr.vmem [resolvable:$true] %s1603_s23 }
  0xa8   : > { %729 = vmatprep.mubr.bf16.mxu0 %v489_v15  ;;  %v501_v22 = vpack.c.bf16 %v482_v21, %v481_v20  ;;  %v2071_v25 = vld [vmem:[#allocation7 + $0x90] ss:$8 sps:$4 sm:$0xff]   ;;  %v2072_v26 = vld [vmem:[#allocation7 + $0xa4] ss:$8 sps:$4 sm:$0xff]   ;;  %v2074_v27 = vld [vmem:[#allocation7 + $0xa0] ss:$8 sps:$4 sm:$0xff]  }
  0xa9   : > { %v2075_v28 = vld [vmem:[#allocation7 + $0xb4] ss:$8 sps:$4 sm:$0xff]   ;;  %v2077_v29 = vld [vmem:[#allocation7 + $0xb0] ss:$8 sps:$4 sm:$0xff]   ;;  %v2078_v30 = vld [vmem:[#allocation7 + $0xc4] ss:$8 sps:$4 sm:$0xff]  }
  0xaa   : > { %702 = vmatpush1.bf16.msra.mxu0 %v2050_v5  ;;  %1945 = vmatpush1.bf16.msra.mxu1 %v2050_v5  ;;  %v2080_v31 = vld [vmem:[#allocation7 + $0xc0] ss:$8 sps:$4 sm:$0xff]   ;;  %v2081_v32 = vld [vmem:[#allocation7 + $0xd4] ss:$8 sps:$4 sm:$0xff]   ;;  %v2083_v33 = vld [vmem:[#allocation7 + $0xd0] ss:$8 sps:$4 sm:$0xff]  }
  0xab   : > { %703 = vmatprep.subr.bf16.mxu0 %v2051_v6  ;;  %1930 = vmatprep.subr.bf16.mxu1 %v2051_v6  ;;  %v2084_v34 = vld [vmem:[#allocation7 + $0xe4] ss:$8 sps:$4 sm:$0xff]   ;;  %v2086_v35 = vld [vmem:[#allocation7 + $0xe0] ss:$8 sps:$4 sm:$0xff]   ;;  %v2087_v36 = vld [vmem:[#allocation7 + $0xf4] ss:$8 sps:$4 sm:$0xff]  }
  0xac   : > { %849 = vmatprep.mubr.bf16.mxu1 %v501_v22  ;;  %v2089_v37 = vld [vmem:[#allocation7 + $0xf0] ss:$8 sps:$4 sm:$0xff]   ;;  %v2763_v38 = vld [vmem:[%s2736_s16] sm:$0xff]  ;;  %v2766_v39 = vld [vmem:[%s2736_s16 + $0x8] sm:$0xff]  ;;  %s2342_s24 = scalar_lea.vmem %s3359_s23, 4096  ;;  %p3608_p13 = scmp.ne.s32.totalorder %s3562_s26, 0 }
  0xad   : > { %v459_v40 = vld [vmem:[%s2744_s17 + $0x10] sm:$0xff]  ;;  %v2770_v41 = vld [vmem:[%s2736_s16 + $0xc0] sm:$0xff]  ;;  %v2773_v42 = vld [vmem:[%s2736_s16 + $0xc8] sm:$0xff]  ;;  %v441_v46 = vpack.c.bf16 %v2766_v39, %v2763_v38  ;;  %p2343_p1 = scmp.ne.s32.totalorder %s3359_s23, %s2342_s24 }
  0xae   : > { %704 = vmatpush1.bf16.msra.mxu0 %v2053_v7  ;;  %1946 = vmatpush1.bf16.msra.mxu1 %v2053_v7  ;;  %v460_v43 = vld [vmem:[%s2744_s17 + $0x18] sm:$0xff]  ;;  %v483_v44 = vld [vmem:[%s2744_s17 + $0xd0] sm:$0xff]  ;;  %v453_v47 = vpack.c.bf16 %v2773_v42, %v2770_v41  ;;  %v461_v52 = vld [vmem:[%s2744_s17 + $0x20] sm:$0xff] }
  0xaf   : > { %705 = vmatprep.subr.bf16.mxu0 %v2054_v8  ;;  %1931 = vmatprep.subr.bf16.mxu1 %v2054_v8  ;;  %v484_v45 = vld [vmem:[%s2744_s17 + $0xd8] sm:$0xff]  ;;  %v490_v48 = vpack.c.bf16 %v460_v43, %v459_v40  ;;  %v2783_v50 = vld [vmem:[%s2736_s16 + $0x10] sm:$0xff]  ;;  %v462_v55 = vld [vmem:[%s2744_s17 + $0x28] sm:$0xff]  ;;  %p2344_p6 = pnand %p2343_p1, %p3608_p13 }
  0xb0   : > { %v502_v49 = vpack.c.bf16 %v484_v45, %v483_v44  ;;  %v2786_v51 = vld [vmem:[%s2736_s16 + $0x18] sm:$0xff]  ;;  %v2790_v53 = vld [vmem:[%s2736_s16 + $0xd0] sm:$0xff]  ;;  %v485_v56 = vld [vmem:[%s2744_s17 + $0xe0] sm:$0xff]  ;;  %v491_v60 = vpack.c.bf16 %v462_v55, %v461_v52 }
  0xb1   : > { %v2793_v54 = vld [vmem:[%s2736_s16 + $0xd8] sm:$0xff]  ;;  %v486_v57 = vld [vmem:[%s2744_s17 + $0xe8] sm:$0xff]  ;;  %v442_v58 = vpack.c.bf16 %v2786_v51, %v2783_v50  ;;  %v2803_v62 = vld [vmem:[%s2736_s16 + $0x20] sm:$0xff]  ;;  %p2345_p10 = pneg %p2344_p6 }
  0xb2   : > { %706 = vmatpush1.bf16.msra.mxu0 %v2056_v9  ;;  %1947 = vmatpush1.bf16.msra.mxu1 %v2056_v9  ;;  %v454_v59 = vpack.c.bf16 %v2793_v54, %v2790_v53  ;;  %v503_v61 = vpack.c.bf16 %v486_v57, %v485_v56  ;;  %v2806_v63 = vld [vmem:[%s2736_s16 + $0x28] sm:$0xff]  ;;  %v463_v0 = vld [vmem:[%s2744_s17 + $0x30] sm:$0xff]  ;;  %v2810_v1 = vld [vmem:[%s2736_s16 + $0xe0] sm:$0xff] }
  0xb3   : > { %707 = vmatprep.subr.bf16.mxu0 %v2057_v10  ;;  %1932 = vmatprep.subr.bf16.mxu1 %v2057_v10  ;;  %v2813_v2 = vld [vmem:[%s2736_s16 + $0xe8] sm:$0xff]  ;;  %v464_v3 = vld [vmem:[%s2744_s17 + $0x38] sm:$0xff]  ;;  %v487_v4 = vld [vmem:[%s2744_s17 + $0xf0] sm:$0xff]  ;;  %v443_v6 = vpack.c.bf16 %v2806_v63, %v2803_v62 }
  0xb4   : > { %v488_v5 = vld [vmem:[%s2744_s17 + $0xf8] sm:$0xff]  ;;  %v455_v7 = vpack.c.bf16 %v2813_v2, %v2810_v1  ;;  %v492_v8 = vpack.c.bf16 %v464_v3, %v463_v0  ;;  %v2823_v10 = vld [vmem:[%s2736_s16 + $0x30] sm:$0xff]  ;;  %v465_v14 = vld [vmem:[%s2744_s17 + $0x40] sm:$0xff] }
  0xb5   : > { %v504_v9 = vpack.c.bf16 %v488_v5, %v487_v4  ;;  %v2832_v13 = vld [vmem:[%s2736_s16 + $0xf8] sm:$0xff]  ;;  %v466_v15 = vld [vmem:[%s2744_s17 + $0x48] sm:$0xff]  ;;  %v467_v21 = vld [vmem:[%s2744_s17 + $0x50] sm:$0xff] }
  0xb6   : > { %708 = vmatpush1.bf16.msra.mxu0 %v2059_v11  ;;  %1948 = vmatpush1.bf16.msra.mxu1 %v2059_v11  ;;  %v2826_v11 = vld [vmem:[%s2736_s16 + $0x38] sm:$0xff]  ;;  %3572 = vst [vmem:[#allocation21_spill] sm:$0xff] %v2832_v13  ;;  %v2844_v20 = vld [vmem:[%s2736_s16 + $0x48] sm:$0xff]  ;;  %v473_v43 = vld [vmem:[%s2744_s17 + $0x80] sm:$0xff] }
  0xb7   : > { %709 = vmatprep.subr.bf16.mxu0 %v2060_v12  ;;  %1933 = vmatprep.subr.bf16.mxu1 %v2060_v12  ;;  %v2829_v12 = vld [vmem:[%s2736_s16 + $0xf0] sm:$0xff]  ;;  %3573 = vst [vmem:[#allocation22_spill] sm:$0xff] %v2844_v20  ;;  %v468_v22 = vld [vmem:[%s2744_s17 + $0x58] sm:$0xff]  ;;  %v474_v44 = vld [vmem:[%s2744_s17 + $0x88] sm:$0xff] }
  0xb8   : > { %v2874_v40 = vld [vmem:[%s2736_s16 + $0x78] sm:$0xff]  ;;  %v2891_v57 = vld [vmem:[%s2736_s16 + $0x90] sm:$0xff]  ;;  %v2901_v3 = vld [vmem:[%s2736_s16 + $0xa0] sm:$0xff] }
  0xb9   : > { %3579 = vst [vmem:[#allocation28_spill] sm:$0xff] %v2874_v40  ;;  %v476_v52 = vld [vmem:[%s2744_s17 + $0x98] sm:$0xff]  ;;  %3582 = vst [vmem:[#allocation31_spill] sm:$0xff] %v2891_v57  ;;  %v2904_v4 = vld [vmem:[%s2736_s16 + $0xa8] sm:$0xff] }
  0xba   : > { %710 = vmatpush1.bf16.msra.mxu0 %v2062_v16  ;;  %1949 = vmatpush1.bf16.msra.mxu1 %v2062_v16  ;;  %v444_v16 = vpack.c.bf16 %v2826_v11, %v2823_v10  ;;  %3584 = vst [vmem:[#allocation33_spill] sm:$0xff] %v2901_v3  ;;  %3585 = vst [vmem:[#allocation34_spill] sm:$0xff] %v2904_v4  ;;  %v479_v5 = vld [vmem:[%s2744_s17 + $0xb0] sm:$0xff] }
  0xbb   : > { %711 = vmatprep.subr.bf16.mxu0 %v2063_v17  ;;  %1934 = vmatprep.subr.bf16.mxu1 %v2063_v17  ;;  %v456_v17 = vpack.c.bf16 %v2832_v13, %v2829_v12 }
  0xbe   : > { %712 = vmatpush1.bf16.msra.mxu0 %v2065_v18  ;;  %1950 = vmatpush1.bf16.msra.mxu1 %v2065_v18  ;;  %v493_v18 = vpack.c.bf16 %v466_v15, %v465_v14  ;;  %v2914_v14 = vld [vmem:[%s2736_s16 + $0xb8] sm:$0xff] }
  0xbf   : > { %713 = vmatprep.subr.bf16.mxu0 %v2066_v19  ;;  %1935 = vmatprep.subr.bf16.mxu1 %v2066_v19  ;;  %v2841_v19 = vld [vmem:[%s2736_s16 + $0x40] sm:$0xff]  ;;  %3587 = vst [vmem:[#allocation36_spill] sm:$0xff] %v2914_v14 }
  0xc2   : > { %714 = vmatpush1.bf16.msra.mxu0 %v2068_v23  ;;  %1951 = vmatpush1.bf16.msra.mxu1 %v2068_v23  ;;  %v445_v23 = vpack.c.bf16 %v2844_v20, %v2841_v19 }
  0xc3   : > { %715 = vmatprep.subr.bf16.mxu0 %v2069_v24  ;;  %1936 = vmatprep.subr.bf16.mxu1 %v2069_v24  ;;  %v494_v24 = vpack.c.bf16 %v468_v22, %v467_v21  ;;  %v2093_v21 = vld [vmem:[#allocation8 + $0x18] sm:$0xff]   ;;  %v2094_v22 = vld [vmem:[#allocation8 + $0x20] sm:$0xff]  }
  0xc6   : > { %716 = vmatpush1.bf16.msra.mxu0 %v2071_v25  ;;  %1952 = vmatpush1.bf16.msra.mxu1 %v2071_v25  ;;  %v2851_v25 = vld [vmem:[%s2736_s16 + $0x50] sm:$0xff] }
  0xc7   : > { %717 = vmatprep.subr.bf16.mxu0 %v2072_v26  ;;  %1937 = vmatprep.subr.bf16.mxu1 %v2072_v26  ;;  %3574 = vst [vmem:[#allocation23_spill] sm:$0xff] %v2851_v25  ;;  %v2854_v26 = vld [vmem:[%s2736_s16 + $0x58] sm:$0xff] }
  0xc8   : > { %3575 = vst [vmem:[#allocation24_spill] sm:$0xff] %v2854_v26 }
  0xca   : > { %718 = vmatpush1.bf16.msra.mxu0 %v2074_v27  ;;  %1953 = vmatpush1.bf16.msra.mxu1 %v2074_v27  ;;  %v469_v27 = vld [vmem:[%s2744_s17 + $0x60] sm:$0xff] }
  0xcb   : > { %719 = vmatprep.subr.bf16.mxu0 %v2075_v28  ;;  %1938 = vmatprep.subr.bf16.mxu1 %v2075_v28  ;;  %v470_v28 = vld [vmem:[%s2744_s17 + $0x68] sm:$0xff] }
  0xce   : > { %720 = vmatpush1.bf16.msra.mxu0 %v2077_v29  ;;  %1954 = vmatpush1.bf16.msra.mxu1 %v2077_v29  ;;  %v446_v29 = vpack.c.bf16 %v2854_v26, %v2851_v25 }
  0xcf   : > { %721 = vmatprep.subr.bf16.mxu0 %v2078_v30  ;;  %1939 = vmatprep.subr.bf16.mxu1 %v2078_v30  ;;  %v495_v30 = vpack.c.bf16 %v470_v28, %v469_v27  ;;  %v2097_v27 = vld [vmem:[#allocation8 + $0x38] sm:$0xff]   ;;  %v2921_v28 = vld [vmem:[%s3519_s4] ss:$0 sm:$0xff] }
  0xd2   : > { %722 = vmatpush1.bf16.msra.mxu0 %v2080_v31  ;;  %1955 = vmatpush1.bf16.msra.mxu1 %v2080_v31  ;;  %v2861_v31 = vld [vmem:[%s2736_s16 + $0x60] sm:$0xff] }
  0xd3   : > { %723 = vmatprep.subr.bf16.mxu0 %v2081_v32  ;;  %1940 = vmatprep.subr.bf16.mxu1 %v2081_v32  ;;  %3576 = vst [vmem:[#allocation25_spill] sm:$0xff] %v2861_v31  ;;  %v2864_v32 = vld [vmem:[%s2736_s16 + $0x68] sm:$0xff] }
  0xd4   : > { %3577 = vst [vmem:[#allocation26_spill] sm:$0xff] %v2864_v32 }
  0xd6   : > { %724 = vmatpush1.bf16.msra.mxu0 %v2083_v33  ;;  %1956 = vmatpush1.bf16.msra.mxu1 %v2083_v33  ;;  %v471_v33 = vld [vmem:[%s2744_s17 + $0x70] sm:$0xff] }
  0xd7   : > { %725 = vmatprep.subr.bf16.mxu0 %v2084_v34  ;;  %1941 = vmatprep.subr.bf16.mxu1 %v2084_v34  ;;  %v472_v34 = vld [vmem:[%s2744_s17 + $0x78] sm:$0xff] }
  0xda   : > { %726 = vmatpush1.bf16.msra.mxu0 %v2086_v35  ;;  %1957 = vmatpush1.bf16.msra.mxu1 %v2086_v35  ;;  %v447_v35 = vpack.c.bf16 %v2864_v32, %v2861_v31 }
  0xdb   : > { %727 = vmatprep.subr.bf16.mxu0 %v2087_v36  ;;  %1942 = vmatprep.subr.bf16.mxu1 %v2087_v36  ;;  %v496_v36 = vpack.c.bf16 %v472_v34, %v471_v33 }
  0xde   : > { %728 = vmatpush1.bf16.msra.mxu0 %v2089_v37  ;;  %1958 = vmatpush1.bf16.msra.mxu1 %v2089_v37  ;;  %v2871_v37 = vld [vmem:[%s2736_s16 + $0x70] sm:$0xff] }
  0xdf   : > { %3578 = vst [vmem:[#allocation27_spill] sm:$0xff] %v2871_v37  ;;  %v448_v45 = vpack.c.bf16 %v2874_v40, %v2871_v37 }
  0xe1   : > { %730 = vmatmul.mubr.bf16.vlgmr.msra.gmra.mrb[0].mxu0 %v441_v46  ;;  %850 = vmatmul.mubr.bf16.vlgmr.msra.gmra.mrb[0].mxu1 %v453_v47  ;;  %v497_v46 = vpack.c.bf16 %v474_v44, %v473_v43  ;;  %v2881_v47 = vld [vmem:[%s2736_s16 + $0x80] sm:$0xff] }
  0xe2   : > { %739 = vmatprep.mubr.bf16.mxu0 %v490_v48  ;;  %859 = vmatprep.mubr.bf16.mxu1 %v502_v49  ;;  %3580 = vst [vmem:[#allocation29_spill] sm:$0xff] %v2881_v47  ;;  %v2884_v48 = vld [vmem:[%s2736_s16 + $0x88] sm:$0xff]  ;;  %v475_v49 = vld [vmem:[%s2744_s17 + $0x90] sm:$0xff] }
  0xe3   : > { %3581 = vst [vmem:[#allocation30_spill] sm:$0xff] %v2884_v48  ;;  %v449_v55 = vpack.c.bf16 %v2884_v48, %v2881_v47  ;;  %v498_v56 = vpack.c.bf16 %v476_v52, %v475_v49 }
  0xe9   : > { %740 = vmatmul.mubr.bf16.gmra.mrb[4].mxu0 %v442_v58  ;;  %860 = vmatmul.mubr.bf16.gmra.mrb[4].mxu1 %v454_v59  ;;  %v2894_v58 = vld [vmem:[%s2736_s16 + $0x98] sm:$0xff]  ;;  %v477_v59 = vld [vmem:[%s2744_s17 + $0xa0] sm:$0xff] }
  0xea   : > { %749 = vmatprep.mubr.bf16.mxu0 %v491_v60  ;;  %869 = vmatprep.mubr.bf16.mxu1 %v503_v61  ;;  %3583 = vst [vmem:[#allocation32_spill] sm:$0xff] %v2894_v58  ;;  %v478_v60 = vld [vmem:[%s2744_s17 + $0xa8] sm:$0xff]  ;;  %v450_v61 = vpack.c.bf16 %v2894_v58, %v2891_v57 }
  0xeb   : > { %v499_v0 = vpack.c.bf16 %v478_v60, %v477_v59 }
  0xf1   : > { %750 = vmatmul.mubr.bf16.gmra.mrb[8].mxu0 %v443_v6  ;;  %870 = vmatmul.mubr.bf16.gmra.mrb[8].mxu1 %v455_v7  ;;  %v480_v6 = vld [vmem:[%s2744_s17 + $0xb8] sm:$0xff]  ;;  %v451_v7 = vpack.c.bf16 %v2904_v4, %v2901_v3 }
  0xf2   : > { %759 = vmatprep.mubr.bf16.mxu0 %v492_v8  ;;  %879 = vmatprep.mubr.bf16.mxu1 %v504_v9  ;;  %v500_v8 = vpack.c.bf16 %v480_v6, %v479_v5  ;;  %v2911_v9 = vld [vmem:[%s2736_s16 + $0xb0] sm:$0xff]  ;;  %s2462_s16 = smov [#allocation11]  }
  0xf3   : > { %3586 = vst [vmem:[#allocation35_spill] sm:$0xff] %v2911_v9  ;;  %v452_v15 = vpack.c.bf16 %v2914_v14, %v2911_v9  ;;  %s2346_s2 = sshll.u32 %s2462_s16, 4  ;;  %s2347_s2 = int_to_ptr.vmem [resolvable:$false] %s2346_s2 }
  0xf4   : > { %s2348_s13 = scalar_lea.vmem %s2347_s2, 8192  ;;  %p2349_p4 = scmp.lt.s32.totalorder %s3359_s23, %s2347_s2 }
  0xf5   : > { %p2350_p7 = scmp.lt.s32.totalorder %s2348_s13, %s2342_s24 }
  0xf7   : > { %p2351_p3 = por %p2350_p7, %p2349_p4 }
  0xf9   : > { %760 = vmatmul.mubr.bf16.gmra.mrb[12].mxu0 %v444_v16  ;;  %880 = vmatmul.mubr.bf16.gmra.mrb[12].mxu1 %v456_v17  ;;  %v2090_v16 = vld [vmem:[#allocation8] sm:$0xff]   ;;  %v2091_v17 = vld [vmem:[#allocation8 + $0x8] sm:$0xff]   ;;  %p2352_p5 = pnand %p2351_p3, %p2345_p10 }
  0xfa   : > { %769 = vmatprep.mubr.bf16.mxu0 %v493_v18  ;;  %1879 = vmatprep.subr.bf16.mxu1 %v2090_v16  ;;  %v2092_v18 = vld [vmem:[#allocation8 + $0x10] sm:$0xff]  }
  0xfb   : > { %1880 = vmatpush3.bf16.msra.mxu1 %v2090_v16 }
  0xfc   : > { %1881 = vmatprep.subr.bf16.mxu1 %v2091_v17 }
  0xff   : > { %1882 = vmatpush3.bf16.msra.mxu1 %v2091_v17 }
 0x100   : > { %1883 = vmatprep.subr.bf16.mxu1 %v2092_v18 }
 0x101   : > { %770 = vmatmul.mubr.bf16.gmra.mrb[16].mxu0 %v445_v23  ;;  %v2095_v23 = vld [vmem:[#allocation8 + $0x28] sm:$0xff]  }
 0x102   : > { %779 = vmatprep.mubr.bf16.mxu0 %v494_v24  ;;  %v2096_v24 = vld [vmem:[#allocation8 + $0x30] sm:$0xff]  }
 0x103   : > { %1884 = vmatpush3.bf16.msra.mxu1 %v2092_v18 }
 0x104   : > { %1885 = vmatprep.subr.bf16.mxu1 %v2093_v21 }
 0x107   : > { %1886 = vmatpush3.bf16.msra.mxu1 %v2093_v21 }
 0x108   : > { %1887 = vmatprep.subr.bf16.mxu1 %v2094_v22 }
 0x109   : > { %780 = vmatmul.mubr.bf16.gmra.mrb[20].mxu0 %v446_v29 }
 0x10a   : > { %789 = vmatprep.mubr.bf16.mxu0 %v495_v30 }
 0x10b   : > { %1888 = vmatpush3.bf16.msra.mxu1 %v2094_v22 }
 0x10c   : > { %1889 = vmatprep.subr.bf16.mxu1 %v2095_v23 }
 0x10f   : > { %1890 = vmatpush3.bf16.msra.mxu1 %v2095_v23 }
 0x110   : > { %1891 = vmatprep.subr.bf16.mxu1 %v2096_v24 }
 0x111   : > { %790 = vmatmul.mubr.bf16.gmra.mrb[24].mxu0 %v447_v35 }
 0x112   : > { %799 = vmatprep.mubr.bf16.mxu0 %v496_v36 }
 0x113   : > { %1892 = vmatpush3.bf16.msra.mxu1 %v2096_v24 }
 0x114   : > { %1893 = vmatprep.subr.bf16.mxu1 %v2097_v27 }
 0x117   : > { %1894 = vmatpush3.bf16.msra.mxu1 %v2097_v27 }
 0x119   : > { %800 = vmatmul.mubr.bf16.gmra.mrb[28].mxu0 %v448_v45 }
 0x11a   : > { %809 = vmatprep.mubr.bf16.mxu0 %v497_v46 }
 0x121   : > { %810 = vmatmul.mubr.bf16.gmra.mrb[32].mxu0 %v449_v55 }
 0x122   : > { %819 = vmatprep.mubr.bf16.mxu0 %v498_v56 }
 0x129   : > { %820 = vmatmul.mubr.bf16.gmra.mrb[36].mxu0 %v450_v61 }
 0x12a   : > { %829 = vmatprep.mubr.bf16.mxu0 %v499_v0 }
 0x131   : > { %830 = vmatmul.mubr.bf16.gmra.mrb[40].mxu0 %v451_v7 }
 0x132   : > { %839 = vmatprep.mubr.bf16.mxu0 %v500_v8 }
 0x139   : > { %840 = vmatmul.mubr.bf16.gmra.mrb[44].mxu0 %v452_v15 }
 0x1b4   : > { %v731_v29 = vpop.f32.mrb[0].mxu0  ;;  %v851_v30 = vpop.f32.mrb[0].mxu1 }
 0x1b5   : > { %v2924_v33 = vadd.f32 %v2921_v28, %v731_v29  ;;  %v2926_v34 = vpop.f32.mrb[1].mxu0  ;;  %v2929_v35 = vadd.f32 %v2921_v28, %v851_v30  ;;  %v2931_v36 = vpop.f32.mrb[1].mxu1 }
 0x1b6   : > { %1536 = vst [vmem:[%s2934_s21] sm:$0xff] %v2926_v34  ;;  %v735_v43 = vpop.f32.mrb[2].mxu0  ;;  %1560 = vst [vmem:[%s2934_s21 + $0xc0] sm:$0xff] %v2931_v36  ;;  %v855_v44 = vpop.f32.mrb[2].mxu1 }
 0x1b7   : > { %v1801_v45 = vmul.f32 -1.442695, %v2924_v33  ;;  %v2942_v46 = vadd.f32 %v2921_v28, %v735_v43  ;;  %v2944_v49 = vpop.f32.mrb[3].mxu0  ;;  %v1825_v52 = vmul.f32 -1.442695, %v2929_v35  ;;  %v2948_v55 = vadd.f32 %v2921_v28, %v855_v44  ;;  %v2950_v56 = vpop.f32.mrb[3].mxu1 }
 0x1b8   : > { %1537 = vst [vmem:[%s2934_s21 + $0x8] sm:$0xff] %v2944_v49  ;;  %1561 = vst [vmem:[%s2934_s21 + $0xc8] sm:$0xff] %v2950_v56 }
 0x1b9   : > { %2098 = vpow2.f32 %v1801_v45  ;;  %v1802_v59 = vmul.f32 -1.442695, %v2942_v46  ;;  %v1826_v60 = vmul.f32 -1.442695, %v2948_v55 }
 0x1ba   : > { %2100 = vpow2.f32 %v1825_v52 }
 0x1bb   : > { %2102 = vpow2.f32 %v1802_v59 }
 0x1bc   : > { %v741_v61 = vpop.f32.mrb[4].mxu0  ;;  %2104 = vpow2.f32 %v1826_v60  ;;  %v861_v0 = vpop.f32.mrb[4].mxu1 }
 0x1bd   : > { %v2959_v5 = vadd.f32 %v2921_v28, %v741_v61  ;;  %v2961_v6 = vpop.f32.mrb[5].mxu0  ;;  %v2964_v7 = vadd.f32 %v2921_v28, %v861_v0  ;;  %v2966_v8 = vpop.f32.mrb[5].mxu1 }
 0x1be   : > { %1538 = vst [vmem:[%s2934_s21 + $0x10] sm:$0xff] %v2961_v6  ;;  %v745_v15 = vpop.f32.mrb[6].mxu0  ;;  %1562 = vst [vmem:[%s2934_s21 + $0xd0] sm:$0xff] %v2966_v8  ;;  %v865_v16 = vpop.f32.mrb[6].mxu1 }
 0x1bf   : > { %v1803_v17 = vmul.f32 -1.442695, %v2959_v5  ;;  %v2974_v18 = vadd.f32 %v2921_v28, %v745_v15  ;;  %v2976_v21 = vpop.f32.mrb[7].mxu0  ;;  %v1827_v22 = vmul.f32 -1.442695, %v2964_v7  ;;  %v2980_v23 = vadd.f32 %v2921_v28, %v865_v16  ;;  %v2982_v24 = vpop.f32.mrb[7].mxu1 }
 0x1c0   : > { %1539 = vst [vmem:[%s2934_s21 + $0x18] sm:$0xff] %v2976_v21  ;;  %1563 = vst [vmem:[%s2934_s21 + $0xd8] sm:$0xff] %v2982_v24 }
 0x1c1   : > { %2106 = vpow2.f32 %v1803_v17  ;;  %v1804_v27 = vmul.f32 -1.442695, %v2974_v18  ;;  %v1828_v29 = vmul.f32 -1.442695, %v2980_v23 }
 0x1c2   : > { %2108 = vpow2.f32 %v1827_v22 }
 0x1c3   : > { %v2099_v30 = vpop.eup %2098  ;;  %2110 = vpow2.f32 %v1804_v27 }
 0x1c4   : > { %v2101_v43 = vpop.eup %2100  ;;  %v1025_v44 = vadd.f32 1.0, %v2099_v30  ;;  %v751_v45 = vpop.f32.mrb[8].mxu0  ;;  %2112 = vpow2.f32 %v1828_v29 }
 0x1c5   : > { %v871_v52 = vpop.f32.mrb[8].mxu1  ;;  %v2103_v59 = vpop.eup %2102  ;;  %v2991_v60 = vadd.f32 %v2921_v28, %v751_v45  ;;  %v1049_v0 = vadd.f32 1.0, %v2101_v43 }
 0x1c6   : > { %v2993_v61 = vpop.f32.mrb[9].mxu0  ;;  %v2996_v15 = vadd.f32 %v2921_v28, %v871_v52  ;;  %v2998_v16 = vpop.f32.mrb[9].mxu1  ;;  %2114 = vrcp.f32 %v1025_v44  ;;  %v1026_v22 = vadd.f32 1.0, %v2103_v59 }
 0x1c7   : > { %v2105_v17 = vpop.eup %2104  ;;  %1540 = vst [vmem:[%s2934_s21 + $0x20] sm:$0xff] %v2993_v61  ;;  %v755_v27 = vpop.f32.mrb[10].mxu0  ;;  %1564 = vst [vmem:[%s2934_s21 + $0xe0] sm:$0xff] %v2998_v16  ;;  %v1805_v30 = vmul.f32 -1.442695, %v2991_v60  ;;  %2116 = vrcp.f32 %v1049_v0 }
 0x1c8   : > { %v875_v29 = vpop.f32.mrb[10].mxu1  ;;  %v3006_v43 = vadd.f32 %v2921_v28, %v755_v27  ;;  %v3008_v45 = vpop.f32.mrb[11].mxu0  ;;  %v1050_v52 = vadd.f32 1.0, %v2105_v17  ;;  %2118 = vrcp.f32 %v1026_v22  ;;  %v1829_v44 = vmul.f32 -1.442695, %v2996_v15 }
 0x1c9   : > { %v3010_v14 = vpop.f32.mrb[11].mxu1  ;;  %1541 = vst [vmem:[%s2934_s21 + $0x28] sm:$0xff] %v3008_v45  ;;  %v3016_v59 = vadd.f32 %v2921_v28, %v875_v29  ;;  %2120 = vpow2.f32 %v1805_v30 }
 0x1ca   : > { %1565 = vst [vmem:[%s2934_s21 + $0xe8] sm:$0xff] %v3010_v14  ;;  %v1806_v27 = vmul.f32 -1.442695, %v3006_v43  ;;  %2122 = vrcp.f32 %v1050_v52 }
 0x1cb   : > { %v1830_v9 = vmul.f32 -1.442695, %v3016_v59  ;;  %v2107_v0 = vpop.eup %2106 }
 0x1cc   : > { %2124 = vpow2.f32 %v1806_v27  ;;  %v2109_v17 = vpop.eup %2108  ;;  %v1027_v22 = vadd.f32 1.0, %v2107_v0  ;;  %v761_v4 = vpop.f32.mrb[12].mxu0 }
 0x1cd   : > { %2126 = vpow2.f32 %v1829_v44  ;;  %v881_v3 = vpop.f32.mrb[12].mxu1  ;;  %v2111_v58 = vpop.eup %2110  ;;  %v3023_v29 = vadd.f32 %v2921_v28, %v761_v4  ;;  %v1051_v30 = vadd.f32 1.0, %v2109_v17 }
 0x1ce   : > { %v3025_v57 = vpop.f32.mrb[13].mxu0  ;;  %2128 = vpow2.f32 %v1830_v9  ;;  %v3028_v52 = vadd.f32 %v2921_v28, %v881_v3  ;;  %v3030_v48 = vpop.f32.mrb[13].mxu1  ;;  %v1028_v0 = vadd.f32 1.0, %v2111_v58 }
 0x1cf   : > { %v2113_v27 = vpop.eup %2112  ;;  %2130 = vrcp.f32 %v1027_v22  ;;  %1542 = vst [vmem:[%s2934_s21 + $0x30] sm:$0xff] %v3025_v57  ;;  %v765_v44 = vpop.f32.mrb[14].mxu0  ;;  %1566 = vst [vmem:[%s2934_s21 + $0xf0] sm:$0xff] %v3030_v48  ;;  %v1807_v47 = vmul.f32 -1.442695, %v3023_v29 }
 0x1d0   : > { %v885_v4 = vpop.f32.mrb[14].mxu1  ;;  %v3038_v9 = vadd.f32 %v2921_v28, %v765_v44  ;;  %v3040_v3 = vpop.f32.mrb[15].mxu0  ;;  %2132 = vrcp.f32 %v1051_v30  ;;  %v1052_v17 = vadd.f32 1.0, %v2113_v27  ;;  %v1831_v58 = vmul.f32 -1.442695, %v3028_v52 }
 0x1d1   : > { %v3042_v40 = vpop.f32.mrb[15].mxu1  ;;  %v2115_v22 = vpop.eup %2114  ;;  %2134 = vrcp.f32 %v1028_v0  ;;  %1543 = vst [vmem:[%s2934_s21 + $0x38] sm:$0xff] %v3040_v3  ;;  %v3054_v30 = vld [vmem:[%s3520_s5] ss:$0 sm:$0xff]  ;;  %v3058_v0 = vadd.f32 %v2921_v28, %v885_v4 }
 0x1d2   : > { %3588 = vst [vmem:[#allocation37_spill] sm:$0xff] %v3042_v40  ;;  %1567 = vst [vmem:[%s2934_s21 + $0xf8] sm:$0xff] %v3042_v40  ;;  %v2117_v37 = vpop.eup %2116  ;;  %v1121_v32 = vmul.f32 %v2115_v22, %v2924_v33  ;;  %2136 = vpow2.f32 %v1807_v47  ;;  %v1808_v44 = vmul.f32 -1.442695, %v3038_v9 }
 0x1d3   : > { %v2119_v31 = vpop.eup %2118  ;;  %v1145_v27 = vmul.f32 %v2117_v37, %v2929_v35  ;;  %2138 = vrcp.f32 %v1052_v17  ;;  %3589 = vst [vmem:[#allocation38_spill] sm:$0xff] %v3058_v0 }
 0x1d4   : > { %v2121_v13 = vpop.eup %2120  ;;  %v1153_v40 = vmul.f32 %v1121_v32, %v2763_v38  ;;  %v1122_v33 = vmul.f32 %v2119_v31, %v2942_v46  ;;  %2140 = vpow2.f32 %v1808_v44  ;;  %v771_v26 = vpop.f32.mrb[16].mxu0 }
 0x1d5   : > { %v2123_v47 = vpop.eup %2122  ;;  %v1029_v22 = vadd.f32 1.0, %v2121_v13  ;;  %v1177_v25 = vmul.f32 %v1145_v27, %v2770_v41  ;;  %2142 = vpow2.f32 %v1831_v58  ;;  %v3066_v4 = vadd.f32 %v2921_v28, %v771_v26  ;;  %v3068_v17 = vpop.f32.mrb[17].mxu0 }
 0x1d6   : > { %v2125_v20 = vpop.eup %2124  ;;  %v1192_v37 = vmul.f32 %v3054_v30, %v1153_v40  ;;  %v1154_v35 = vmul.f32 %v1122_v33, %v2766_v39  ;;  %v1146_v38 = vmul.f32 %v2123_v47, %v2948_v55  ;;  %1544 = vst [vmem:[%s2934_s21 + $0x40] sm:$0xff] %v3068_v17  ;;  %v775_v41 = vpop.f32.mrb[18].mxu0  ;;  %v3075_v40 = vmul.f32 -1.442695, %v3058_v0 }
 0x1d7   : > { %v2127_v31 = vpop.eup %2126  ;;  %2144 = vrcp.f32 %v1029_v22  ;;  %v1030_v13 = vadd.f32 1.0, %v2125_v20  ;;  %v1216_v32 = vmul.f32 %v3054_v30, %v1177_v25  ;;  %v1809_v58 = vmul.f32 -1.442695, %v3066_v4  ;;  %v3083_v44 = vpop.f32.mrb[19].mxu0 }
 0x1d8   : > { %v2129_v39 = vpop.eup %2128  ;;  %v1224_v26 = vadd.f32 %v1192_v37, %v2926_v34  ;;  %v1193_v46 = vmul.f32 %v3054_v30, %v1154_v35  ;;  %v3081_v55 = vadd.f32 %v2921_v28, %v775_v41  ;;  %1545 = vst [vmem:[%s2934_s21 + $0x48] sm:$0xff] %v3083_v44  ;;  %v1178_v27 = vmul.f32 %v1146_v38, %v2773_v42 }
 0x1d9   : > { %v2131_v20 = vpop.eup %2130  ;;  %2146 = vrcp.f32 %v1030_v13  ;;  %v3088_v25 = vadd.f32 %v1216_v32, %v2931_v36  ;;  %v1053_v33 = vadd.f32 1.0, %v2127_v31  ;;  %v1054_v0 = vadd.f32 1.0, %v2129_v39 }
 0x1da   : > { %v2133_v34 = vpop.eup %2132  ;;  %v1225_v47 = vadd.f32 %v1193_v46, %v2944_v49  ;;  %v1123_v22 = vmul.f32 %v2131_v20, %v2959_v5  ;;  %2148 = vpow2.f32 %v1809_v58  ;;  %v1810_v37 = vmul.f32 -1.442695, %v3081_v55 }
 0x1db   : > { %v2135_v35 = vpop.eup %2134  ;;  %v1217_v41 = vmul.f32 %v3054_v30, %v1178_v27  ;;  %v1147_v13 = vmul.f32 %v2133_v34, %v2964_v7  ;;  %2150 = vrcp.f32 %v1053_v33 }
 0x1dc   : > { %v2137_v36 = vpop.eup %2136  ;;  %v1256_v32 = vpack.c.bf16 %v1225_v47, %v1224_v26  ;;  %v1155_v42 = vmul.f32 %v1123_v22, %v2783_v50  ;;  %v1124_v38 = vmul.f32 %v2135_v35, %v2974_v18  ;;  %2152 = vpow2.f32 %v1810_v37  ;;  %v781_v31 = vpop.f32.mrb[20].mxu0 }
 0x1dd   : > { %v2139_v49 = vpop.eup %2138  ;;  %v1031_v5 = vadd.f32 1.0, %v2137_v36  ;;  %v3099_v46 = vadd.f32 %v1217_v41, %v2950_v56  ;;  %v1179_v58 = vmul.f32 %v1147_v13, %v2790_v53  ;;  %2154 = vrcp.f32 %v1054_v0  ;;  %v3107_v18 = vpop.f32.mrb[21].mxu0 }
 0x1de   : > { %v2141_v7 = vpop.eup %2140  ;;  %v1194_v39 = vmul.f32 %v3054_v30, %v1155_v42  ;;  %v1156_v26 = vmul.f32 %v1124_v38, %v2786_v51  ;;  %v3105_v50 = vadd.f32 %v2921_v28, %v781_v31  ;;  %1895 = vmatprep.mubr.bf16.mxu1 %v1256_v32  ;;  %v1148_v20 = vmul.f32 %v2139_v49, %v2980_v23  ;;  %v785_v53 = vpop.f32.mrb[22].mxu0 }
 0x1df   : > { %v2143_v27 = vpop.eup %2142  ;;  %2156 = vrcp.f32 %v1031_v5  ;;  %v1032_v56 = vadd.f32 1.0, %v2141_v7  ;;  %1546 = vst [vmem:[%s2934_s21 + $0x50] sm:$0xff] %v3107_v18  ;;  %v1268_v0 = vpack.c.bf16 %v3099_v46, %v3088_v25  ;;  %v1218_v51 = vmul.f32 %v3054_v30, %v1179_v58  ;;  %v3121_v23 = vpop.f32.mrb[23].mxu0 }
 0x1e0   : > { %v1226_v33 = vadd.f32 %v1194_v39, %v2961_v6  ;;  %v1195_v34 = vmul.f32 %v3054_v30, %v1156_v26  ;;  %v1811_v47 = vmul.f32 -1.442695, %v3105_v50  ;;  %v3119_v22 = vadd.f32 %v2921_v28, %v785_v53  ;;  %1547 = vst [vmem:[%s2934_s21 + $0x58] sm:$0xff] %v3121_v23 }
 0x1e1   : > { %v2145_v37 = vpop.eup %2144  ;;  %2158 = vrcp.f32 %v1032_v56  ;;  %v3126_v35 = vadd.f32 %v1218_v51, %v2966_v8  ;;  %v1180_v41 = vmul.f32 %v1148_v20, %v2793_v54  ;;  %v1055_v13 = vadd.f32 1.0, %v2143_v27 }
 0x1e2   : > { %v1227_v6 = vadd.f32 %v1195_v34, %v2976_v21  ;;  %v1125_v36 = vmul.f32 %v2145_v37, %v2991_v60  ;;  %2160 = vpow2.f32 %v1811_v47  ;;  %v1812_v32 = vmul.f32 -1.442695, %v3119_v22 }
 0x1e3   : > { %v2147_v42 = vpop.eup %2146  ;;  %v1219_v38 = vmul.f32 %v3054_v30, %v1180_v41  ;;  %2162 = vrcp.f32 %v1055_v13 }
 0x1e4   : > { %v2149_v49 = vpop.eup %2148  ;;  %v1257_v5 = vpack.c.bf16 %v1227_v6, %v1226_v33  ;;  %v1157_v31 = vmul.f32 %v1125_v36, %v2803_v62  ;;  %v1126_v8 = vmul.f32 %v2147_v42, %v3006_v43  ;;  %2164 = vpow2.f32 %v1812_v32  ;;  %v791_v21 = vpop.f32.mrb[24].mxu0 }
 0x1e5   : > { %v2151_v54 = vpop.eup %2150  ;;  %v1033_v58 = vadd.f32 1.0, %v2149_v49  ;;  %v3136_v60 = vadd.f32 %v1219_v38, %v2982_v24  ;;  %2166 = vpow2.f32 %v3075_v40  ;;  %v3142_v20 = vadd.f32 %v2921_v28, %v791_v21  ;;  %v3144_v62 = vpop.f32.mrb[25].mxu0 }
 0x1e6   : > { %v2153_v7 = vpop.eup %2152  ;;  %v1196_v39 = vmul.f32 %v3054_v30, %v1157_v31  ;;  %v1158_v26 = vmul.f32 %v1126_v8, %v2806_v63  ;;  %1896 = vmatmul.mubr.bf16.vlgmr.msra.gmra.mrb[16].mxu1 %v1257_v5  ;;  %v1149_v43 = vmul.f32 %v2151_v54, %v2996_v15  ;;  %1548 = vst [vmem:[%s2934_s21 + $0x60] sm:$0xff] %v3144_v62  ;;  %v795_v40 = vpop.f32.mrb[26].mxu0 }
 0x1e7   : > { %v2155_v27 = vpop.eup %2154  ;;  %2168 = vrcp.f32 %v1033_v58  ;;  %v1034_v24 = vadd.f32 1.0, %v2153_v7  ;;  %v1269_v56 = vpack.c.bf16 %v3136_v60, %v3126_v35  ;;  %v1813_v51 = vmul.f32 -1.442695, %v3142_v20  ;;  %v3157_v34 = vpop.f32.mrb[27].mxu0 }
 0x1e8   : > { %v1228_v63 = vadd.f32 %v1196_v39, %v2993_v61  ;;  %v1197_v53 = vmul.f32 %v3054_v30, %v1158_v26  ;;  %v3155_v33 = vadd.f32 %v2921_v28, %v795_v40  ;;  %1549 = vst [vmem:[%s2934_s21 + $0x68] sm:$0xff] %v3157_v34  ;;  %v1181_v47 = vmul.f32 %v1149_v43, %v2810_v1 }
 0x1e9   : > { %v2157_v15 = vpop.eup %2156  ;;  %2170 = vrcp.f32 %v1034_v24  ;;  %v1150_v37 = vmul.f32 %v2155_v27, %v3016_v59 }
 0x1ea   : > { %v1229_v41 = vadd.f32 %v1197_v53, %v3008_v45  ;;  %v1127_v61 = vmul.f32 %v2157_v15, %v3023_v29  ;;  %2172 = vpow2.f32 %v1813_v51  ;;  %v1814_v13 = vmul.f32 -1.442695, %v3155_v33 }
 0x1eb   : > { %v2159_v6 = vpop.eup %2158  ;;  %v1220_v36 = vmul.f32 %v3054_v30, %v1181_v47  ;;  %v1182_v32 = vmul.f32 %v1150_v37, %v2813_v2 }
 0x1ec   : > { %v2161_v42 = vpop.eup %2160  ;;  %v1258_v38 = vpack.c.bf16 %v1229_v41, %v1228_v63  ;;  %v1159_v49 = vmul.f32 %v1127_v61, %v2823_v10  ;;  %v1128_v1 = vmul.f32 %v2159_v6, %v3038_v9  ;;  %2174 = vpow2.f32 %v1814_v13  ;;  %v801_v5 = vpop.f32.mrb[28].mxu0 }
 0x1ed   : > { %v2163_v59 = vpop.eup %2162  ;;  %v1035_v45 = vadd.f32 1.0, %v2161_v42  ;;  %v3171_v29 = vadd.f32 %v1220_v36, %v2998_v16  ;;  %v1221_v31 = vmul.f32 %v3054_v30, %v1182_v32  ;;  %v3177_v58 = vadd.f32 %v2921_v28, %v801_v5  ;;  %v3179_v10 = vpop.f32.mrb[29].mxu0  ;;  %v3590_v32 = vld [vmem:[#allocation22_spill] sm:$0xff] }
 0x1ee   : > { %v2165_v8 = vpop.eup %2164  ;;  %v1198_v54 = vmul.f32 %v3054_v30, %v1159_v49  ;;  %v1160_v2 = vmul.f32 %v1128_v1, %v2826_v11  ;;  %1899 = vmatprep.mubr.bf16.mxu1 %v1258_v38  ;;  %v1151_v9 = vmul.f32 %v2163_v59, %v3028_v52  ;;  %1550 = vst [vmem:[%s2934_s21 + $0x70] sm:$0xff] %v3179_v10  ;;  %v805_v7 = vpop.f32.mrb[30].mxu0 }
 0x1ef   : > { %v2167_v21 = vpop.eup %2166  ;;  %2176 = vrcp.f32 %v1035_v45  ;;  %v1036_v16 = vadd.f32 1.0, %v2165_v8  ;;  %v3185_v39 = vadd.f32 %v1221_v31, %v3010_v14  ;;  %v1815_v43 = vmul.f32 -1.442695, %v3177_v58  ;;  %v3193_v24 = vpop.f32.mrb[31].mxu0 }
 0x1f0   : > { %v1230_v11 = vadd.f32 %v1198_v54, %v3025_v57  ;;  %v1199_v26 = vmul.f32 %v3054_v30, %v1160_v2  ;;  %v3191_v27 = vadd.f32 %v2921_v28, %v805_v7  ;;  %1551 = vst [vmem:[%s2934_s21 + $0x78] sm:$0xff] %v3193_v24  ;;  %v1183_v14 = vmul.f32 %v1151_v9, %v2829_v12 }
 0x1f1   : > { %v2169_v52 = vpop.eup %2168  ;;  %2178 = vrcp.f32 %v1036_v16  ;;  %v1270_v40 = vpack.c.bf16 %v3185_v39, %v3171_v29  ;;  %v1056_v63 = vadd.f32 1.0, %v2167_v21  ;;  %v3591_v16 = vld [vmem:[#allocation23_spill] sm:$0xff] }
 0x1f2   : > { %v1231_v57 = vadd.f32 %v1199_v26, %v3040_v3  ;;  %v1129_v53 = vmul.f32 %v2169_v52, %v3066_v4  ;;  %2180 = vpow2.f32 %v1815_v43  ;;  %v1816_v51 = vmul.f32 -1.442695, %v3191_v27 }
 0x1f3   : > { %v2171_v15 = vpop.eup %2170  ;;  %v1222_v47 = vmul.f32 %v3054_v30, %v1183_v14  ;;  %2182 = vrcp.f32 %v1056_v63  ;;  %v3592_v63 = vld [vmem:[#allocation24_spill] sm:$0xff] }
 0x1f4   : > { %v2173_v37 = vpop.eup %2172  ;;  %v1259_v41 = vpack.c.bf16 %v1231_v57, %v1230_v11  ;;  %v1161_v61 = vmul.f32 %v1129_v53, %v2841_v19  ;;  %v1130_v13 = vmul.f32 %v2171_v15, %v3081_v55  ;;  %2184 = vpow2.f32 %v1816_v51  ;;  %v811_v6 = vpop.f32.mrb[32].mxu0  ;;  %v3593_v57 = vld [vmem:[#allocation38_spill] sm:$0xff] }
 0x1f5   : > { %v1037_v12 = vadd.f32 1.0, %v2173_v37  ;;  %v3207_v3 = vadd.f32 %v1222_v47, %v3030_v48  ;;  %v3212_v38 = vadd.f32 %v2921_v28, %v811_v6  ;;  %v3214_v49 = vpop.f32.mrb[33].mxu0 }
 0x1f6   : > { %v2175_v4 = vpop.eup %2174  ;;  %v1200_v36 = vmul.f32 %v3054_v30, %v1161_v61  ;;  %v1162_v42 = vmul.f32 %v1130_v13, %v3590_v32  ;;  %1900 = vmatmul.mubr.bf16.gmra.mrb[20].mxu1 %v1259_v41  ;;  %1552 = vst [vmem:[%s2934_s21 + $0x80] sm:$0xff] %v3214_v49  ;;  %v815_v55 = vpop.f32.mrb[34].mxu0  ;;  %v3594_v61 = vld [vmem:[#allocation21_spill] sm:$0xff] }
 0x1f7   : > { %2186 = vrcp.f32 %v1037_v12  ;;  %v1038_v19 = vadd.f32 1.0, %v2175_v4  ;;  %v1817_v59 = vmul.f32 -1.442695, %v3212_v38  ;;  %v3222_v45 = vadd.f32 %v2921_v28, %v815_v55  ;;  %v3224_v5 = vpop.f32.mrb[35].mxu0 }
 0x1f8   : > { %v1232_v48 = vadd.f32 %v1200_v36, %v3068_v17  ;;  %v1201_v1 = vmul.f32 %v3054_v30, %v1162_v42  ;;  %1553 = vst [vmem:[%s2934_s21 + $0x88] sm:$0xff] %v3224_v5 }
 0x1f9   : > { %v2177_v31 = vpop.eup %2176  ;;  %2188 = vrcp.f32 %v1038_v19  ;;  %v1818_v17 = vmul.f32 -1.442695, %v3222_v45 }
 0x1fa   : > { %v1233_v8 = vadd.f32 %v1201_v1, %v3083_v44  ;;  %v1131_v54 = vmul.f32 %v2177_v31, %v3105_v50  ;;  %2190 = vpow2.f32 %v1817_v59  ;;  %v3595_v59 = vld [vmem:[#allocation25_spill] sm:$0xff] }
 0x1fb   : > { %v2179_v2 = vpop.eup %2178  ;;  %2192 = vpow2.f32 %v1818_v17 }
 0x1fc   : > { %v2181_v9 = vpop.eup %2180  ;;  %v1260_v21 = vpack.c.bf16 %v1233_v8, %v1232_v48  ;;  %v1163_v7 = vmul.f32 %v1131_v54, %v3591_v16  ;;  %v1132_v11 = vmul.f32 %v2179_v2, %v3119_v22  ;;  %v821_v52 = vpop.f32.mrb[36].mxu0  ;;  %v3596_v54 = vld [vmem:[#allocation37_spill] sm:$0xff] }
 0x1fd   : > { %v2183_v26 = vpop.eup %2182  ;;  %v1039_v43 = vadd.f32 1.0, %v2181_v9  ;;  %v3237_v51 = vadd.f32 %v2921_v28, %v821_v52  ;;  %v3239_v15 = vpop.f32.mrb[37].mxu0 }
 0x1fe   : > { %v2185_v14 = vpop.eup %2184  ;;  %v1202_v44 = vmul.f32 %v3054_v30, %v1163_v7  ;;  %v1164_v50 = vmul.f32 %v1132_v11, %v3592_v63  ;;  %v1152_v53 = vmul.f32 %v2183_v26, %v3593_v57  ;;  %1903 = vmatprep.mubr.bf16.mxu1 %v1260_v21  ;;  %1554 = vst [vmem:[%s2934_s21 + $0x90] sm:$0xff] %v3239_v15  ;;  %v825_v47 = vpop.f32.mrb[38].mxu0  ;;  %v3597_v21 = vld [vmem:[#allocation26_spill] sm:$0xff] }
 0x1ff   : > { %2194 = vrcp.f32 %v1039_v43  ;;  %v1040_v22 = vadd.f32 1.0, %v2185_v14  ;;  %v1819_v12 = vmul.f32 -1.442695, %v3237_v51  ;;  %v3247_v6 = vpop.f32.mrb[39].mxu0  ;;  %v3250_v36 = vadd.f32 %v2921_v28, %v825_v47 }
 0x200   : > { %v1234_v37 = vadd.f32 %v1202_v44, %v3107_v18  ;;  %v1203_v41 = vmul.f32 %v3054_v30, %v1164_v50  ;;  %v1184_v13 = vmul.f32 %v1152_v53, %v3594_v61  ;;  %1555 = vst [vmem:[%s2934_s21 + $0x98] sm:$0xff] %v3247_v6  ;;  %v3598_v61 = vld [vmem:[#allocation27_spill] sm:$0xff] }
 0x201   : > { %v2187_v4 = vpop.eup %2186  ;;  %2196 = vrcp.f32 %v1040_v22  ;;  %v1820_v55 = vmul.f32 -1.442695, %v3250_v36 }
 0x202   : > { %v1235_v32 = vadd.f32 %v1203_v41, %v3121_v23  ;;  %v1133_v42 = vmul.f32 %v2187_v4, %v3142_v20  ;;  %2198 = vpow2.f32 %v1819_v12  ;;  %v1223_v18 = vmul.f32 %v3054_v30, %v1184_v13 }
 0x203   : > { %v2189_v19 = vpop.eup %2188  ;;  %2200 = vpow2.f32 %v1820_v55 }
 0x204   : > { %v2191_v48 = vpop.eup %2190  ;;  %v1261_v1 = vpack.c.bf16 %v1235_v32, %v1234_v37  ;;  %v1165_v31 = vmul.f32 %v1133_v42, %v3595_v59  ;;  %v1134_v8 = vmul.f32 %v2189_v19, %v3155_v33  ;;  %v3261_v17 = vadd.f32 %v1223_v18, %v3596_v54  ;;  %v831_v23 = vpop.f32.mrb[40].mxu0  ;;  %v3599_v18 = vld [vmem:[#allocation28_spill] sm:$0xff] }
 0x205   : > { %v1041_v2 = vadd.f32 1.0, %v2191_v48  ;;  %v2193_v20 = vpop.eup %2192  ;;  %v3266_v7 = vadd.f32 %v2921_v28, %v831_v23  ;;  %v3268_v11 = vpop.f32.mrb[41].mxu0 }
 0x206   : > { %v1204_v9 = vmul.f32 %v3054_v30, %v1165_v31  ;;  %v1166_v16 = vmul.f32 %v1134_v8, %v3597_v21  ;;  %1904 = vmatmul.mubr.bf16.gmra.mrb[24].mxu1 %v1261_v1  ;;  %v1271_v33 = vpack.c.bf16 %v3261_v17, %v3207_v3  ;;  %v1042_v26 = vadd.f32 1.0, %v2193_v20  ;;  %1556 = vst [vmem:[%s2934_s21 + $0xa0] sm:$0xff] %v3268_v11  ;;  %v835_v43 = vpop.f32.mrb[42].mxu0 }
 0x207   : > { %2202 = vrcp.f32 %v1041_v2  ;;  %v1821_v44 = vmul.f32 -1.442695, %v3266_v7  ;;  %v3278_v63 = vadd.f32 %v2921_v28, %v835_v43  ;;  %v3280_v50 = vpop.f32.mrb[43].mxu0 }
 0x208   : > { %v1236_v52 = vadd.f32 %v1204_v9, %v3144_v62  ;;  %v1205_v14 = vmul.f32 %v3054_v30, %v1166_v16  ;;  %2204 = vrcp.f32 %v1042_v26  ;;  %1557 = vst [vmem:[%s2934_s21 + $0xa8] sm:$0xff] %v3280_v50  ;;  %v3600_v26 = vld [vmem:[#allocation29_spill] sm:$0xff] }
 0x209   : > { %v2195_v57 = vpop.eup %2194  ;;  %2206 = vpow2.f32 %v1821_v44  ;;  %v1822_v62 = vmul.f32 -1.442695, %v3278_v63 }
 0x20a   : > { %v1237_v53 = vadd.f32 %v1205_v14, %v3157_v34  ;;  %v1135_v22 = vmul.f32 %v2195_v57, %v3177_v58  ;;  %v3601_v57 = vld [vmem:[#allocation30_spill] sm:$0xff] }
 0x20b   : > { %v2197_v47 = vpop.eup %2196  ;;  %2208 = vpow2.f32 %v1822_v62 }
 0x20c   : > { %v2199_v37 = vpop.eup %2198  ;;  %v1262_v41 = vpack.c.bf16 %v1237_v53, %v1236_v52  ;;  %v1167_v13 = vmul.f32 %v1135_v22, %v3598_v61  ;;  %v1136_v12 = vmul.f32 %v2197_v47, %v3191_v27  ;;  %v841_v32 = vpop.f32.mrb[44].mxu0  ;;  %v3602_v61 = vld [vmem:[#allocation31_spill] sm:$0xff] }
 0x20d   : > { %v1043_v4 = vadd.f32 1.0, %v2199_v37  ;;  %v3292_v58 = vadd.f32 %v2921_v28, %v841_v32  ;;  %v3294_v19 = vpop.f32.mrb[45].mxu0  ;;  %v2201_v55 = vpop.eup %2200 }
 0x20e   : > { %v1206_v42 = vmul.f32 %v3054_v30, %v1167_v13  ;;  %v1168_v34 = vmul.f32 %v1136_v12, %v3599_v18  ;;  %1907 = vmatprep.mubr.bf16.mxu1 %v1262_v41  ;;  %1558 = vst [vmem:[%s2934_s21 + $0xb0] sm:$0xff] %v3294_v19  ;;  %v845_v48 = vpop.f32.mrb[46].mxu0  ;;  %v1044_v59 = vadd.f32 1.0, %v2201_v55  ;;  %v3603_v18 = vld [vmem:[#allocation32_spill] sm:$0xff] }
 0x20f   : > { %2210 = vrcp.f32 %v1043_v4  ;;  %v1823_v31 = vmul.f32 -1.442695, %v3292_v58  ;;  %v3301_v8 = vpop.f32.mrb[47].mxu0  ;;  %v920_v2 = vadd.f32 %v2921_v28, %v845_v48 }
 0x210   : > { %v1238_v27 = vadd.f32 %v1206_v42, %v3179_v10  ;;  %v1207_v1 = vmul.f32 %v3054_v30, %v1168_v34  ;;  %1559 = vst [vmem:[%s2934_s21 + $0xb8] sm:$0xff] %v3301_v8  ;;  %2212 = vrcp.f32 %v1044_v59  ;;  %v3604_v59 = vld [vmem:[#allocation33_spill] sm:$0xff] }
 0x211   : > { %v2203_v54 = vpop.eup %2202  ;;  %2214 = vpow2.f32 %v1823_v31  ;;  %v1824_v10 = vmul.f32 -1.442695, %v920_v2 }
 0x212   : > { %v1239_v23 = vadd.f32 %v1207_v1, %v3193_v24  ;;  %v1137_v20 = vmul.f32 %v2203_v54, %v3212_v38  ;;  %v2205_v9 = vpop.eup %2204 }
 0x213   : > { %v2207_v21 = vpop.eup %2206  ;;  %v1138_v52 = vmul.f32 %v2205_v9, %v3222_v45  ;;  %2216 = vpow2.f32 %v1824_v10  ;;  %v3605_v9 = vld [vmem:[#allocation34_spill] sm:$0xff] }
 0x214   : > { %v1263_v16 = vpack.c.bf16 %v1239_v23, %v1238_v27  ;;  %v1169_v43 = vmul.f32 %v1137_v20, %v3600_v26  ;;  %v1045_v14 = vadd.f32 1.0, %v2207_v21 }
 0x215   : > { %v2209_v44 = vpop.eup %2208  ;;  %v1170_v53 = vmul.f32 %v1138_v52, %v3601_v57  ;;  %v3606_v52 = vld [vmem:[#allocation35_spill] sm:$0xff] }
 0x216   : > { %v1208_v28 = vmul.f32 %v3054_v30, %v1169_v43  ;;  %1908 = vmatmul.mubr.bf16.gmra.mrb[28].mxu1 %v1263_v16  ;;  %2218 = vrcp.f32 %v1045_v14  ;;  %v1046_v24 = vadd.f32 1.0, %v2209_v44 }
 0x217   : > { %v1209_v22 = vmul.f32 %v3054_v30, %v1170_v53 }
 0x218   : > { %v1240_v38 = vadd.f32 %v1208_v28, %v3214_v49  ;;  %2220 = vrcp.f32 %v1046_v24 }
 0x219   : > { %v2211_v62 = vpop.eup %2210  ;;  %v1241_v47 = vadd.f32 %v1209_v22, %v3224_v5 }
 0x21a   : > { %v1139_v45 = vmul.f32 %v2211_v62, %v3237_v51  ;;  %v2213_v37 = vpop.eup %2212 }
 0x21b   : > { %v1264_v41 = vpack.c.bf16 %v1241_v47, %v1240_v38  ;;  %v2215_v12 = vpop.eup %2214  ;;  %v1140_v4 = vmul.f32 %v2213_v37, %v3250_v36 }
 0x21c   : > { %v1171_v13 = vmul.f32 %v1139_v45, %v3602_v61  ;;  %v1047_v42 = vadd.f32 1.0, %v2215_v12 }
 0x21d   : > { %1911 = vmatprep.mubr.bf16.mxu1 %v1264_v41  ;;  %v2217_v49 = vpop.eup %2216  ;;  %v1172_v34 = vmul.f32 %v1140_v4, %v3603_v18 }
 0x21e   : > { %v1210_v32 = vmul.f32 %v3054_v30, %v1171_v13  ;;  %2222 = vrcp.f32 %v1047_v42  ;;  %v1048_v5 = vadd.f32 1.0, %v2217_v49 }
 0x21f   : > { %v1211_v51 = vmul.f32 %v3054_v30, %v1172_v34 }
 0x220   : > { %v1242_v55 = vadd.f32 %v1210_v32, %v3239_v15  ;;  %v2219_v48 = vpop.eup %2218  ;;  %2224 = vrcp.f32 %v1048_v5 }
 0x221   : > { %v1141_v27 = vmul.f32 %v2219_v48, %v3266_v7  ;;  %v1243_v36 = vadd.f32 %v1211_v51, %v3247_v6 }
 0x222   : > { %v2221_v1 = vpop.eup %2220 }
 0x223   : > { %v1173_v31 = vmul.f32 %v1141_v27, %v3604_v59  ;;  %v1142_v54 = vmul.f32 %v2221_v1, %v3278_v63  ;;  %v1265_v23 = vpack.c.bf16 %v1243_v36, %v1242_v55 }
 0x225   : > { %v1212_v20 = vmul.f32 %v3054_v30, %v1173_v31  ;;  %v1174_v15 = vmul.f32 %v1142_v54, %v3605_v9  ;;  %1912 = vmatmul.mubr.bf16.gmra.mrb[32].mxu1 %v1265_v23 }
 0x227   : > { %v1244_v10 = vadd.f32 %v1212_v20, %v3268_v11  ;;  %v1213_v21 = vmul.f32 %v3054_v30, %v1174_v15  ;;  %v3607_v11 = vld [vmem:[#allocation36_spill] sm:$0xff] }
 0x228   : > { %v2223_v16 = vpop.eup %2222 }
 0x229   : > { %v1245_v7 = vadd.f32 %v1213_v21, %v3280_v50  ;;  %v1143_v26 = vmul.f32 %v2223_v16, %v3292_v58 }
 0x22a   : > { %v2225_v6 = vpop.eup %2224 }
 0x22b   : > { %v1266_v43 = vpack.c.bf16 %v1245_v7, %v1244_v10  ;;  %v1175_v63 = vmul.f32 %v1143_v26, %v3606_v52  ;;  %v1144_v14 = vmul.f32 %v2225_v6, %v920_v2 }
 0x22d   : > { %1915 = vmatprep.mubr.bf16.mxu1 %v1266_v43  ;;  %v1214_v44 = vmul.f32 %v3054_v30, %v1175_v63  ;;  %v1176_v28 = vmul.f32 %v1144_v14, %v3607_v11 }
 0x22f   : > { %v1246_v57 = vadd.f32 %v1214_v44, %v3294_v19  ;;  %v1215_v50 = vmul.f32 %v3054_v30, %v1176_v28 }
 0x231   : > { %v1247_v58 = vadd.f32 %v1215_v50, %v3301_v8 }
 0x233   : > { %v1267_v53 = vpack.c.bf16 %v1247_v58, %v1246_v57 }
 0x235   : > { %1916 = vmatmul.mubr.bf16.gmra.mrb[36].mxu1 %v1267_v53 }
 0x236   : > { %1919 = vmatprep.mubr.bf16.mxu1 %v1268_v0 }
 0x23d   : > { %1920 = vmatmul.mubr.bf16.gmra.mrb[40].mxu1 %v1269_v56 }
 0x23e   : > { %1923 = vmatprep.mubr.bf16.mxu1 %v1270_v40 }
 0x245   : > { %1924 = vmatmul.mubr.bf16.gmra.mrb[44].mxu1 %v1271_v33 }
 0x246   : > { %2355 = shalt.err (!%p2352_p5)
}
 0x247   : > { %s2356_s17 = scalar_lea.hbm %s3356_s20, 4096  ;;  %s2360_s21 = scalar_lea.hbm %s3523_s8, 8192 }
 0x248   : > { %p2357_p9 = scmp.ne.s32.totalorder %s3356_s20, %s2356_s17  ;;  %p2361_p11 = scmp.lt.u32.totalorder %s3356_s20, %s3523_s8 }
 0x249   : > { %p2362_p2 = scmp.lt.u32.totalorder %s2360_s21, %s2356_s17  ;;  %p2364_p1 = scmp.lt.u32.totalorder %s2356_s17, %s3356_s20 }
 0x24a   : > { %p2358_p0 = pnand %p2357_p9, %p3608_p13 }
 0x24b   : > { %p2363_p12 = por %p2362_p2, %p2361_p11 }
 0x24c   : > { %p2359_p8 = pneg %p2358_p0 }
 0x24d   : > { %p2365_p6 = por %p2364_p1, %p2363_p12 }
 0x24f   : > { %p2366_p10 = pnand %p2365_p6, %p2359_p8 }
 0x251   : > { %2369 = shalt.err (!%p2366_p10)
}
 0x252   : > { %s2463_s15 = smov 128   ;;  %s2464_s3 = smov 8   ;;  %v3391_v30 = vld [vmem:[%s3521_s6] ss:$0 sm:$0xff] }
 0x253   : > { %1972 = dma.vmem_to_hbm [thread:$0]  (%p3608_p13), %s3359_s23, 4096, %s3356_s20, %s1574_s0, %s2463_s15, %s2463_s15, %s2464_s3  }
 0x254   : > { %s3396_s2 = scalar_lea.vmem [#allocation10], %s2732_s18  ;;  %s3464_s0 = scalar_lea.hbm %s3522_s7, %s1853_s25 }
 0x255   : > { %s1587_s18 = sshll.u32 %s3396_s2, 4  ;;  %s1569_s13 = scalar_lea.sflag [#allocation4], %s2729_s10  ;;  %s3466_s18 = int_to_ptr.vmem [resolvable:$true] %s1587_s18 }
 0x256   : > { %s2370_s17 = scalar_lea.vmem %s3466_s18, 4096  ;;  %s2465_s11 = smov [#allocation10]  }
 0x257   : > { %p2371_p4 = scmp.ne.s32.totalorder %s3466_s18, %s2370_s17  ;;  %s2374_s9 = sshll.u32 %s2465_s11, 4  ;;  %s2375_s9 = int_to_ptr.vmem [resolvable:$false] %s2374_s9 }
 0x258   : > { %s2376_s19 = scalar_lea.vmem %s2375_s9, 8192  ;;  %p2377_p5 = scmp.lt.s32.totalorder %s3466_s18, %s2375_s9 }
 0x259   : > { %p2372_p7 = pnand %p2371_p4, %p3608_p13  ;;  %p2378_p9 = scmp.lt.s32.totalorder %s2376_s19, %s2370_s17 }
 0x25b   : > { %p2373_p3 = pneg %p2372_p7  ;;  %p2379_p0 = por %p2378_p9, %p2377_p5 }
 0x25d   : > { %p2380_p8 = pnand %p2379_p0, %p2373_p3 }
 0x2b9   : > { %v1897_v25 = vpop.f32.mrb[16].mxu1 }
 0x2ba   : > { %v1386_v46 = vadd.f32 %v1897_v25, %v3391_v30  ;;  %v1377_v0 = vpop.f32.mrb[17].mxu1 }
 0x2bb   : > { %v1378_v35 = vadd.f32 %v3391_v30, %v1377_v0  ;;  %v1898_v60 = vpop.f32.mrb[18].mxu1 }
 0x2bc   : > { %1506 = vst [vmem:[%s3396_s2 + $0x10] sm:$0xff] %v1386_v46  ;;  %v1389_v56 = vadd.f32 %v1898_v60, %v3391_v30  ;;  %v1380_v29 = vpop.f32.mrb[19].mxu1 }
 0x2bd   : > { %1504 = vst [vmem:[%s3396_s2] sm:$0xff] %v1378_v35  ;;  %v1381_v39 = vadd.f32 %v3391_v30, %v1380_v29 }
 0x2be   : > { %1507 = vst [vmem:[%s3396_s2 + $0x18] sm:$0xff] %v1389_v56 }
 0x2bf   : > { %1505 = vst [vmem:[%s3396_s2 + $0x8] sm:$0xff] %v1381_v39 }
 0x2c9   : > { %v1901_v40 = vpop.f32.mrb[20].mxu1 }
 0x2ca   : > { %v1402_v3 = vadd.f32 %v1901_v40, %v3391_v30  ;;  %v1393_v17 = vpop.f32.mrb[21].mxu1 }
 0x2cb   : > { %v1394_v33 = vadd.f32 %v3391_v30, %v1393_v17  ;;  %v1902_v19 = vpop.f32.mrb[22].mxu1 }
 0x2cc   : > { %1510 = vst [vmem:[%s3396_s2 + $0x30] sm:$0xff] %v1402_v3  ;;  %v1405_v8 = vadd.f32 %v1902_v19, %v3391_v30  ;;  %v1396_v2 = vpop.f32.mrb[23].mxu1 }
 0x2cd   : > { %1508 = vst [vmem:[%s3396_s2 + $0x20] sm:$0xff] %v1394_v33  ;;  %v1397_v24 = vadd.f32 %v3391_v30, %v1396_v2 }
 0x2ce   : > { %1511 = vst [vmem:[%s3396_s2 + $0x38] sm:$0xff] %v1405_v8 }
 0x2cf   : > { %1509 = vst [vmem:[%s3396_s2 + $0x28] sm:$0xff] %v1397_v24 }
 0x2d9   : > { %v1905_v38 = vpop.f32.mrb[24].mxu1 }
 0x2da   : > { %v1418_v22 = vadd.f32 %v1905_v38, %v3391_v30  ;;  %v1409_v62 = vpop.f32.mrb[25].mxu1 }
 0x2db   : > { %v1410_v47 = vadd.f32 %v3391_v30, %v1409_v62  ;;  %v1906_v45 = vpop.f32.mrb[26].mxu1 }
 0x2dc   : > { %1514 = vst [vmem:[%s3396_s2 + $0x50] sm:$0xff] %v1418_v22  ;;  %v1421_v37 = vadd.f32 %v1906_v45, %v3391_v30  ;;  %v1412_v41 = vpop.f32.mrb[27].mxu1 }
 0x2dd   : > { %1512 = vst [vmem:[%s3396_s2 + $0x40] sm:$0xff] %v1410_v47  ;;  %v1413_v61 = vadd.f32 %v3391_v30, %v1412_v41 }
 0x2de   : > { %1515 = vst [vmem:[%s3396_s2 + $0x58] sm:$0xff] %v1421_v37 }
 0x2df   : > { %1513 = vst [vmem:[%s3396_s2 + $0x48] sm:$0xff] %v1413_v61 }
 0x2e9   : > { %v1909_v13 = vpop.f32.mrb[28].mxu1 }
 0x2ea   : > { %v1434_v12 = vadd.f32 %v1909_v13, %v3391_v30  ;;  %v1425_v4 = vpop.f32.mrb[29].mxu1 }
 0x2eb   : > { %v1426_v32 = vadd.f32 %v3391_v30, %v1425_v4  ;;  %v1910_v42 = vpop.f32.mrb[30].mxu1 }
 0x2ec   : > { %1518 = vst [vmem:[%s3396_s2 + $0x70] sm:$0xff] %v1434_v12  ;;  %v1437_v49 = vadd.f32 %v1910_v42, %v3391_v30  ;;  %v1428_v18 = vpop.f32.mrb[31].mxu1 }
 0x2ed   : > { %1516 = vst [vmem:[%s3396_s2 + $0x60] sm:$0xff] %v1426_v32  ;;  %v1429_v34 = vadd.f32 %v3391_v30, %v1428_v18 }
 0x2ee   : > { %1519 = vst [vmem:[%s3396_s2 + $0x78] sm:$0xff] %v1437_v49 }
 0x2ef   : > { %1517 = vst [vmem:[%s3396_s2 + $0x68] sm:$0xff] %v1429_v34 }
 0x2f8   : > { %v1913_v55 = vpop.f32.mrb[32].mxu1 }
 0x2f9   : > { %v1450_v5 = vadd.f32 %v1913_v55, %v3391_v30  ;;  %v1441_v48 = vpop.f32.mrb[33].mxu1 }
 0x2fa   : > { %v1442_v51 = vadd.f32 %v3391_v30, %v1441_v48  ;;  %v1914_v27 = vpop.f32.mrb[34].mxu1 }
 0x2fb   : > { %1522 = vst [vmem:[%s3396_s2 + $0x90] sm:$0xff] %v1450_v5  ;;  %v1453_v1 = vadd.f32 %v1914_v27, %v3391_v30  ;;  %v1444_v36 = vpop.f32.mrb[35].mxu1 }
 0x2fc   : > { %1520 = vst [vmem:[%s3396_s2 + $0x80] sm:$0xff] %v1442_v51  ;;  %v1445_v59 = vadd.f32 %v3391_v30, %v1444_v36 }
 0x2fd   : > { %1523 = vst [vmem:[%s3396_s2 + $0x98] sm:$0xff] %v1453_v1 }
 0x2fe   : > { %1521 = vst [vmem:[%s3396_s2 + $0x88] sm:$0xff] %v1445_v59 }
 0x308   : > { %v1917_v31 = vpop.f32.mrb[36].mxu1 }
 0x309   : > { %v1466_v54 = vadd.f32 %v1917_v31, %v3391_v30  ;;  %v1457_v23 = vpop.f32.mrb[37].mxu1 }
 0x30a   : > { %v1458_v20 = vadd.f32 %v3391_v30, %v1457_v23  ;;  %v1918_v9 = vpop.f32.mrb[38].mxu1 }
 0x30b   : > { %1526 = vst [vmem:[%s3396_s2 + $0xb0] sm:$0xff] %v1466_v54  ;;  %v1469_v15 = vadd.f32 %v1918_v9, %v3391_v30  ;;  %v1460_v10 = vpop.f32.mrb[39].mxu1 }
 0x30c   : > { %1524 = vst [vmem:[%s3396_s2 + $0xa0] sm:$0xff] %v1458_v20  ;;  %v1461_v21 = vadd.f32 %v3391_v30, %v1460_v10 }
 0x30d   : > { %1527 = vst [vmem:[%s3396_s2 + $0xb8] sm:$0xff] %v1469_v15 }
 0x30e   : > { %1525 = vst [vmem:[%s3396_s2 + $0xa8] sm:$0xff] %v1461_v21 }
 0x310   : > { %v1921_v16 = vpop.f32.mrb[40].mxu1 }
 0x311   : > { %v1482_v7 = vadd.f32 %v1921_v16, %v3391_v30  ;;  %v1473_v26 = vpop.f32.mrb[41].mxu1 }
 0x312   : > { %v1474_v6 = vadd.f32 %v3391_v30, %v1473_v26  ;;  %v1922_v43 = vpop.f32.mrb[42].mxu1 }
 0x313   : > { %1530 = vst [vmem:[%s3396_s2 + $0xd0] sm:$0xff] %v1482_v7  ;;  %v1485_v52 = vadd.f32 %v1922_v43, %v3391_v30  ;;  %v1476_v63 = vpop.f32.mrb[43].mxu1 }
 0x314   : > { %1528 = vst [vmem:[%s3396_s2 + $0xc0] sm:$0xff] %v1474_v6  ;;  %v1477_v14 = vadd.f32 %v3391_v30, %v1476_v63 }
 0x315   : > { %1531 = vst [vmem:[%s3396_s2 + $0xd8] sm:$0xff] %v1485_v52 }
 0x316   : > { %1529 = vst [vmem:[%s3396_s2 + $0xc8] sm:$0xff] %v1477_v14 }
 0x318   : > { %v1925_v44 = vpop.f32.mrb[44].mxu1 }
 0x319   : > { %v1498_v11 = vadd.f32 %v1925_v44, %v3391_v30  ;;  %v1489_v28 = vpop.f32.mrb[45].mxu1 }
 0x31a   : > { %v1490_v57 = vadd.f32 %v3391_v30, %v1489_v28  ;;  %v1926_v50 = vpop.f32.mrb[46].mxu1 }
 0x31b   : > { %1534 = vst [vmem:[%s3396_s2 + $0xf0] sm:$0xff] %v1498_v11  ;;  %v1501_v58 = vadd.f32 %v1926_v50, %v3391_v30  ;;  %v1492_v53 = vpop.f32.mrb[47].mxu1 }
 0x31c   : > { %1532 = vst [vmem:[%s3396_s2 + $0xe0] sm:$0xff] %v1490_v57  ;;  %v1493_v25 = vadd.f32 %v3391_v30, %v1492_v53 }
 0x31d   : > { %1535 = vst [vmem:[%s3396_s2 + $0xf8] sm:$0xff] %v1501_v58 }
 0x31e   : > { %1533 = vst [vmem:[%s3396_s2 + $0xe8] sm:$0xff] %v1493_v25 }
 0x31f   : > { %2383 = shalt.err (!%p2380_p8)
}
 0x320   : > { %s2384_s25 = scalar_lea.hbm %s3464_s0, 4096  ;;  %s2388_s29 = scalar_lea.hbm %s3522_s7, 8192 }
 0x321   : > { %p2385_p11 = scmp.ne.s32.totalorder %s3464_s0, %s2384_s25  ;;  %p2389_p1 = scmp.lt.u32.totalorder %s3464_s0, %s3522_s7 }
 0x322   : > { %p2390_p6 = scmp.lt.u32.totalorder %s2388_s29, %s2384_s25  ;;  %p2392_p4 = scmp.lt.u32.totalorder %s2384_s25, %s3464_s0 }
 0x323   : > { %p2386_p2 = pnand %p2385_p11, %p3608_p13 }
 0x324   : > { %p2391_p10 = por %p2390_p6, %p2389_p1 }
 0x325   : > { %p2387_p12 = pneg %p2386_p2 }
 0x326   : > { %p2393_p7 = por %p2392_p4, %p2391_p10 }
 0x328   : > { %p2394_p3 = pnand %p2393_p7, %p2387_p12 }
 0x32a   : > { %2397 = shalt.err (!%p2394_p3)
}
 0x32b   : > { %1971 = dma.vmem_to_hbm [thread:$0]  (%p3608_p13), %s3466_s18, 4096, %s3464_s0, %s1569_s13, %s2463_s15, %s2463_s15, %s2464_s3  }
 0x32c PF: > { %s1618_s2 = sand.u32 1, %s2440_s27   ;;  %p3609_p5 = scmp.ne.s32.totalorder %s3555_s12, 0 }
 0x32d   : > { %p3610_p9 = scmp.ge.s32.totalorder %s2452_s30, 2  ;;  %s1619_s20 = scalar_lea.sflag [#allocation4], %s1618_s2 }
 0x32f   : > { %p1990_p0 = pnand %p3610_p9, %p3609_p5 }
 0x331   : > { %2431 = dma.done.wait (!%p1990_p0), %s1619_s20, 4096  }
 0x332   : > { %2433 = vsyncadd (!%p1990_p0), %s1619_s20, 4294963200  ;;  %s1628_s26 = scalar_lea.sflag [#allocation12], %s1618_s2 }
 0x333   : > { %2435 = dma.done.wait (!%p1990_p0), %s1628_s26, 4096  }
 0x334   : > { %2437 = vsyncadd (!%p1990_p0), %s1628_s26, 4294963200  ;;  %s3611_s10 = sld [smem:[#allocation19_spill]]  ;;  %s3612_s29 = sld [smem:[#allocation20_spill]] }
 0x335   : > { %p29_p13 = scmp.ge.s32.totalorder %s2624_s22, 4   ;;  %s3613_s27 = smov %s2444_s28 }
 0x336   : > { %s3615_s30 = smov %s2624_s22 }
 0x337   :  { %31 = sbr.rel (!%p29_p13) target bundleno = 14 (0xe), region = 131 }
 0x33a   : > { %s3614_s28 = smov %s3611_s10 }
 0x33e   :  { %1633 = vsyncpa [#allocation3], 1 }
 0x33f   :  { %1635 = vsyncpa [#allocation3 + $0x1], 1 }
 0x340   :  { %1636 = vsyncpa [#allocation6], 1 }
 0x341   :  { %1638 = vsyncpa [#allocation6 + $0x1], 1 }
 0x342   :  { %1639 = vsyncpa [#allocation9], 1 }
 0x343   :  { %1640 = vsyncpa [#allocation4], 1 }
 0x344   :  { %1642 = vsyncpa [#allocation4 + $0x1], 1 }
 0x345   :  { %1643 = vsyncpa [#allocation12], 1 }
 0x346   :  { %1645 = vsyncpa [#allocation12 + $0x1], 1 }

// kernel: _forward.1
= control target key start
LH: loop header
LB: loop body
LE: loop exit
PB: predicated region body
PF: predicated region fallthrough
CT: control target
= control target key end

     0   :  { %s3515_s0 = inlined_call_operand.hbm [shape: f32[512,128], index: 0, kind: input, shape index: {}]   ;;  %s3516_s1 = inlined_call_operand.hbm [shape: f32[512,128], index: 1, kind: input, shape index: {}]   ;;  %s3517_s2 = inlined_call_operand.hbm [shape: bf16[256,256], index: 2, kind: input, shape index: {}]   ;;  %s3518_s3 = inlined_call_operand.hbm [shape: bf16[128,128], index: 3, kind: input, shape index: {}]   ;;  %s3519_s4 = inlined_call_operand.vmem [shape: f32[1,128], index: 4, kind: input, shape index: {}]   ;;  %s3520_s5 = inlined_call_operand.vmem [shape: f32[1,128], index: 5, kind: input, shape index: {}]   ;;  %s3521_s6 = inlined_call_operand.vmem [shape: f32[1,128], index: 6, kind: input, shape index: {}]   ;;  %s3522_s7 = inlined_call_operand.hbm [shape: f32[512,128], index: 7, kind: output, shape index: {0}]   ;;  %s3523_s8 = inlined_call_operand.hbm [shape: f32[512,128], index: 8, kind: output, shape index: {1}]  }
   0x1   :  { %3550 = sst [smem:[#allocation39_spill]] %s3515_s0 }
   0x2   :  { %3551 = sst [smem:[#allocation40_spill]] %s3517_s2 }
   0x3   :  { %3552 = sst [smem:[#allocation41_spill]] %s3518_s3 }
   0x4   :  { %14 = vsyncpa [#allocation3], 0 }
   0x5   :  { %16 = vsyncpa [#allocation3 + $0x1], 0 }
   0x6   :  { %17 = vsyncpa [#allocation6], 0 }
   0x7   :  { %19 = vsyncpa [#allocation6 + $0x1], 0 }
   0x8   :  { %20 = vsyncpa [#allocation9], 0 }
   0x9   :  { %21 = vsyncpa [#allocation4], 0 }
   0xa   :  { %23 = vsyncpa [#allocation4 + $0x1], 0 }
   0xb   :  { %24 = vsyncpa [#allocation12], 0 }
   0xc   :  { %26 = vsyncpa [#allocation12 + $0x1], 0  ;;  %s2511_s27 = smov 0   ;;  %s2513_s28 = smov 0  }
   0xd   :  { %s2515_s29 = smov 0   ;;  %s2517_s30 = smov 0  }
   0xe LB: > { %3553 = sst [smem:[#allocation19_spill]] %s2448_s29  ;;  %s2532_s9 = sadd.s32 4294967295, %s2452_s30   ;;  %s2452_s30 = sphi %s2517_s30, %s3615_s30   ;;  %s2448_s29 = sphi %s2515_s29, %s3612_s29   ;;  %s2444_s28 = sphi %s2513_s28, %s3614_s28   ;;  %s2440_s27 = sphi %s2511_s27, %s3613_s27  }
   0xf   : > { %s1750_s10 = sadd.s32 4294967294, %s2452_s30   ;;  %p52_p0 = scmp.ne.s32.totalorder %s2444_s28, %s2440_s27 }
  0x10   : > { %p3524_p1 = scmp.eq.s32.totalorder %s2532_s9, 0  ;;  %p213_p3 = scmp.eq.s32.totalorder %s1750_s10, 1 }
  0x11   : > { %p1751_p5 = scmp.ge.s32.totalorder %s2452_s30, 1  ;;  %p246_p7 = scmp.lt.s32.totalorder %s2452_s30, 3 }
  0x12   : > { %p2541_p4 = por %p3524_p1, %p52_p0  ;;  %p2546_p6 = por %p213_p3, %p52_p0 }
  0x13   : > { %p2551_p8 = pnand %p1751_p5, %p246_p7  ;;  %s2454_s14 = smov [#allocation7]  }
  0x14   : > { %s3554_s11 = scalar_select %p2541_p4, 1, 0 }
  0x15   : > { %s3555_s12 = scalar_select %p2546_p6, 1, 0 }
  0x16   : > { %s258_s15 = sshll.u32 %s2454_s14, 4  ;;  %p1975_p9 = pneg %p2551_p8  ;;  %s2555_s15 = int_to_ptr.vmem [resolvable:$true] %s258_s15 }
  0x17   : > { %s2455_s17 = smov [#allocation8]   ;;  %s3558_s2 = sld [smem:[#allocation40_spill]] }
  0x18   : > { %p2562_p11 = pnand %p1975_p9, %p3524_p1  ;;  %s271_s18 = sshll.u32 %s2455_s17, 4  ;;  %s2566_s18 = int_to_ptr.vmem [resolvable:$true] %s271_s18 }
  0x1a   : > { %p2228_p13 = pneg %p2562_p11 }
  0x1d   : > { %s2226_s21 = scalar_lea.hbm %s3558_s2, 4096 }
  0x1e   : > { %p2227_p12 = scmp.ne.s32.totalorder %s3558_s2, %s2226_s21  ;;  %p2233_p5 = scmp.lt.u32.totalorder %s2226_s21, %s3558_s2 }
  0x20   : > { %p2229_p0 = pnand %p2228_p13, %p2227_p12 }
  0x22   : > { %p2230_p3 = pneg %p2229_p0 }
  0x24   : > { %p2235_p7 = pnand %p2233_p5, %p2230_p3 }
  0x26   : > { %2238 = shalt.err (!%p2235_p7)
}
  0x27   : > { %s2239_s26 = scalar_lea.vmem %s2555_s15, 4096  ;;  %p2247_p2 = scmp.lt.s32.totalorder %s2555_s15, %s2555_s15 }
  0x28   : > { %p2240_p9 = scmp.ne.s32.totalorder %s2555_s15, %s2239_s26  ;;  %p2248_p12 = scmp.lt.s32.totalorder %s2239_s26, %s2239_s26 }
  0x2a   : > { %p2242_p10 = pnand %p2240_p9, %p2228_p13  ;;  %p2249_p0 = por %p2248_p12, %p2247_p2 }
  0x2c   : > { %p2243_p1 = pneg %p2242_p10 }
  0x2e   : > { %p2250_p6 = pnand %p2249_p0, %p2243_p1 }
  0x30   : > { %2253 = shalt.err (!%p2250_p6)
}
  0x31   : > { %s3525_s10 = smov 128   ;;  %s3527_s14 = smov 8  }
  0x32   : > { %1978 = dma.hbm_to_vmem [thread:$0]  (!%p2562_p11), %s3558_s2, 4096, %s2555_s15, [#allocation6], %s3525_s10, %s3525_s10, %s3527_s14  }
  0x33   : > { %s3559_s3 = sld [smem:[#allocation41_spill]] }
  0x39   : > { %s2254_s22 = scalar_lea.hbm %s3559_s3, 1024 }
  0x3a   : > { %p2255_p1 = scmp.ne.s32.totalorder %s3559_s3, %s2254_s22  ;;  %p2261_p10 = scmp.lt.u32.totalorder %s2254_s22, %s3559_s3 }
  0x3c   : > { %p2257_p2 = pnand %p2255_p1, %p2228_p13 }
  0x3e   : > { %p2258_p6 = pneg %p2257_p2 }
  0x40   : > { %p2263_p3 = pnand %p2261_p10, %p2258_p6 }
  0x42   : > { %2266 = shalt.err (!%p2263_p3)
}
  0x43   : > { %s2267_s15 = scalar_lea.vmem %s2566_s18, 1024  ;;  %p2275_p12 = scmp.lt.s32.totalorder %s2566_s18, %s2566_s18 }
  0x44   : > { %p2268_p5 = scmp.ne.s32.totalorder %s2566_s18, %s2267_s15  ;;  %p2276_p0 = scmp.lt.s32.totalorder %s2267_s15, %s2267_s15 }
  0x46   : > { %p2270_p7 = pnand %p2268_p5, %p2228_p13  ;;  %p2277_p1 = por %p2276_p0, %p2275_p12 }
  0x48   : > { %p2271_p9 = pneg %p2270_p7 }
  0x4a   : > { %p2278_p2 = pnand %p2277_p1, %p2271_p9 }
  0x4c   : > { %2281 = shalt.err (!%p2278_p2)
}
  0x4d   : > { %s2458_s17 = smov 64   ;;  %s2459_s19 = smov 4  }
  0x4e   : > { %1981 = dma.hbm_to_vmem [thread:$0]  (!%p2562_p11), %s3559_s3, 1024, %s2566_s18, [#allocation9], %s2458_s17, %s2458_s17, %s2459_s19  }
  0x4f   : > { %s2624_s22 = sadd.s32 1, %s2452_s30   ;;  %s39_s24 = sadd.s32 1, %s2448_s29 }
  0x50   : > { %s36_s23 = ssub.s32 %s2452_s30, %s2624_s22  ;;  %p46_p6 = scmp.ne.s32.totalorder %s2448_s29, %s2444_s28 }
  0x51   : > { %p37_p13 = scmp.eq.s32.totalorder %s36_s23, 0  ;;  %p47_p10 = scmp.eq.s32.totalorder %s2452_s30, 0 }
  0x52   : > { %p3561_p5 = scmp.eq.s32.totalorder %s2532_s9, 1  ;;  %p1998_p9 = scmp.lt.s32.totalorder %s2452_s30, 2 }
  0x53   : > { %s2633_s25 = scalar_select %p37_p13, %s2448_s29, %s39_s24  }
  0x54   : > { %p48_p3 = por %p47_p10, %p46_p6  ;;  %p2637_p7 = por %p3561_p5, %p46_p6 }
  0x55   : > { %3560 = sst [smem:[#allocation20_spill]] %s2633_s25  ;;  %s294_s16 = sand.u32 1, %s2448_s29  }
  0x56   : > { %s3562_s26 = scalar_select %p2637_p7, 1, 0 }
  0x57   : > { %s1755_s15 = sshll.u32 %s294_s16, 8  ;;  %s1851_s18 = sshll.u32 %s2452_s30, 12 }
  0x58   : > { %s3563_s0 = sld [smem:[#allocation39_spill]]  ;;  %s298_s21 = scalar_lea.vmem [#allocation2], %s1755_s15 }
  0x59   : > { %s305_s23 = sshll.u32 %s298_s21, 4  ;;  %p2651_p11 = pnand %p1998_p9, %p48_p3  ;;  %s2649_s23 = int_to_ptr.vmem [resolvable:$true] %s305_s23 }
  0x5a   : > { %s2658_s17 = scalar_lea.hbm %s3516_s1, %s1851_s18  ;;  %s319_s19 = scalar_lea.vmem [#allocation5], %s1755_s15 }
  0x5b   : > { %s2660_s2 = sshll.u32 %s319_s19, 4  ;;  %s2662_s3 = scalar_lea.sflag [#allocation3], %s294_s16  ;;  %s2694_s2 = int_to_ptr.vmem [resolvable:$true] %s2660_s2 }
  0x5c   : > { %p2284_p0 = pneg %p2651_p11 }
  0x5e   : > { %s2647_s20 = scalar_lea.hbm %s3563_s0, %s1851_s18  ;;  %s2287_s10 = scalar_lea.hbm %s3563_s0, 8192 }
  0x5f   : > { %s2282_s21 = scalar_lea.hbm %s2647_s20, 4096  ;;  %p2288_p13 = scmp.lt.u32.totalorder %s2647_s20, %s3563_s0 }
  0x60   : > { %p2283_p12 = scmp.ne.s32.totalorder %s2647_s20, %s2282_s21  ;;  %p2289_p6 = scmp.lt.u32.totalorder %s2287_s10, %s2282_s21 }
  0x61   : > { %p2291_p3 = scmp.lt.u32.totalorder %s2282_s21, %s2647_s20 }
  0x62   : > { %p2285_p1 = pnand %p2284_p0, %p2283_p12  ;;  %p2290_p10 = por %p2289_p6, %p2288_p13 }
  0x64   : > { %p2286_p2 = pneg %p2285_p1  ;;  %p2292_p5 = por %p2291_p3, %p2290_p10 }
  0x66   : > { %p2293_p9 = pnand %p2292_p5, %p2286_p2 }
  0x68   : > { %2296 = shalt.err (!%p2293_p9)
}
  0x69   : > { %s2297_s16 = scalar_lea.vmem %s2649_s23, 4096  ;;  %s2460_s29 = smov [#allocation2]  }
  0x6a   : > { %p2298_p12 = scmp.ne.s32.totalorder %s2649_s23, %s2297_s16  ;;  %s2302_s25 = sshll.u32 %s2460_s29, 4  ;;  %s2303_s25 = int_to_ptr.vmem [resolvable:$false] %s2302_s25 }
  0x6b   : > { %s2304_s15 = scalar_lea.vmem %s2303_s25, 8192  ;;  %p2305_p4 = scmp.lt.s32.totalorder %s2649_s23, %s2303_s25 }
  0x6c   : > { %p2300_p1 = pnand %p2298_p12, %p2284_p0  ;;  %p2306_p13 = scmp.lt.s32.totalorder %s2304_s15, %s2297_s16 }
  0x6e   : > { %p2301_p7 = pneg %p2300_p1  ;;  %p2307_p6 = por %p2306_p13, %p2305_p4 }
  0x70   : > { %p2308_p10 = pnand %p2307_p6, %p2301_p7 }
  0x72   : > { %2311 = shalt.err (!%p2308_p10)
}
  0x73   : > { %s3565_s19 = smov 8   ;;  %s3566_s21 = smov 128  }
  0x74   : > { %1985 = dma.hbm_to_vmem [thread:$0]  (!%p2651_p11), %s2647_s20, 4096, %s2649_s23, %s2662_s3, %s3566_s21, %s3566_s21, %s3565_s19  }
  0x75   : > { %s315_s10 = sand.u32 1, %s2452_s30   ;;  %s2312_s18 = scalar_lea.hbm %s2658_s17, 4096 }
  0x76   : > { %s2697_s14 = scalar_lea.sflag [#allocation6], %s315_s10  ;;  %p2313_p4 = scmp.ne.s32.totalorder %s2658_s17, %s2312_s18 }
  0x77   : > { %s2317_s25 = scalar_lea.hbm %s3516_s1, 8192  ;;  %p2318_p3 = scmp.lt.u32.totalorder %s2658_s17, %s3516_s1 }
  0x78   : > { %p2315_p7 = pnand %p2313_p4, %p2284_p0  ;;  %p2319_p5 = scmp.lt.u32.totalorder %s2317_s25, %s2312_s18 }
  0x79   : > { %p2321_p12 = scmp.lt.u32.totalorder %s2312_s18, %s2658_s17 }
  0x7a   : > { %p2316_p2 = pneg %p2315_p7  ;;  %p2320_p9 = por %p2319_p5, %p2318_p3 }
  0x7c   : > { %p2322_p1 = por %p2321_p12, %p2320_p9 }
  0x7e   : > { %p2323_p13 = pnand %p2322_p1, %p2316_p2 }
  0x80   : > { %2326 = shalt.err (!%p2323_p13)
}
  0x81   : > { %s2327_s3 = scalar_lea.vmem %s2694_s2, 4096  ;;  %s2461_s20 = smov [#allocation5]  }
  0x82   : > { %p2328_p6 = scmp.ne.s32.totalorder %s2694_s2, %s2327_s3  ;;  %s2332_s23 = sshll.u32 %s2461_s20, 4  ;;  %s2333_s23 = int_to_ptr.vmem [resolvable:$false] %s2332_s23 }
  0x83   : > { %s2334_s0 = scalar_lea.vmem %s2333_s23, 8192  ;;  %p2335_p7 = scmp.lt.s32.totalorder %s2694_s2, %s2333_s23 }
  0x84   : > { %p2330_p10 = pnand %p2328_p6, %p2284_p0  ;;  %p2336_p3 = scmp.lt.s32.totalorder %s2334_s0, %s2327_s3 }
  0x86   : > { %p2331_p4 = pneg %p2330_p10  ;;  %p2337_p5 = por %p2336_p3, %p2335_p7 }
  0x88   : > { %p2338_p9 = pnand %p2337_p5, %p2331_p4 }
  0x8a   : > { %2341 = shalt.err (!%p2338_p9)
}
  0x8b   : > { %1988 = dma.hbm_to_vmem [thread:$0]  (!%p2651_p11), %s2658_s17, 4096, %s2694_s2, %s2697_s14, %s3566_s21, %s3566_s21, %s3565_s19  }
  0x8c   : > { %338 = sbr.rel (%p2551_p8) target bundleno = 812 (0x32c), region = 48 }
  0x93   : > { %s2729_s10 = sand.u32 1, %s2444_s28   ;;  %p3567_p0 = scmp.ne.s32.totalorder %s3554_s11, 0 }
  0x94   : > { %s2732_s18 = sshll.u32 %s2729_s10, 8  ;;  %s341_s24 = scalar_lea.sflag [#allocation3], %s2729_s10 }
  0x95   : > { %s2736_s16 = scalar_lea.vmem [#allocation2], %s2732_s18 }
  0x96   : > { %2415 = dma.done.wait (%p3567_p0), %s341_s24, 4096  }
  0x97   : > { %2417 = vsyncadd (%p3567_p0), %s341_s24, 4294963200  ;;  %s349_s2 = sand.u32 1, %s2532_s9   ;;  %s2744_s17 = scalar_lea.vmem [#allocation5], %s2732_s18 }
  0x98   : > { %s350_s13 = scalar_lea.sflag [#allocation6], %s349_s2 }
  0x99   : > { %2419 = dma.done.wait (%p3567_p0), %s350_s13, 4096  }
  0x9a   : > { %2421 = vsyncadd (%p3567_p0), %s350_s13, 4294963200  ;;  %p3568_p8 = scmp.eq.s32.totalorder %s2532_s9, 0 }
  0x9c   : > { %2423 = dma.done.wait (%p3568_p8), [#allocation6], 4096   ;;  %p3569_p11 = pmov %p3568_p8 }
  0x9d   : > { %p3570_p2 = pmov %p3568_p8 }
  0x9e   : > { %2425 = vsyncadd (%p3569_p11), [#allocation6], 4294963200 }
  0x9f   : > { %2427 = dma.done.wait (%p3570_p2), [#allocation9], 1024   ;;  %p3571_p12 = pmov %p3570_p2 }
  0xa0   : > { %v2042_v0 = vld [vmem:[#allocation7 + $0x4] ss:$8 sps:$4 sm:$0xff]   ;;  %v2044_v1 = vld [vmem:[#allocation7] ss:$8 sps:$4 sm:$0xff]   ;;  %v2045_v2 = vld [vmem:[#allocation7 + $0x14] ss:$8 sps:$4 sm:$0xff]  }
  0xa1   : > { %2429 = vsyncadd (%p3571_p12), [#allocation9], 4294966272  ;;  %697 = vmatprep.subr.bf16.mxu0 %v2042_v0  ;;  %1927 = vmatprep.subr.bf16.mxu1 %v2042_v0  ;;  %v2047_v3 = vld [vmem:[#allocation7 + $0x10] ss:$8 sps:$4 sm:$0xff]   ;;  %v2048_v4 = vld [vmem:[#allocation7 + $0x24] ss:$8 sps:$4 sm:$0xff]  }
  0xa2   : > { %698 = vmatpush1.bf16.msra.mxu0 %v2044_v1  ;;  %1943 = vmatpush1.bf16.msra.mxu1 %v2044_v1  ;;  %v2050_v5 = vld [vmem:[#allocation7 + $0x20] ss:$8 sps:$4 sm:$0xff]   ;;  %v2051_v6 = vld [vmem:[#allocation7 + $0x34] ss:$8 sps:$4 sm:$0xff]   ;;  %v2053_v7 = vld [vmem:[#allocation7 + $0x30] ss:$8 sps:$4 sm:$0xff]  }
  0xa3   : > { %699 = vmatprep.subr.bf16.mxu0 %v2045_v2  ;;  %1928 = vmatprep.subr.bf16.mxu1 %v2045_v2  ;;  %v2054_v8 = vld [vmem:[#allocation7 + $0x44] ss:$8 sps:$4 sm:$0xff]   ;;  %v2056_v9 = vld [vmem:[#allocation7 + $0x40] ss:$8 sps:$4 sm:$0xff]   ;;  %v2057_v10 = vld [vmem:[#allocation7 + $0x54] ss:$8 sps:$4 sm:$0xff]  }
  0xa4   : > { %v2059_v11 = vld [vmem:[#allocation7 + $0x50] ss:$8 sps:$4 sm:$0xff]   ;;  %v2060_v12 = vld [vmem:[#allocation7 + $0x64] ss:$8 sps:$4 sm:$0xff]   ;;  %v2062_v16 = vld [vmem:[#allocation7 + $0x60] ss:$8 sps:$4 sm:$0xff]  }
  0xa5   : > { %v457_v13 = vld [vmem:[%s2744_s17] sm:$0xff]  ;;  %v458_v14 = vld [vmem:[%s2744_s17 + $0x8] sm:$0xff]  ;;  %v2063_v17 = vld [vmem:[#allocation7 + $0x74] ss:$8 sps:$4 sm:$0xff]   ;;  %s2934_s21 = scalar_lea.vmem [#allocation11], %s2732_s18  ;;  %s1853_s25 = sshll.u32 %s2532_s9, 12 }
  0xa6   : > { %700 = vmatpush1.bf16.msra.mxu0 %v2047_v3  ;;  %1944 = vmatpush1.bf16.msra.mxu1 %v2047_v3  ;;  %v489_v15 = vpack.c.bf16 %v458_v14, %v457_v13  ;;  %v2065_v18 = vld [vmem:[#allocation7 + $0x70] ss:$8 sps:$4 sm:$0xff]   ;;  %v2066_v19 = vld [vmem:[#allocation7 + $0x84] ss:$8 sps:$4 sm:$0xff]   ;;  %v2068_v23 = vld [vmem:[#allocation7 + $0x80] ss:$8 sps:$4 sm:$0xff]   ;;  %s3356_s20 = scalar_lea.hbm %s3523_s8, %s1853_s25 }
  0xa7   : > { %701 = vmatprep.subr.bf16.mxu0 %v2048_v4  ;;  %1929 = vmatprep.subr.bf16.mxu1 %v2048_v4  ;;  %v481_v20 = vld [vmem:[%s2744_s17 + $0xc0] sm:$0xff]  ;;  %v482_v21 = vld [vmem:[%s2744_s17 + $0xc8] sm:$0xff]  ;;  %v2069_v24 = vld [vmem:[#allocation7 + $0x94] ss:$8 sps:$4 sm:$0xff]   ;;  %s1603_s23 = sshll.u32 %s2934_s21, 4  ;;  %s1574_s0 = scalar_lea.sflag [#allocation12], %s2729_s10  ;;  %s3359_s23 = int_to_ptr.vmem [resolvable:$true] %s1603_s23 }
  0xa8   : > { %729 = vmatprep.mubr.bf16.mxu0 %v489_v15  ;;  %v501_v22 = vpack.c.bf16 %v482_v21, %v481_v20  ;;  %v2071_v25 = vld [vmem:[#allocation7 + $0x90] ss:$8 sps:$4 sm:$0xff]   ;;  %v2072_v26 = vld [vmem:[#allocation7 + $0xa4] ss:$8 sps:$4 sm:$0xff]   ;;  %v2074_v27 = vld [vmem:[#allocation7 + $0xa0] ss:$8 sps:$4 sm:$0xff]  }
  0xa9   : > { %v2075_v28 = vld [vmem:[#allocation7 + $0xb4] ss:$8 sps:$4 sm:$0xff]   ;;  %v2077_v29 = vld [vmem:[#allocation7 + $0xb0] ss:$8 sps:$4 sm:$0xff]   ;;  %v2078_v30 = vld [vmem:[#allocation7 + $0xc4] ss:$8 sps:$4 sm:$0xff]  }
  0xaa   : > { %702 = vmatpush1.bf16.msra.mxu0 %v2050_v5  ;;  %1945 = vmatpush1.bf16.msra.mxu1 %v2050_v5  ;;  %v2080_v31 = vld [vmem:[#allocation7 + $0xc0] ss:$8 sps:$4 sm:$0xff]   ;;  %v2081_v32 = vld [vmem:[#allocation7 + $0xd4] ss:$8 sps:$4 sm:$0xff]   ;;  %v2083_v33 = vld [vmem:[#allocation7 + $0xd0] ss:$8 sps:$4 sm:$0xff]  }
  0xab   : > { %703 = vmatprep.subr.bf16.mxu0 %v2051_v6  ;;  %1930 = vmatprep.subr.bf16.mxu1 %v2051_v6  ;;  %v2084_v34 = vld [vmem:[#allocation7 + $0xe4] ss:$8 sps:$4 sm:$0xff]   ;;  %v2086_v35 = vld [vmem:[#allocation7 + $0xe0] ss:$8 sps:$4 sm:$0xff]   ;;  %v2087_v36 = vld [vmem:[#allocation7 + $0xf4] ss:$8 sps:$4 sm:$0xff]  }
  0xac   : > { %849 = vmatprep.mubr.bf16.mxu1 %v501_v22  ;;  %v2089_v37 = vld [vmem:[#allocation7 + $0xf0] ss:$8 sps:$4 sm:$0xff]   ;;  %v2763_v38 = vld [vmem:[%s2736_s16] sm:$0xff]  ;;  %v2766_v39 = vld [vmem:[%s2736_s16 + $0x8] sm:$0xff]  ;;  %s2342_s24 = scalar_lea.vmem %s3359_s23, 4096  ;;  %p3608_p13 = scmp.ne.s32.totalorder %s3562_s26, 0 }
  0xad   : > { %v459_v40 = vld [vmem:[%s2744_s17 + $0x10] sm:$0xff]  ;;  %v2770_v41 = vld [vmem:[%s2736_s16 + $0xc0] sm:$0xff]  ;;  %v2773_v42 = vld [vmem:[%s2736_s16 + $0xc8] sm:$0xff]  ;;  %v441_v46 = vpack.c.bf16 %v2766_v39, %v2763_v38  ;;  %p2343_p1 = scmp.ne.s32.totalorder %s3359_s23, %s2342_s24 }
  0xae   : > { %704 = vmatpush1.bf16.msra.mxu0 %v2053_v7  ;;  %1946 = vmatpush1.bf16.msra.mxu1 %v2053_v7  ;;  %v460_v43 = vld [vmem:[%s2744_s17 + $0x18] sm:$0xff]  ;;  %v483_v44 = vld [vmem:[%s2744_s17 + $0xd0] sm:$0xff]  ;;  %v453_v47 = vpack.c.bf16 %v2773_v42, %v2770_v41  ;;  %v461_v52 = vld [vmem:[%s2744_s17 + $0x20] sm:$0xff] }
  0xaf   : > { %705 = vmatprep.subr.bf16.mxu0 %v2054_v8  ;;  %1931 = vmatprep.subr.bf16.mxu1 %v2054_v8  ;;  %v484_v45 = vld [vmem:[%s2744_s17 + $0xd8] sm:$0xff]  ;;  %v490_v48 = vpack.c.bf16 %v460_v43, %v459_v40  ;;  %v2783_v50 = vld [vmem:[%s2736_s16 + $0x10] sm:$0xff]  ;;  %v462_v55 = vld [vmem:[%s2744_s17 + $0x28] sm:$0xff]  ;;  %p2344_p6 = pnand %p2343_p1, %p3608_p13 }
  0xb0   : > { %v502_v49 = vpack.c.bf16 %v484_v45, %v483_v44  ;;  %v2786_v51 = vld [vmem:[%s2736_s16 + $0x18] sm:$0xff]  ;;  %v2790_v53 = vld [vmem:[%s2736_s16 + $0xd0] sm:$0xff]  ;;  %v485_v56 = vld [vmem:[%s2744_s17 + $0xe0] sm:$0xff]  ;;  %v491_v60 = vpack.c.bf16 %v462_v55, %v461_v52 }
  0xb1   : > { %v2793_v54 = vld [vmem:[%s2736_s16 + $0xd8] sm:$0xff]  ;;  %v486_v57 = vld [vmem:[%s2744_s17 + $0xe8] sm:$0xff]  ;;  %v442_v58 = vpack.c.bf16 %v2786_v51, %v2783_v50  ;;  %v2803_v62 = vld [vmem:[%s2736_s16 + $0x20] sm:$0xff]  ;;  %p2345_p10 = pneg %p2344_p6 }
  0xb2   : > { %706 = vmatpush1.bf16.msra.mxu0 %v2056_v9  ;;  %1947 = vmatpush1.bf16.msra.mxu1 %v2056_v9  ;;  %v454_v59 = vpack.c.bf16 %v2793_v54, %v2790_v53  ;;  %v503_v61 = vpack.c.bf16 %v486_v57, %v485_v56  ;;  %v2806_v63 = vld [vmem:[%s2736_s16 + $0x28] sm:$0xff]  ;;  %v463_v0 = vld [vmem:[%s2744_s17 + $0x30] sm:$0xff]  ;;  %v2810_v1 = vld [vmem:[%s2736_s16 + $0xe0] sm:$0xff] }
  0xb3   : > { %707 = vmatprep.subr.bf16.mxu0 %v2057_v10  ;;  %1932 = vmatprep.subr.bf16.mxu1 %v2057_v10  ;;  %v2813_v2 = vld [vmem:[%s2736_s16 + $0xe8] sm:$0xff]  ;;  %v464_v3 = vld [vmem:[%s2744_s17 + $0x38] sm:$0xff]  ;;  %v487_v4 = vld [vmem:[%s2744_s17 + $0xf0] sm:$0xff]  ;;  %v443_v6 = vpack.c.bf16 %v2806_v63, %v2803_v62 }
  0xb4   : > { %v488_v5 = vld [vmem:[%s2744_s17 + $0xf8] sm:$0xff]  ;;  %v455_v7 = vpack.c.bf16 %v2813_v2, %v2810_v1  ;;  %v492_v8 = vpack.c.bf16 %v464_v3, %v463_v0  ;;  %v2823_v10 = vld [vmem:[%s2736_s16 + $0x30] sm:$0xff]  ;;  %v465_v14 = vld [vmem:[%s2744_s17 + $0x40] sm:$0xff] }
  0xb5   : > { %v504_v9 = vpack.c.bf16 %v488_v5, %v487_v4  ;;  %v2832_v13 = vld [vmem:[%s2736_s16 + $0xf8] sm:$0xff]  ;;  %v466_v15 = vld [vmem:[%s2744_s17 + $0x48] sm:$0xff]  ;;  %v467_v21 = vld [vmem:[%s2744_s17 + $0x50] sm:$0xff] }
  0xb6   : > { %708 = vmatpush1.bf16.msra.mxu0 %v2059_v11  ;;  %1948 = vmatpush1.bf16.msra.mxu1 %v2059_v11  ;;  %v2826_v11 = vld [vmem:[%s2736_s16 + $0x38] sm:$0xff]  ;;  %3572 = vst [vmem:[#allocation21_spill] sm:$0xff] %v2832_v13  ;;  %v2844_v20 = vld [vmem:[%s2736_s16 + $0x48] sm:$0xff]  ;;  %v473_v43 = vld [vmem:[%s2744_s17 + $0x80] sm:$0xff] }
  0xb7   : > { %709 = vmatprep.subr.bf16.mxu0 %v2060_v12  ;;  %1933 = vmatprep.subr.bf16.mxu1 %v2060_v12  ;;  %v2829_v12 = vld [vmem:[%s2736_s16 + $0xf0] sm:$0xff]  ;;  %3573 = vst [vmem:[#allocation22_spill] sm:$0xff] %v2844_v20  ;;  %v468_v22 = vld [vmem:[%s2744_s17 + $0x58] sm:$0xff]  ;;  %v474_v44 = vld [vmem:[%s2744_s17 + $0x88] sm:$0xff] }
  0xb8   : > { %v2874_v40 = vld [vmem:[%s2736_s16 + $0x78] sm:$0xff]  ;;  %v2891_v57 = vld [vmem:[%s2736_s16 + $0x90] sm:$0xff]  ;;  %v2901_v3 = vld [vmem:[%s2736_s16 + $0xa0] sm:$0xff] }
  0xb9   : > { %3579 = vst [vmem:[#allocation28_spill] sm:$0xff] %v2874_v40  ;;  %v476_v52 = vld [vmem:[%s2744_s17 + $0x98] sm:$0xff]  ;;  %3582 = vst [vmem:[#allocation31_spill] sm:$0xff] %v2891_v57  ;;  %v2904_v4 = vld [vmem:[%s2736_s16 + $0xa8] sm:$0xff] }
  0xba   : > { %710 = vmatpush1.bf16.msra.mxu0 %v2062_v16  ;;  %1949 = vmatpush1.bf16.msra.mxu1 %v2062_v16  ;;  %v444_v16 = vpack.c.bf16 %v2826_v11, %v2823_v10  ;;  %3584 = vst [vmem:[#allocation33_spill] sm:$0xff] %v2901_v3  ;;  %3585 = vst [vmem:[#allocation34_spill] sm:$0xff] %v2904_v4  ;;  %v479_v5 = vld [vmem:[%s2744_s17 + $0xb0] sm:$0xff] }
  0xbb   : > { %711 = vmatprep.subr.bf16.mxu0 %v2063_v17  ;;  %1934 = vmatprep.subr.bf16.mxu1 %v2063_v17  ;;  %v456_v17 = vpack.c.bf16 %v2832_v13, %v2829_v12 }
  0xbe   : > { %712 = vmatpush1.bf16.msra.mxu0 %v2065_v18  ;;  %1950 = vmatpush1.bf16.msra.mxu1 %v2065_v18  ;;  %v493_v18 = vpack.c.bf16 %v466_v15, %v465_v14  ;;  %v2914_v14 = vld [vmem:[%s2736_s16 + $0xb8] sm:$0xff] }
  0xbf   : > { %713 = vmatprep.subr.bf16.mxu0 %v2066_v19  ;;  %1935 = vmatprep.subr.bf16.mxu1 %v2066_v19  ;;  %v2841_v19 = vld [vmem:[%s2736_s16 + $0x40] sm:$0xff]  ;;  %3587 = vst [vmem:[#allocation36_spill] sm:$0xff] %v2914_v14 }
  0xc2   : > { %714 = vmatpush1.bf16.msra.mxu0 %v2068_v23  ;;  %1951 = vmatpush1.bf16.msra.mxu1 %v2068_v23  ;;  %v445_v23 = vpack.c.bf16 %v2844_v20, %v2841_v19 }
  0xc3   : > { %715 = vmatprep.subr.bf16.mxu0 %v2069_v24  ;;  %1936 = vmatprep.subr.bf16.mxu1 %v2069_v24  ;;  %v494_v24 = vpack.c.bf16 %v468_v22, %v467_v21  ;;  %v2093_v21 = vld [vmem:[#allocation8 + $0x18] sm:$0xff]   ;;  %v2094_v22 = vld [vmem:[#allocation8 + $0x20] sm:$0xff]  }
  0xc6   : > { %716 = vmatpush1.bf16.msra.mxu0 %v2071_v25  ;;  %1952 = vmatpush1.bf16.msra.mxu1 %v2071_v25  ;;  %v2851_v25 = vld [vmem:[%s2736_s16 + $0x50] sm:$0xff] }
  0xc7   : > { %717 = vmatprep.subr.bf16.mxu0 %v2072_v26  ;;  %1937 = vmatprep.subr.bf16.mxu1 %v2072_v26  ;;  %3574 = vst [vmem:[#allocation23_spill] sm:$0xff] %v2851_v25  ;;  %v2854_v26 = vld [vmem:[%s2736_s16 + $0x58] sm:$0xff] }
  0xc8   : > { %3575 = vst [vmem:[#allocation24_spill] sm:$0xff] %v2854_v26 }
  0xca   : > { %718 = vmatpush1.bf16.msra.mxu0 %v2074_v27  ;;  %1953 = vmatpush1.bf16.msra.mxu1 %v2074_v27  ;;  %v469_v27 = vld [vmem:[%s2744_s17 + $0x60] sm:$0xff] }
  0xcb   : > { %719 = vmatprep.subr.bf16.mxu0 %v2075_v28  ;;  %1938 = vmatprep.subr.bf16.mxu1 %v2075_v28  ;;  %v470_v28 = vld [vmem:[%s2744_s17 + $0x68] sm:$0xff] }
  0xce   : > { %720 = vmatpush1.bf16.msra.mxu0 %v2077_v29  ;;  %1954 = vmatpush1.bf16.msra.mxu1 %v2077_v29  ;;  %v446_v29 = vpack.c.bf16 %v2854_v26, %v2851_v25 }
  0xcf   : > { %721 = vmatprep.subr.bf16.mxu0 %v2078_v30  ;;  %1939 = vmatprep.subr.bf16.mxu1 %v2078_v30  ;;  %v495_v30 = vpack.c.bf16 %v470_v28, %v469_v27  ;;  %v2097_v27 = vld [vmem:[#allocation8 + $0x38] sm:$0xff]   ;;  %v2921_v28 = vld [vmem:[%s3519_s4] ss:$0 sm:$0xff] }
  0xd2   : > { %722 = vmatpush1.bf16.msra.mxu0 %v2080_v31  ;;  %1955 = vmatpush1.bf16.msra.mxu1 %v2080_v31  ;;  %v2861_v31 = vld [vmem:[%s2736_s16 + $0x60] sm:$0xff] }
  0xd3   : > { %723 = vmatprep.subr.bf16.mxu0 %v2081_v32  ;;  %1940 = vmatprep.subr.bf16.mxu1 %v2081_v32  ;;  %3576 = vst [vmem:[#allocation25_spill] sm:$0xff] %v2861_v31  ;;  %v2864_v32 = vld [vmem:[%s2736_s16 + $0x68] sm:$0xff] }
  0xd4   : > { %3577 = vst [vmem:[#allocation26_spill] sm:$0xff] %v2864_v32 }
  0xd6   : > { %724 = vmatpush1.bf16.msra.mxu0 %v2083_v33  ;;  %1956 = vmatpush1.bf16.msra.mxu1 %v2083_v33  ;;  %v471_v33 = vld [vmem:[%s2744_s17 + $0x70] sm:$0xff] }
  0xd7   : > { %725 = vmatprep.subr.bf16.mxu0 %v2084_v34  ;;  %1941 = vmatprep.subr.bf16.mxu1 %v2084_v34  ;;  %v472_v34 = vld [vmem:[%s2744_s17 + $0x78] sm:$0xff] }
  0xda   : > { %726 = vmatpush1.bf16.msra.mxu0 %v2086_v35  ;;  %1957 = vmatpush1.bf16.msra.mxu1 %v2086_v35  ;;  %v447_v35 = vpack.c.bf16 %v2864_v32, %v2861_v31 }
  0xdb   : > { %727 = vmatprep.subr.bf16.mxu0 %v2087_v36  ;;  %1942 = vmatprep.subr.bf16.mxu1 %v2087_v36  ;;  %v496_v36 = vpack.c.bf16 %v472_v34, %v471_v33 }
  0xde   : > { %728 = vmatpush1.bf16.msra.mxu0 %v2089_v37  ;;  %1958 = vmatpush1.bf16.msra.mxu1 %v2089_v37  ;;  %v2871_v37 = vld [vmem:[%s2736_s16 + $0x70] sm:$0xff] }
  0xdf   : > { %3578 = vst [vmem:[#allocation27_spill] sm:$0xff] %v2871_v37  ;;  %v448_v45 = vpack.c.bf16 %v2874_v40, %v2871_v37 }
  0xe1   : > { %730 = vmatmul.mubr.bf16.vlgmr.msra.gmra.mrb[0].mxu0 %v441_v46  ;;  %850 = vmatmul.mubr.bf16.vlgmr.msra.gmra.mrb[0].mxu1 %v453_v47  ;;  %v497_v46 = vpack.c.bf16 %v474_v44, %v473_v43  ;;  %v2881_v47 = vld [vmem:[%s2736_s16 + $0x80] sm:$0xff] }
  0xe2   : > { %739 = vmatprep.mubr.bf16.mxu0 %v490_v48  ;;  %859 = vmatprep.mubr.bf16.mxu1 %v502_v49  ;;  %3580 = vst [vmem:[#allocation29_spill] sm:$0xff] %v2881_v47  ;;  %v2884_v48 = vld [vmem:[%s2736_s16 + $0x88] sm:$0xff]  ;;  %v475_v49 = vld [vmem:[%s2744_s17 + $0x90] sm:$0xff] }
  0xe3   : > { %3581 = vst [vmem:[#allocation30_spill] sm:$0xff] %v2884_v48  ;;  %v449_v55 = vpack.c.bf16 %v2884_v48, %v2881_v47  ;;  %v498_v56 = vpack.c.bf16 %v476_v52, %v475_v49 }
  0xe9   : > { %740 = vmatmul.mubr.bf16.gmra.mrb[4].mxu0 %v442_v58  ;;  %860 = vmatmul.mubr.bf16.gmra.mrb[4].mxu1 %v454_v59  ;;  %v2894_v58 = vld [vmem:[%s2736_s16 + $0x98] sm:$0xff]  ;;  %v477_v59 = vld [vmem:[%s2744_s17 + $0xa0] sm:$0xff] }
  0xea   : > { %749 = vmatprep.mubr.bf16.mxu0 %v491_v60  ;;  %869 = vmatprep.mubr.bf16.mxu1 %v503_v61  ;;  %3583 = vst [vmem:[#allocation32_spill] sm:$0xff] %v2894_v58  ;;  %v478_v60 = vld [vmem:[%s2744_s17 + $0xa8] sm:$0xff]  ;;  %v450_v61 = vpack.c.bf16 %v2894_v58, %v2891_v57 }
  0xeb   : > { %v499_v0 = vpack.c.bf16 %v478_v60, %v477_v59 }
  0xf1   : > { %750 = vmatmul.mubr.bf16.gmra.mrb[8].mxu0 %v443_v6  ;;  %870 = vmatmul.mubr.bf16.gmra.mrb[8].mxu1 %v455_v7  ;;  %v480_v6 = vld [vmem:[%s2744_s17 + $0xb8] sm:$0xff]  ;;  %v451_v7 = vpack.c.bf16 %v2904_v4, %v2901_v3 }
  0xf2   : > { %759 = vmatprep.mubr.bf16.mxu0 %v492_v8  ;;  %879 = vmatprep.mubr.bf16.mxu1 %v504_v9  ;;  %v500_v8 = vpack.c.bf16 %v480_v6, %v479_v5  ;;  %v2911_v9 = vld [vmem:[%s2736_s16 + $0xb0] sm:$0xff]  ;;  %s2462_s16 = smov [#allocation11]  }
  0xf3   : > { %3586 = vst [vmem:[#allocation35_spill] sm:$0xff] %v2911_v9  ;;  %v452_v15 = vpack.c.bf16 %v2914_v14, %v2911_v9  ;;  %s2346_s2 = sshll.u32 %s2462_s16, 4  ;;  %s2347_s2 = int_to_ptr.vmem [resolvable:$false] %s2346_s2 }
  0xf4   : > { %s2348_s13 = scalar_lea.vmem %s2347_s2, 8192  ;;  %p2349_p4 = scmp.lt.s32.totalorder %s3359_s23, %s2347_s2 }
  0xf5   : > { %p2350_p7 = scmp.lt.s32.totalorder %s2348_s13, %s2342_s24 }
  0xf7   : > { %p2351_p3 = por %p2350_p7, %p2349_p4 }
  0xf9   : > { %760 = vmatmul.mubr.bf16.gmra.mrb[12].mxu0 %v444_v16  ;;  %880 = vmatmul.mubr.bf16.gmra.mrb[12].mxu1 %v456_v17  ;;  %v2090_v16 = vld [vmem:[#allocation8] sm:$0xff]   ;;  %v2091_v17 = vld [vmem:[#allocation8 + $0x8] sm:$0xff]   ;;  %p2352_p5 = pnand %p2351_p3, %p2345_p10 }
  0xfa   : > { %769 = vmatprep.mubr.bf16.mxu0 %v493_v18  ;;  %1879 = vmatprep.subr.bf16.mxu1 %v2090_v16  ;;  %v2092_v18 = vld [vmem:[#allocation8 + $0x10] sm:$0xff]  }
  0xfb   : > { %1880 = vmatpush3.bf16.msra.mxu1 %v2090_v16 }
  0xfc   : > { %1881 = vmatprep.subr.bf16.mxu1 %v2091_v17 }
  0xff   : > { %1882 = vmatpush3.bf16.msra.mxu1 %v2091_v17 }
 0x100   : > { %1883 = vmatprep.subr.bf16.mxu1 %v2092_v18 }
 0x101   : > { %770 = vmatmul.mubr.bf16.gmra.mrb[16].mxu0 %v445_v23  ;;  %v2095_v23 = vld [vmem:[#allocation8 + $0x28] sm:$0xff]  }
 0x102   : > { %779 = vmatprep.mubr.bf16.mxu0 %v494_v24  ;;  %v2096_v24 = vld [vmem:[#allocation8 + $0x30] sm:$0xff]  }
 0x103   : > { %1884 = vmatpush3.bf16.msra.mxu1 %v2092_v18 }
 0x104   : > { %1885 = vmatprep.subr.bf16.mxu1 %v2093_v21 }
 0x107   : > { %1886 = vmatpush3.bf16.msra.mxu1 %v2093_v21 }
 0x108   : > { %1887 = vmatprep.subr.bf16.mxu1 %v2094_v22 }
 0x109   : > { %780 = vmatmul.mubr.bf16.gmra.mrb[20].mxu0 %v446_v29 }
 0x10a   : > { %789 = vmatprep.mubr.bf16.mxu0 %v495_v30 }
 0x10b   : > { %1888 = vmatpush3.bf16.msra.mxu1 %v2094_v22 }
 0x10c   : > { %1889 = vmatprep.subr.bf16.mxu1 %v2095_v23 }
 0x10f   : > { %1890 = vmatpush3.bf16.msra.mxu1 %v2095_v23 }
 0x110   : > { %1891 = vmatprep.subr.bf16.mxu1 %v2096_v24 }
 0x111   : > { %790 = vmatmul.mubr.bf16.gmra.mrb[24].mxu0 %v447_v35 }
 0x112   : > { %799 = vmatprep.mubr.bf16.mxu0 %v496_v36 }
 0x113   : > { %1892 = vmatpush3.bf16.msra.mxu1 %v2096_v24 }
 0x114   : > { %1893 = vmatprep.subr.bf16.mxu1 %v2097_v27 }
 0x117   : > { %1894 = vmatpush3.bf16.msra.mxu1 %v2097_v27 }
 0x119   : > { %800 = vmatmul.mubr.bf16.gmra.mrb[28].mxu0 %v448_v45 }
 0x11a   : > { %809 = vmatprep.mubr.bf16.mxu0 %v497_v46 }
 0x121   : > { %810 = vmatmul.mubr.bf16.gmra.mrb[32].mxu0 %v449_v55 }
 0x122   : > { %819 = vmatprep.mubr.bf16.mxu0 %v498_v56 }
 0x129   : > { %820 = vmatmul.mubr.bf16.gmra.mrb[36].mxu0 %v450_v61 }
 0x12a   : > { %829 = vmatprep.mubr.bf16.mxu0 %v499_v0 }
 0x131   : > { %830 = vmatmul.mubr.bf16.gmra.mrb[40].mxu0 %v451_v7 }
 0x132   : > { %839 = vmatprep.mubr.bf16.mxu0 %v500_v8 }
 0x139   : > { %840 = vmatmul.mubr.bf16.gmra.mrb[44].mxu0 %v452_v15 }
 0x1b4   : > { %v731_v29 = vpop.f32.mrb[0].mxu0  ;;  %v851_v30 = vpop.f32.mrb[0].mxu1 }
 0x1b5   : > { %v2924_v33 = vadd.f32 %v2921_v28, %v731_v29  ;;  %v2926_v34 = vpop.f32.mrb[1].mxu0  ;;  %v2929_v35 = vadd.f32 %v2921_v28, %v851_v30  ;;  %v2931_v36 = vpop.f32.mrb[1].mxu1 }
 0x1b6   : > { %1536 = vst [vmem:[%s2934_s21] sm:$0xff] %v2926_v34  ;;  %v735_v43 = vpop.f32.mrb[2].mxu0  ;;  %1560 = vst [vmem:[%s2934_s21 + $0xc0] sm:$0xff] %v2931_v36  ;;  %v855_v44 = vpop.f32.mrb[2].mxu1 }
 0x1b7   : > { %v1801_v45 = vmul.f32 -1.442695, %v2924_v33  ;;  %v2942_v46 = vadd.f32 %v2921_v28, %v735_v43  ;;  %v2944_v49 = vpop.f32.mrb[3].mxu0  ;;  %v1825_v52 = vmul.f32 -1.442695, %v2929_v35  ;;  %v2948_v55 = vadd.f32 %v2921_v28, %v855_v44  ;;  %v2950_v56 = vpop.f32.mrb[3].mxu1 }
 0x1b8   : > { %1537 = vst [vmem:[%s2934_s21 + $0x8] sm:$0xff] %v2944_v49  ;;  %1561 = vst [vmem:[%s2934_s21 + $0xc8] sm:$0xff] %v2950_v56 }
 0x1b9   : > { %2098 = vpow2.f32 %v1801_v45  ;;  %v1802_v59 = vmul.f32 -1.442695, %v2942_v46  ;;  %v1826_v60 = vmul.f32 -1.442695, %v2948_v55 }
 0x1ba   : > { %2100 = vpow2.f32 %v1825_v52 }
 0x1bb   : > { %2102 = vpow2.f32 %v1802_v59 }
 0x1bc   : > { %v741_v61 = vpop.f32.mrb[4].mxu0  ;;  %2104 = vpow2.f32 %v1826_v60  ;;  %v861_v0 = vpop.f32.mrb[4].mxu1 }
 0x1bd   : > { %v2959_v5 = vadd.f32 %v2921_v28, %v741_v61  ;;  %v2961_v6 = vpop.f32.mrb[5].mxu0  ;;  %v2964_v7 = vadd.f32 %v2921_v28, %v861_v0  ;;  %v2966_v8 = vpop.f32.mrb[5].mxu1 }
 0x1be   : > { %1538 = vst [vmem:[%s2934_s21 + $0x10] sm:$0xff] %v2961_v6  ;;  %v745_v15 = vpop.f32.mrb[6].mxu0  ;;  %1562 = vst [vmem:[%s2934_s21 + $0xd0] sm:$0xff] %v2966_v8  ;;  %v865_v16 = vpop.f32.mrb[6].mxu1 }
 0x1bf   : > { %v1803_v17 = vmul.f32 -1.442695, %v2959_v5  ;;  %v2974_v18 = vadd.f32 %v2921_v28, %v745_v15  ;;  %v2976_v21 = vpop.f32.mrb[7].mxu0  ;;  %v1827_v22 = vmul.f32 -1.442695, %v2964_v7  ;;  %v2980_v23 = vadd.f32 %v2921_v28, %v865_v16  ;;  %v2982_v24 = vpop.f32.mrb[7].mxu1 }
 0x1c0   : > { %1539 = vst [vmem:[%s2934_s21 + $0x18] sm:$0xff] %v2976_v21  ;;  %1563 = vst [vmem:[%s2934_s21 + $0xd8] sm:$0xff] %v2982_v24 }
 0x1c1   : > { %2106 = vpow2.f32 %v1803_v17  ;;  %v1804_v27 = vmul.f32 -1.442695, %v2974_v18  ;;  %v1828_v29 = vmul.f32 -1.442695, %v2980_v23 }
 0x1c2   : > { %2108 = vpow2.f32 %v1827_v22 }
 0x1c3   : > { %v2099_v30 = vpop.eup %2098  ;;  %2110 = vpow2.f32 %v1804_v27 }
 0x1c4   : > { %v2101_v43 = vpop.eup %2100  ;;  %v1025_v44 = vadd.f32 1.0, %v2099_v30  ;;  %v751_v45 = vpop.f32.mrb[8].mxu0  ;;  %2112 = vpow2.f32 %v1828_v29 }
 0x1c5   : > { %v871_v52 = vpop.f32.mrb[8].mxu1  ;;  %v2103_v59 = vpop.eup %2102  ;;  %v2991_v60 = vadd.f32 %v2921_v28, %v751_v45  ;;  %v1049_v0 = vadd.f32 1.0, %v2101_v43 }
 0x1c6   : > { %v2993_v61 = vpop.f32.mrb[9].mxu0  ;;  %v2996_v15 = vadd.f32 %v2921_v28, %v871_v52  ;;  %v2998_v16 = vpop.f32.mrb[9].mxu1  ;;  %2114 = vrcp.f32 %v1025_v44  ;;  %v1026_v22 = vadd.f32 1.0, %v2103_v59 }
 0x1c7   : > { %v2105_v17 = vpop.eup %2104  ;;  %1540 = vst [vmem:[%s2934_s21 + $0x20] sm:$0xff] %v2993_v61  ;;  %v755_v27 = vpop.f32.mrb[10].mxu0  ;;  %1564 = vst [vmem:[%s2934_s21 + $0xe0] sm:$0xff] %v2998_v16  ;;  %v1805_v30 = vmul.f32 -1.442695, %v2991_v60  ;;  %2116 = vrcp.f32 %v1049_v0 }
 0x1c8   : > { %v875_v29 = vpop.f32.mrb[10].mxu1  ;;  %v3006_v43 = vadd.f32 %v2921_v28, %v755_v27  ;;  %v3008_v45 = vpop.f32.mrb[11].mxu0  ;;  %v1050_v52 = vadd.f32 1.0, %v2105_v17  ;;  %2118 = vrcp.f32 %v1026_v22  ;;  %v1829_v44 = vmul.f32 -1.442695, %v2996_v15 }
 0x1c9   : > { %v3010_v14 = vpop.f32.mrb[11].mxu1  ;;  %1541 = vst [vmem:[%s2934_s21 + $0x28] sm:$0xff] %v3008_v45  ;;  %v3016_v59 = vadd.f32 %v2921_v28, %v875_v29  ;;  %2120 = vpow2.f32 %v1805_v30 }
 0x1ca   : > { %1565 = vst [vmem:[%s2934_s21 + $0xe8] sm:$0xff] %v3010_v14  ;;  %v1806_v27 = vmul.f32 -1.442695, %v3006_v43  ;;  %2122 = vrcp.f32 %v1050_v52 }
 0x1cb   : > { %v1830_v9 = vmul.f32 -1.442695, %v3016_v59  ;;  %v2107_v0 = vpop.eup %2106 }
 0x1cc   : > { %2124 = vpow2.f32 %v1806_v27  ;;  %v2109_v17 = vpop.eup %2108  ;;  %v1027_v22 = vadd.f32 1.0, %v2107_v0  ;;  %v761_v4 = vpop.f32.mrb[12].mxu0 }
 0x1cd   : > { %2126 = vpow2.f32 %v1829_v44  ;;  %v881_v3 = vpop.f32.mrb[12].mxu1  ;;  %v2111_v58 = vpop.eup %2110  ;;  %v3023_v29 = vadd.f32 %v2921_v28, %v761_v4  ;;  %v1051_v30 = vadd.f32 1.0, %v2109_v17 }
 0x1ce   : > { %v3025_v57 = vpop.f32.mrb[13].mxu0  ;;  %2128 = vpow2.f32 %v1830_v9  ;;  %v3028_v52 = vadd.f32 %v2921_v28, %v881_v3  ;;  %v3030_v48 = vpop.f32.mrb[13].mxu1  ;;  %v1028_v0 = vadd.f32 1.0, %v2111_v58 }
 0x1cf   : > { %v2113_v27 = vpop.eup %2112  ;;  %2130 = vrcp.f32 %v1027_v22  ;;  %1542 = vst [vmem:[%s2934_s21 + $0x30] sm:$0xff] %v3025_v57  ;;  %v765_v44 = vpop.f32.mrb[14].mxu0  ;;  %1566 = vst [vmem:[%s2934_s21 + $0xf0] sm:$0xff] %v3030_v48  ;;  %v1807_v47 = vmul.f32 -1.442695, %v3023_v29 }
 0x1d0   : > { %v885_v4 = vpop.f32.mrb[14].mxu1  ;;  %v3038_v9 = vadd.f32 %v2921_v28, %v765_v44  ;;  %v3040_v3 = vpop.f32.mrb[15].mxu0  ;;  %2132 = vrcp.f32 %v1051_v30  ;;  %v1052_v17 = vadd.f32 1.0, %v2113_v27  ;;  %v1831_v58 = vmul.f32 -1.442695, %v3028_v52 }
 0x1d1   : > { %v3042_v40 = vpop.f32.mrb[15].mxu1  ;;  %v2115_v22 = vpop.eup %2114  ;;  %2134 = vrcp.f32 %v1028_v0  ;;  %1543 = vst [vmem:[%s2934_s21 + $0x38] sm:$0xff] %v3040_v3  ;;  %v3054_v30 = vld [vmem:[%s3520_s5] ss:$0 sm:$0xff]  ;;  %v3058_v0 = vadd.f32 %v2921_v28, %v885_v4 }
 0x1d2   : > { %3588 = vst [vmem:[#allocation37_spill] sm:$0xff] %v3042_v40  ;;  %1567 = vst [vmem:[%s2934_s21 + $0xf8] sm:$0xff] %v3042_v40  ;;  %v2117_v37 = vpop.eup %2116  ;;  %v1121_v32 = vmul.f32 %v2115_v22, %v2924_v33  ;;  %2136 = vpow2.f32 %v1807_v47  ;;  %v1808_v44 = vmul.f32 -1.442695, %v3038_v9 }
 0x1d3   : > { %v2119_v31 = vpop.eup %2118  ;;  %v1145_v27 = vmul.f32 %v2117_v37, %v2929_v35  ;;  %2138 = vrcp.f32 %v1052_v17  ;;  %3589 = vst [vmem:[#allocation38_spill] sm:$0xff] %v3058_v0 }
 0x1d4   : > { %v2121_v13 = vpop.eup %2120  ;;  %v1153_v40 = vmul.f32 %v1121_v32, %v2763_v38  ;;  %v1122_v33 = vmul.f32 %v2119_v31, %v2942_v46  ;;  %2140 = vpow2.f32 %v1808_v44  ;;  %v771_v26 = vpop.f32.mrb[16].mxu0 }
 0x1d5   : > { %v2123_v47 = vpop.eup %2122  ;;  %v1029_v22 = vadd.f32 1.0, %v2121_v13  ;;  %v1177_v25 = vmul.f32 %v1145_v27, %v2770_v41  ;;  %2142 = vpow2.f32 %v1831_v58  ;;  %v3066_v4 = vadd.f32 %v2921_v28, %v771_v26  ;;  %v3068_v17 = vpop.f32.mrb[17].mxu0 }
 0x1d6   : > { %v2125_v20 = vpop.eup %2124  ;;  %v1192_v37 = vmul.f32 %v3054_v30, %v1153_v40  ;;  %v1154_v35 = vmul.f32 %v1122_v33, %v2766_v39  ;;  %v1146_v38 = vmul.f32 %v2123_v47, %v2948_v55  ;;  %1544 = vst [vmem:[%s2934_s21 + $0x40] sm:$0xff] %v3068_v17  ;;  %v775_v41 = vpop.f32.mrb[18].mxu0  ;;  %v3075_v40 = vmul.f32 -1.442695, %v3058_v0 }
 0x1d7   : > { %v2127_v31 = vpop.eup %2126  ;;  %2144 = vrcp.f32 %v1029_v22  ;;  %v1030_v13 = vadd.f32 1.0, %v2125_v20  ;;  %v1216_v32 = vmul.f32 %v3054_v30, %v1177_v25  ;;  %v1809_v58 = vmul.f32 -1.442695, %v3066_v4  ;;  %v3083_v44 = vpop.f32.mrb[19].mxu0 }
 0x1d8   : > { %v2129_v39 = vpop.eup %2128  ;;  %v1224_v26 = vadd.f32 %v1192_v37, %v2926_v34  ;;  %v1193_v46 = vmul.f32 %v3054_v30, %v1154_v35  ;;  %v3081_v55 = vadd.f32 %v2921_v28, %v775_v41  ;;  %1545 = vst [vmem:[%s2934_s21 + $0x48] sm:$0xff] %v3083_v44  ;;  %v1178_v27 = vmul.f32 %v1146_v38, %v2773_v42 }
 0x1d9   : > { %v2131_v20 = vpop.eup %2130  ;;  %2146 = vrcp.f32 %v1030_v13  ;;  %v3088_v25 = vadd.f32 %v1216_v32, %v2931_v36  ;;  %v1053_v33 = vadd.f32 1.0, %v2127_v31  ;;  %v1054_v0 = vadd.f32 1.0, %v2129_v39 }
 0x1da   : > { %v2133_v34 = vpop.eup %2132  ;;  %v1225_v47 = vadd.f32 %v1193_v46, %v2944_v49  ;;  %v1123_v22 = vmul.f32 %v2131_v20, %v2959_v5  ;;  %2148 = vpow2.f32 %v1809_v58  ;;  %v1810_v37 = vmul.f32 -1.442695, %v3081_v55 }
 0x1db   : > { %v2135_v35 = vpop.eup %2134  ;;  %v1217_v41 = vmul.f32 %v3054_v30, %v1178_v27  ;;  %v1147_v13 = vmul.f32 %v2133_v34, %v2964_v7  ;;  %2150 = vrcp.f32 %v1053_v33 }
 0x1dc   : > { %v2137_v36 = vpop.eup %2136  ;;  %v1256_v32 = vpack.c.bf16 %v1225_v47, %v1224_v26  ;;  %v1155_v42 = vmul.f32 %v1123_v22, %v2783_v50  ;;  %v1124_v38 = vmul.f32 %v2135_v35, %v2974_v18  ;;  %2152 = vpow2.f32 %v1810_v37  ;;  %v781_v31 = vpop.f32.mrb[20].mxu0 }
 0x1dd   : > { %v2139_v49 = vpop.eup %2138  ;;  %v1031_v5 = vadd.f32 1.0, %v2137_v36  ;;  %v3099_v46 = vadd.f32 %v1217_v41, %v2950_v56  ;;  %v1179_v58 = vmul.f32 %v1147_v13, %v2790_v53  ;;  %2154 = vrcp.f32 %v1054_v0  ;;  %v3107_v18 = vpop.f32.mrb[21].mxu0 }
 0x1de   : > { %v2141_v7 = vpop.eup %2140  ;;  %v1194_v39 = vmul.f32 %v3054_v30, %v1155_v42  ;;  %v1156_v26 = vmul.f32 %v1124_v38, %v2786_v51  ;;  %v3105_v50 = vadd.f32 %v2921_v28, %v781_v31  ;;  %1895 = vmatprep.mubr.bf16.mxu1 %v1256_v32  ;;  %v1148_v20 = vmul.f32 %v2139_v49, %v2980_v23  ;;  %v785_v53 = vpop.f32.mrb[22].mxu0 }
 0x1df   : > { %v2143_v27 = vpop.eup %2142  ;;  %2156 = vrcp.f32 %v1031_v5  ;;  %v1032_v56 = vadd.f32 1.0, %v2141_v7  ;;  %1546 = vst [vmem:[%s2934_s21 + $0x50] sm:$0xff] %v3107_v18  ;;  %v1268_v0 = vpack.c.bf16 %v3099_v46, %v3088_v25  ;;  %v1218_v51 = vmul.f32 %v3054_v30, %v1179_v58  ;;  %v3121_v23 = vpop.f32.mrb[23].mxu0 }
 0x1e0   : > { %v1226_v33 = vadd.f32 %v1194_v39, %v2961_v6  ;;  %v1195_v34 = vmul.f32 %v3054_v30, %v1156_v26  ;;  %v1811_v47 = vmul.f32 -1.442695, %v3105_v50  ;;  %v3119_v22 = vadd.f32 %v2921_v28, %v785_v53  ;;  %1547 = vst [vmem:[%s2934_s21 + $0x58] sm:$0xff] %v3121_v23 }
 0x1e1   : > { %v2145_v37 = vpop.eup %2144  ;;  %2158 = vrcp.f32 %v1032_v56  ;;  %v3126_v35 = vadd.f32 %v1218_v51, %v2966_v8  ;;  %v1180_v41 = vmul.f32 %v1148_v20, %v2793_v54  ;;  %v1055_v13 = vadd.f32 1.0, %v2143_v27 }
 0x1e2   : > { %v1227_v6 = vadd.f32 %v1195_v34, %v2976_v21  ;;  %v1125_v36 = vmul.f32 %v2145_v37, %v2991_v60  ;;  %2160 = vpow2.f32 %v1811_v47  ;;  %v1812_v32 = vmul.f32 -1.442695, %v3119_v22 }
 0x1e3   : > { %v2147_v42 = vpop.eup %2146  ;;  %v1219_v38 = vmul.f32 %v3054_v30, %v1180_v41  ;;  %2162 = vrcp.f32 %v1055_v13 }
 0x1e4   : > { %v2149_v49 = vpop.eup %2148  ;;  %v1257_v5 = vpack.c.bf16 %v1227_v6, %v1226_v33  ;;  %v1157_v31 = vmul.f32 %v1125_v36, %v2803_v62  ;;  %v1126_v8 = vmul.f32 %v2147_v42, %v3006_v43  ;;  %2164 = vpow2.f32 %v1812_v32  ;;  %v791_v21 = vpop.f32.mrb[24].mxu0 }
 0x1e5   : > { %v2151_v54 = vpop.eup %2150  ;;  %v1033_v58 = vadd.f32 1.0, %v2149_v49  ;;  %v3136_v60 = vadd.f32 %v1219_v38, %v2982_v24  ;;  %2166 = vpow2.f32 %v3075_v40  ;;  %v3142_v20 = vadd.f32 %v2921_v28, %v791_v21  ;;  %v3144_v62 = vpop.f32.mrb[25].mxu0 }
 0x1e6   : > { %v2153_v7 = vpop.eup %2152  ;;  %v1196_v39 = vmul.f32 %v3054_v30, %v1157_v31  ;;  %v1158_v26 = vmul.f32 %v1126_v8, %v2806_v63  ;;  %1896 = vmatmul.mubr.bf16.vlgmr.msra.gmra.mrb[16].mxu1 %v1257_v5  ;;  %v1149_v43 = vmul.f32 %v2151_v54, %v2996_v15  ;;  %1548 = vst [vmem:[%s2934_s21 + $0x60] sm:$0xff] %v3144_v62  ;;  %v795_v40 = vpop.f32.mrb[26].mxu0 }
 0x1e7   : > { %v2155_v27 = vpop.eup %2154  ;;  %2168 = vrcp.f32 %v1033_v58  ;;  %v1034_v24 = vadd.f32 1.0, %v2153_v7  ;;  %v1269_v56 = vpack.c.bf16 %v3136_v60, %v3126_v35  ;;  %v1813_v51 = vmul.f32 -1.442695, %v3142_v20  ;;  %v3157_v34 = vpop.f32.mrb[27].mxu0 }
 0x1e8   : > { %v1228_v63 = vadd.f32 %v1196_v39, %v2993_v61  ;;  %v1197_v53 = vmul.f32 %v3054_v30, %v1158_v26  ;;  %v3155_v33 = vadd.f32 %v2921_v28, %v795_v40  ;;  %1549 = vst [vmem:[%s2934_s21 + $0x68] sm:$0xff] %v3157_v34  ;;  %v1181_v47 = vmul.f32 %v1149_v43, %v2810_v1 }
 0x1e9   : > { %v2157_v15 = vpop.eup %2156  ;;  %2170 = vrcp.f32 %v1034_v24  ;;  %v1150_v37 = vmul.f32 %v2155_v27, %v3016_v59 }
 0x1ea   : > { %v1229_v41 = vadd.f32 %v1197_v53, %v3008_v45  ;;  %v1127_v61 = vmul.f32 %v2157_v15, %v3023_v29  ;;  %2172 = vpow2.f32 %v1813_v51  ;;  %v1814_v13 = vmul.f32 -1.442695, %v3155_v33 }
 0x1eb   : > { %v2159_v6 = vpop.eup %2158  ;;  %v1220_v36 = vmul.f32 %v3054_v30, %v1181_v47  ;;  %v1182_v32 = vmul.f32 %v1150_v37, %v2813_v2 }
 0x1ec   : > { %v2161_v42 = vpop.eup %2160  ;;  %v1258_v38 = vpack.c.bf16 %v1229_v41, %v1228_v63  ;;  %v1159_v49 = vmul.f32 %v1127_v61, %v2823_v10  ;;  %v1128_v1 = vmul.f32 %v2159_v6, %v3038_v9  ;;  %2174 = vpow2.f32 %v1814_v13  ;;  %v801_v5 = vpop.f32.mrb[28].mxu0 }
 0x1ed   : > { %v2163_v59 = vpop.eup %2162  ;;  %v1035_v45 = vadd.f32 1.0, %v2161_v42  ;;  %v3171_v29 = vadd.f32 %v1220_v36, %v2998_v16  ;;  %v1221_v31 = vmul.f32 %v3054_v30, %v1182_v32  ;;  %v3177_v58 = vadd.f32 %v2921_v28, %v801_v5  ;;  %v3179_v10 = vpop.f32.mrb[29].mxu0  ;;  %v3590_v32 = vld [vmem:[#allocation22_spill] sm:$0xff] }
 0x1ee   : > { %v2165_v8 = vpop.eup %2164  ;;  %v1198_v54 = vmul.f32 %v3054_v30, %v1159_v49  ;;  %v1160_v2 = vmul.f32 %v1128_v1, %v2826_v11  ;;  %1899 = vmatprep.mubr.bf16.mxu1 %v1258_v38  ;;  %v1151_v9 = vmul.f32 %v2163_v59, %v3028_v52  ;;  %1550 = vst [vmem:[%s2934_s21 + $0x70] sm:$0xff] %v3179_v10  ;;  %v805_v7 = vpop.f32.mrb[30].mxu0 }
 0x1ef   : > { %v2167_v21 = vpop.eup %2166  ;;  %2176 = vrcp.f32 %v1035_v45  ;;  %v1036_v16 = vadd.f32 1.0, %v2165_v8  ;;  %v3185_v39 = vadd.f32 %v1221_v31, %v3010_v14  ;;  %v1815_v43 = vmul.f32 -1.442695, %v3177_v58  ;;  %v3193_v24 = vpop.f32.mrb[31].mxu0 }
 0x1f0   : > { %v1230_v11 = vadd.f32 %v1198_v54, %v3025_v57  ;;  %v1199_v26 = vmul.f32 %v3054_v30, %v1160_v2  ;;  %v3191_v27 = vadd.f32 %v2921_v28, %v805_v7  ;;  %1551 = vst [vmem:[%s2934_s21 + $0x78] sm:$0xff] %v3193_v24  ;;  %v1183_v14 = vmul.f32 %v1151_v9, %v2829_v12 }
 0x1f1   : > { %v2169_v52 = vpop.eup %2168  ;;  %2178 = vrcp.f32 %v1036_v16  ;;  %v1270_v40 = vpack.c.bf16 %v3185_v39, %v3171_v29  ;;  %v1056_v63 = vadd.f32 1.0, %v2167_v21  ;;  %v3591_v16 = vld [vmem:[#allocation23_spill] sm:$0xff] }
 0x1f2   : > { %v1231_v57 = vadd.f32 %v1199_v26, %v3040_v3  ;;  %v1129_v53 = vmul.f32 %v2169_v52, %v3066_v4  ;;  %2180 = vpow2.f32 %v1815_v43  ;;  %v1816_v51 = vmul.f32 -1.442695, %v3191_v27 }
 0x1f3   : > { %v2171_v15 = vpop.eup %2170  ;;  %v1222_v47 = vmul.f32 %v3054_v30, %v1183_v14  ;;  %2182 = vrcp.f32 %v1056_v63  ;;  %v3592_v63 = vld [vmem:[#allocation24_spill] sm:$0xff] }
 0x1f4   : > { %v2173_v37 = vpop.eup %2172  ;;  %v1259_v41 = vpack.c.bf16 %v1231_v57, %v1230_v11  ;;  %v1161_v61 = vmul.f32 %v1129_v53, %v2841_v19  ;;  %v1130_v13 = vmul.f32 %v2171_v15, %v3081_v55  ;;  %2184 = vpow2.f32 %v1816_v51  ;;  %v811_v6 = vpop.f32.mrb[32].mxu0  ;;  %v3593_v57 = vld [vmem:[#allocation38_spill] sm:$0xff] }
 0x1f5   : > { %v1037_v12 = vadd.f32 1.0, %v2173_v37  ;;  %v3207_v3 = vadd.f32 %v1222_v47, %v3030_v48  ;;  %v3212_v38 = vadd.f32 %v2921_v28, %v811_v6  ;;  %v3214_v49 = vpop.f32.mrb[33].mxu0 }
 0x1f6   : > { %v2175_v4 = vpop.eup %2174  ;;  %v1200_v36 = vmul.f32 %v3054_v30, %v1161_v61  ;;  %v1162_v42 = vmul.f32 %v1130_v13, %v3590_v32  ;;  %1900 = vmatmul.mubr.bf16.gmra.mrb[20].mxu1 %v1259_v41  ;;  %1552 = vst [vmem:[%s2934_s21 + $0x80] sm:$0xff] %v3214_v49  ;;  %v815_v55 = vpop.f32.mrb[34].mxu0  ;;  %v3594_v61 = vld [vmem:[#allocation21_spill] sm:$0xff] }
 0x1f7   : > { %2186 = vrcp.f32 %v1037_v12  ;;  %v1038_v19 = vadd.f32 1.0, %v2175_v4  ;;  %v1817_v59 = vmul.f32 -1.442695, %v3212_v38  ;;  %v3222_v45 = vadd.f32 %v2921_v28, %v815_v55  ;;  %v3224_v5 = vpop.f32.mrb[35].mxu0 }
 0x1f8   : > { %v1232_v48 = vadd.f32 %v1200_v36, %v3068_v17  ;;  %v1201_v1 = vmul.f32 %v3054_v30, %v1162_v42  ;;  %1553 = vst [vmem:[%s2934_s21 + $0x88] sm:$0xff] %v3224_v5 }
 0x1f9   : > { %v2177_v31 = vpop.eup %2176  ;;  %2188 = vrcp.f32 %v1038_v19  ;;  %v1818_v17 = vmul.f32 -1.442695, %v3222_v45 }
 0x1fa   : > { %v1233_v8 = vadd.f32 %v1201_v1, %v3083_v44  ;;  %v1131_v54 = vmul.f32 %v2177_v31, %v3105_v50  ;;  %2190 = vpow2.f32 %v1817_v59  ;;  %v3595_v59 = vld [vmem:[#allocation25_spill] sm:$0xff] }
 0x1fb   : > { %v2179_v2 = vpop.eup %2178  ;;  %2192 = vpow2.f32 %v1818_v17 }
 0x1fc   : > { %v2181_v9 = vpop.eup %2180  ;;  %v1260_v21 = vpack.c.bf16 %v1233_v8, %v1232_v48  ;;  %v1163_v7 = vmul.f32 %v1131_v54, %v3591_v16  ;;  %v1132_v11 = vmul.f32 %v2179_v2, %v3119_v22  ;;  %v821_v52 = vpop.f32.mrb[36].mxu0  ;;  %v3596_v54 = vld [vmem:[#allocation37_spill] sm:$0xff] }
 0x1fd   : > { %v2183_v26 = vpop.eup %2182  ;;  %v1039_v43 = vadd.f32 1.0, %v2181_v9  ;;  %v3237_v51 = vadd.f32 %v2921_v28, %v821_v52  ;;  %v3239_v15 = vpop.f32.mrb[37].mxu0 }
 0x1fe   : > { %v2185_v14 = vpop.eup %2184  ;;  %v1202_v44 = vmul.f32 %v3054_v30, %v1163_v7  ;;  %v1164_v50 = vmul.f32 %v1132_v11, %v3592_v63  ;;  %v1152_v53 = vmul.f32 %v2183_v26, %v3593_v57  ;;  %1903 = vmatprep.mubr.bf16.mxu1 %v1260_v21  ;;  %1554 = vst [vmem:[%s2934_s21 + $0x90] sm:$0xff] %v3239_v15  ;;  %v825_v47 = vpop.f32.mrb[38].mxu0  ;;  %v3597_v21 = vld [vmem:[#allocation26_spill] sm:$0xff] }
 0x1ff   : > { %2194 = vrcp.f32 %v1039_v43  ;;  %v1040_v22 = vadd.f32 1.0, %v2185_v14  ;;  %v1819_v12 = vmul.f32 -1.442695, %v3237_v51  ;;  %v3247_v6 = vpop.f32.mrb[39].mxu0  ;;  %v3250_v36 = vadd.f32 %v2921_v28, %v825_v47 }
 0x200   : > { %v1234_v37 = vadd.f32 %v1202_v44, %v3107_v18  ;;  %v1203_v41 = vmul.f32 %v3054_v30, %v1164_v50  ;;  %v1184_v13 = vmul.f32 %v1152_v53, %v3594_v61  ;;  %1555 = vst [vmem:[%s2934_s21 + $0x98] sm:$0xff] %v3247_v6  ;;  %v3598_v61 = vld [vmem:[#allocation27_spill] sm:$0xff] }
 0x201   : > { %v2187_v4 = vpop.eup %2186  ;;  %2196 = vrcp.f32 %v1040_v22  ;;  %v1820_v55 = vmul.f32 -1.442695, %v3250_v36 }
 0x202   : > { %v1235_v32 = vadd.f32 %v1203_v41, %v3121_v23  ;;  %v1133_v42 = vmul.f32 %v2187_v4, %v3142_v20  ;;  %2198 = vpow2.f32 %v1819_v12  ;;  %v1223_v18 = vmul.f32 %v3054_v30, %v1184_v13 }
 0x203   : > { %v2189_v19 = vpop.eup %2188  ;;  %2200 = vpow2.f32 %v1820_v55 }
 0x204   : > { %v2191_v48 = vpop.eup %2190  ;;  %v1261_v1 = vpack.c.bf16 %v1235_v32, %v1234_v37  ;;  %v1165_v31 = vmul.f32 %v1133_v42, %v3595_v59  ;;  %v1134_v8 = vmul.f32 %v2189_v19, %v3155_v33  ;;  %v3261_v17 = vadd.f32 %v1223_v18, %v3596_v54  ;;  %v831_v23 = vpop.f32.mrb[40].mxu0  ;;  %v3599_v18 = vld [vmem:[#allocation28_spill] sm:$0xff] }
 0x205   : > { %v1041_v2 = vadd.f32 1.0, %v2191_v48  ;;  %v2193_v20 = vpop.eup %2192  ;;  %v3266_v7 = vadd.f32 %v2921_v28, %v831_v23  ;;  %v3268_v11 = vpop.f32.mrb[41].mxu0 }
 0x206   : > { %v1204_v9 = vmul.f32 %v3054_v30, %v1165_v31  ;;  %v1166_v16 = vmul.f32 %v1134_v8, %v3597_v21  ;;  %1904 = vmatmul.mubr.bf16.gmra.mrb[24].mxu1 %v1261_v1  ;;  %v1271_v33 = vpack.c.bf16 %v3261_v17, %v3207_v3  ;;  %v1042_v26 = vadd.f32 1.0, %v2193_v20  ;;  %1556 = vst [vmem:[%s2934_s21 + $0xa0] sm:$0xff] %v3268_v11  ;;  %v835_v43 = vpop.f32.mrb[42].mxu0 }
 0x207   : > { %2202 = vrcp.f32 %v1041_v2  ;;  %v1821_v44 = vmul.f32 -1.442695, %v3266_v7  ;;  %v3278_v63 = vadd.f32 %v2921_v28, %v835_v43  ;;  %v3280_v50 = vpop.f32.mrb[43].mxu0 }
 0x208   : > { %v1236_v52 = vadd.f32 %v1204_v9, %v3144_v62  ;;  %v1205_v14 = vmul.f32 %v3054_v30, %v1166_v16  ;;  %2204 = vrcp.f32 %v1042_v26  ;;  %1557 = vst [vmem:[%s2934_s21 + $0xa8] sm:$0xff] %v3280_v50  ;;  %v3600_v26 = vld [vmem:[#allocation29_spill] sm:$0xff] }
 0x209   : > { %v2195_v57 = vpop.eup %2194  ;;  %2206 = vpow2.f32 %v1821_v44  ;;  %v1822_v62 = vmul.f32 -1.442695, %v3278_v63 }
 0x20a   : > { %v1237_v53 = vadd.f32 %v1205_v14, %v3157_v34  ;;  %v1135_v22 = vmul.f32 %v2195_v57, %v3177_v58  ;;  %v3601_v57 = vld [vmem:[#allocation30_spill] sm:$0xff] }
 0x20b   : > { %v2197_v47 = vpop.eup %2196  ;;  %2208 = vpow2.f32 %v1822_v62 }
 0x20c   : > { %v2199_v37 = vpop.eup %2198  ;;  %v1262_v41 = vpack.c.bf16 %v1237_v53, %v1236_v52  ;;  %v1167_v13 = vmul.f32 %v1135_v22, %v3598_v61  ;;  %v1136_v12 = vmul.f32 %v2197_v47, %v3191_v27  ;;  %v841_v32 = vpop.f32.mrb[44].mxu0  ;;  %v3602_v61 = vld [vmem:[#allocation31_spill] sm:$0xff] }
 0x20d   : > { %v1043_v4 = vadd.f32 1.0, %v2199_v37  ;;  %v3292_v58 = vadd.f32 %v2921_v28, %v841_v32  ;;  %v3294_v19 = vpop.f32.mrb[45].mxu0  ;;  %v2201_v55 = vpop.eup %2200 }
 0x20e   : > { %v1206_v42 = vmul.f32 %v3054_v30, %v1167_v13  ;;  %v1168_v34 = vmul.f32 %v1136_v12, %v3599_v18  ;;  %1907 = vmatprep.mubr.bf16.mxu1 %v1262_v41  ;;  %1558 = vst [vmem:[%s2934_s21 + $0xb0] sm:$0xff] %v3294_v19  ;;  %v845_v48 = vpop.f32.mrb[46].mxu0  ;;  %v1044_v59 = vadd.f32 1.0, %v2201_v55  ;;  %v3603_v18 = vld [vmem:[#allocation32_spill] sm:$0xff] }
 0x20f   : > { %2210 = vrcp.f32 %v1043_v4  ;;  %v1823_v31 = vmul.f32 -1.442695, %v3292_v58  ;;  %v3301_v8 = vpop.f32.mrb[47].mxu0  ;;  %v920_v2 = vadd.f32 %v2921_v28, %v845_v48 }
 0x210   : > { %v1238_v27 = vadd.f32 %v1206_v42, %v3179_v10  ;;  %v1207_v1 = vmul.f32 %v3054_v30, %v1168_v34  ;;  %1559 = vst [vmem:[%s2934_s21 + $0xb8] sm:$0xff] %v3301_v8  ;;  %2212 = vrcp.f32 %v1044_v59  ;;  %v3604_v59 = vld [vmem:[#allocation33_spill] sm:$0xff] }
 0x211   : > { %v2203_v54 = vpop.eup %2202  ;;  %2214 = vpow2.f32 %v1823_v31  ;;  %v1824_v10 = vmul.f32 -1.442695, %v920_v2 }
 0x212   : > { %v1239_v23 = vadd.f32 %v1207_v1, %v3193_v24  ;;  %v1137_v20 = vmul.f32 %v2203_v54, %v3212_v38  ;;  %v2205_v9 = vpop.eup %2204 }
 0x213   : > { %v2207_v21 = vpop.eup %2206  ;;  %v1138_v52 = vmul.f32 %v2205_v9, %v3222_v45  ;;  %2216 = vpow2.f32 %v1824_v10  ;;  %v3605_v9 = vld [vmem:[#allocation34_spill] sm:$0xff] }
 0x214   : > { %v1263_v16 = vpack.c.bf16 %v1239_v23, %v1238_v27  ;;  %v1169_v43 = vmul.f32 %v1137_v20, %v3600_v26  ;;  %v1045_v14 = vadd.f32 1.0, %v2207_v21 }
 0x215   : > { %v2209_v44 = vpop.eup %2208  ;;  %v1170_v53 = vmul.f32 %v1138_v52, %v3601_v57  ;;  %v3606_v52 = vld [vmem:[#allocation35_spill] sm:$0xff] }
 0x216   : > { %v1208_v28 = vmul.f32 %v3054_v30, %v1169_v43  ;;  %1908 = vmatmul.mubr.bf16.gmra.mrb[28].mxu1 %v1263_v16  ;;  %2218 = vrcp.f32 %v1045_v14  ;;  %v1046_v24 = vadd.f32 1.0, %v2209_v44 }
 0x217   : > { %v1209_v22 = vmul.f32 %v3054_v30, %v1170_v53 }
 0x218   : > { %v1240_v38 = vadd.f32 %v1208_v28, %v3214_v49  ;;  %2220 = vrcp.f32 %v1046_v24 }
 0x219   : > { %v2211_v62 = vpop.eup %2210  ;;  %v1241_v47 = vadd.f32 %v1209_v22, %v3224_v5 }
 0x21a   : > { %v1139_v45 = vmul.f32 %v2211_v62, %v3237_v51  ;;  %v2213_v37 = vpop.eup %2212 }
 0x21b   : > { %v1264_v41 = vpack.c.bf16 %v1241_v47, %v1240_v38  ;;  %v2215_v12 = vpop.eup %2214  ;;  %v1140_v4 = vmul.f32 %v2213_v37, %v3250_v36 }
 0x21c   : > { %v1171_v13 = vmul.f32 %v1139_v45, %v3602_v61  ;;  %v1047_v42 = vadd.f32 1.0, %v2215_v12 }
 0x21d   : > { %1911 = vmatprep.mubr.bf16.mxu1 %v1264_v41  ;;  %v2217_v49 = vpop.eup %2216  ;;  %v1172_v34 = vmul.f32 %v1140_v4, %v3603_v18 }
 0x21e   : > { %v1210_v32 = vmul.f32 %v3054_v30, %v1171_v13  ;;  %2222 = vrcp.f32 %v1047_v42  ;;  %v1048_v5 = vadd.f32 1.0, %v2217_v49 }
 0x21f   : > { %v1211_v51 = vmul.f32 %v3054_v30, %v1172_v34 }
 0x220   : > { %v1242_v55 = vadd.f32 %v1210_v32, %v3239_v15  ;;  %v2219_v48 = vpop.eup %2218  ;;  %2224 = vrcp.f32 %v1048_v5 }
 0x221   : > { %v1141_v27 = vmul.f32 %v2219_v48, %v3266_v7  ;;  %v1243_v36 = vadd.f32 %v1211_v51, %v3247_v6 }
 0x222   : > { %v2221_v1 = vpop.eup %2220 }
 0x223   : > { %v1173_v31 = vmul.f32 %v1141_v27, %v3604_v59  ;;  %v1142_v54 = vmul.f32 %v2221_v1, %v3278_v63  ;;  %v1265_v23 = vpack.c.bf16 %v1243_v36, %v1242_v55 }
 0x225   : > { %v1212_v20 = vmul.f32 %v3054_v30, %v1173_v31  ;;  %v1174_v15 = vmul.f32 %v1142_v54, %v3605_v9  ;;  %1912 = vmatmul.mubr.bf16.gmra.mrb[32].mxu1 %v1265_v23 }
 0x227   : > { %v1244_v10 = vadd.f32 %v1212_v20, %v3268_v11  ;;  %v1213_v21 = vmul.f32 %v3054_v30, %v1174_v15  ;;  %v3607_v11 = vld [vmem:[#allocation36_spill] sm:$0xff] }
 0x228   : > { %v2223_v16 = vpop.eup %2222 }
 0x229   : > { %v1245_v7 = vadd.f32 %v1213_v21, %v3280_v50  ;;  %v1143_v26 = vmul.f32 %v2223_v16, %v3292_v58 }
 0x22a   : > { %v2225_v6 = vpop.eup %2224 }
 0x22b   : > { %v1266_v43 = vpack.c.bf16 %v1245_v7, %v1244_v10  ;;  %v1175_v63 = vmul.f32 %v1143_v26, %v3606_v52  ;;  %v1144_v14 = vmul.f32 %v2225_v6, %v920_v2 }
 0x22d   : > { %1915 = vmatprep.mubr.bf16.mxu1 %v1266_v43  ;;  %v1214_v44 = vmul.f32 %v3054_v30, %v1175_v63  ;;  %v1176_v28 = vmul.f32 %v1144_v14, %v3607_v11 }
 0x22f   : > { %v1246_v57 = vadd.f32 %v1214_v44, %v3294_v19  ;;  %v1215_v50 = vmul.f32 %v3054_v30, %v1176_v28 }
 0x231   : > { %v1247_v58 = vadd.f32 %v1215_v50, %v3301_v8 }
 0x233   : > { %v1267_v53 = vpack.c.bf16 %v1247_v58, %v1246_v57 }
 0x235   : > { %1916 = vmatmul.mubr.bf16.gmra.mrb[36].mxu1 %v1267_v53 }
 0x236   : > { %1919 = vmatprep.mubr.bf16.mxu1 %v1268_v0 }
 0x23d   : > { %1920 = vmatmul.mubr.bf16.gmra.mrb[40].mxu1 %v1269_v56 }
 0x23e   : > { %1923 = vmatprep.mubr.bf16.mxu1 %v1270_v40 }
 0x245   : > { %1924 = vmatmul.mubr.bf16.gmra.mrb[44].mxu1 %v1271_v33 }
 0x246   : > { %2355 = shalt.err (!%p2352_p5)
}
 0x247   : > { %s2356_s17 = scalar_lea.hbm %s3356_s20, 4096  ;;  %s2360_s21 = scalar_lea.hbm %s3523_s8, 8192 }
 0x248   : > { %p2357_p9 = scmp.ne.s32.totalorder %s3356_s20, %s2356_s17  ;;  %p2361_p11 = scmp.lt.u32.totalorder %s3356_s20, %s3523_s8 }
 0x249   : > { %p2362_p2 = scmp.lt.u32.totalorder %s2360_s21, %s2356_s17  ;;  %p2364_p1 = scmp.lt.u32.totalorder %s2356_s17, %s3356_s20 }
 0x24a   : > { %p2358_p0 = pnand %p2357_p9, %p3608_p13 }
 0x24b   : > { %p2363_p12 = por %p2362_p2, %p2361_p11 }
 0x24c   : > { %p2359_p8 = pneg %p2358_p0 }
 0x24d   : > { %p2365_p6 = por %p2364_p1, %p2363_p12 }
 0x24f   : > { %p2366_p10 = pnand %p2365_p6, %p2359_p8 }
 0x251   : > { %2369 = shalt.err (!%p2366_p10)
}
 0x252   : > { %s2463_s15 = smov 128   ;;  %s2464_s3 = smov 8   ;;  %v3391_v30 = vld [vmem:[%s3521_s6] ss:$0 sm:$0xff] }
 0x253   : > { %1972 = dma.vmem_to_hbm [thread:$0]  (%p3608_p13), %s3359_s23, 4096, %s3356_s20, %s1574_s0, %s2463_s15, %s2463_s15, %s2464_s3  }
 0x254   : > { %s3396_s2 = scalar_lea.vmem [#allocation10], %s2732_s18  ;;  %s3464_s0 = scalar_lea.hbm %s3522_s7, %s1853_s25 }
 0x255   : > { %s1587_s18 = sshll.u32 %s3396_s2, 4  ;;  %s1569_s13 = scalar_lea.sflag [#allocation4], %s2729_s10  ;;  %s3466_s18 = int_to_ptr.vmem [resolvable:$true] %s1587_s18 }
 0x256   : > { %s2370_s17 = scalar_lea.vmem %s3466_s18, 4096  ;;  %s2465_s11 = smov [#allocation10]  }
 0x257   : > { %p2371_p4 = scmp.ne.s32.totalorder %s3466_s18, %s2370_s17  ;;  %s2374_s9 = sshll.u32 %s2465_s11, 4  ;;  %s2375_s9 = int_to_ptr.vmem [resolvable:$false] %s2374_s9 }
 0x258   : > { %s2376_s19 = scalar_lea.vmem %s2375_s9, 8192  ;;  %p2377_p5 = scmp.lt.s32.totalorder %s3466_s18, %s2375_s9 }
 0x259   : > { %p2372_p7 = pnand %p2371_p4, %p3608_p13  ;;  %p2378_p9 = scmp.lt.s32.totalorder %s2376_s19, %s2370_s17 }
 0x25b   : > { %p2373_p3 = pneg %p2372_p7  ;;  %p2379_p0 = por %p2378_p9, %p2377_p5 }
 0x25d   : > { %p2380_p8 = pnand %p2379_p0, %p2373_p3 }
 0x2b9   : > { %v1897_v25 = vpop.f32.mrb[16].mxu1 }
 0x2ba   : > { %v1386_v46 = vadd.f32 %v1897_v25, %v3391_v30  ;;  %v1377_v0 = vpop.f32.mrb[17].mxu1 }
 0x2bb   : > { %v1378_v35 = vadd.f32 %v3391_v30, %v1377_v0  ;;  %v1898_v60 = vpop.f32.mrb[18].mxu1 }
 0x2bc   : > { %1506 = vst [vmem:[%s3396_s2 + $0x10] sm:$0xff] %v1386_v46  ;;  %v1389_v56 = vadd.f32 %v1898_v60, %v3391_v30  ;;  %v1380_v29 = vpop.f32.mrb[19].mxu1 }
 0x2bd   : > { %1504 = vst [vmem:[%s3396_s2] sm:$0xff] %v1378_v35  ;;  %v1381_v39 = vadd.f32 %v3391_v30, %v1380_v29 }
 0x2be   : > { %1507 = vst [vmem:[%s3396_s2 + $0x18] sm:$0xff] %v1389_v56 }
 0x2bf   : > { %1505 = vst [vmem:[%s3396_s2 + $0x8] sm:$0xff] %v1381_v39 }
 0x2c9   : > { %v1901_v40 = vpop.f32.mrb[20].mxu1 }
 0x2ca   : > { %v1402_v3 = vadd.f32 %v1901_v40, %v3391_v30  ;;  %v1393_v17 = vpop.f32.mrb[21].mxu1 }
 0x2cb   : > { %v1394_v33 = vadd.f32 %v3391_v30, %v1393_v17  ;;  %v1902_v19 = vpop.f32.mrb[22].mxu1 }
 0x2cc   : > { %1510 = vst [vmem:[%s3396_s2 + $0x30] sm:$0xff] %v1402_v3  ;;  %v1405_v8 = vadd.f32 %v1902_v19, %v3391_v30  ;;  %v1396_v2 = vpop.f32.mrb[23].mxu1 }
 0x2cd   : > { %1508 = vst [vmem:[%s3396_s2 + $0x20] sm:$0xff] %v1394_v33  ;;  %v1397_v24 = vadd.f32 %v3391_v30, %v1396_v2 }
 0x2ce   : > { %1511 = vst [vmem:[%s3396_s2 + $0x38] sm:$0xff] %v1405_v8 }
 0x2cf   : > { %1509 = vst [vmem:[%s3396_s2 + $0x28] sm:$0xff] %v1397_v24 }
 0x2d9   : > { %v1905_v38 = vpop.f32.mrb[24].mxu1 }
 0x2da   : > { %v1418_v22 = vadd.f32 %v1905_v38, %v3391_v30  ;;  %v1409_v62 = vpop.f32.mrb[25].mxu1 }
 0x2db   : > { %v1410_v47 = vadd.f32 %v3391_v30, %v1409_v62  ;;  %v1906_v45 = vpop.f32.mrb[26].mxu1 }
 0x2dc   : > { %1514 = vst [vmem:[%s3396_s2 + $0x50] sm:$0xff] %v1418_v22  ;;  %v1421_v37 = vadd.f32 %v1906_v45, %v3391_v30  ;;  %v1412_v41 = vpop.f32.mrb[27].mxu1 }
 0x2dd   : > { %1512 = vst [vmem:[%s3396_s2 + $0x40] sm:$0xff] %v1410_v47  ;;  %v1413_v61 = vadd.f32 %v3391_v30, %v1412_v41 }
 0x2de   : > { %1515 = vst [vmem:[%s3396_s2 + $0x58] sm:$0xff] %v1421_v37 }
 0x2df   : > { %1513 = vst [vmem:[%s3396_s2 + $0x48] sm:$0xff] %v1413_v61 }
 0x2e9   : > { %v1909_v13 = vpop.f32.mrb[28].mxu1 }
 0x2ea   : > { %v1434_v12 = vadd.f32 %v1909_v13, %v3391_v30  ;;  %v1425_v4 = vpop.f32.mrb[29].mxu1 }
 0x2eb   : > { %v1426_v32 = vadd.f32 %v3391_v30, %v1425_v4  ;;  %v1910_v42 = vpop.f32.mrb[30].mxu1 }
 0x2ec   : > { %1518 = vst [vmem:[%s3396_s2 + $0x70] sm:$0xff] %v1434_v12  ;;  %v1437_v49 = vadd.f32 %v1910_v42, %v3391_v30  ;;  %v1428_v18 = vpop.f32.mrb[31].mxu1 }
 0x2ed   : > { %1516 = vst [vmem:[%s3396_s2 + $0x60] sm:$0xff] %v1426_v32  ;;  %v1429_v34 = vadd.f32 %v3391_v30, %v1428_v18 }
 0x2ee   : > { %1519 = vst [vmem:[%s3396_s2 + $0x78] sm:$0xff] %v1437_v49 }
 0x2ef   : > { %1517 = vst [vmem:[%s3396_s2 + $0x68] sm:$0xff] %v1429_v34 }
 0x2f8   : > { %v1913_v55 = vpop.f32.mrb[32].mxu1 }
 0x2f9   : > { %v1450_v5 = vadd.f32 %v1913_v55, %v3391_v30  ;;  %v1441_v48 = vpop.f32.mrb[33].mxu1 }
 0x2fa   : > { %v1442_v51 = vadd.f32 %v3391_v30, %v1441_v48  ;;  %v1914_v27 = vpop.f32.mrb[34].mxu1 }
 0x2fb   : > { %1522 = vst [vmem:[%s3396_s2 + $0x90] sm:$0xff] %v1450_v5  ;;  %v1453_v1 = vadd.f32 %v1914_v27, %v3391_v30  ;;  %v1444_v36 = vpop.f32.mrb[35].mxu1 }
 0x2fc   : > { %1520 = vst [vmem:[%s3396_s2 + $0x80] sm:$0xff] %v1442_v51  ;;  %v1445_v59 = vadd.f32 %v3391_v30, %v1444_v36 }
 0x2fd   : > { %1523 = vst [vmem:[%s3396_s2 + $0x98] sm:$0xff] %v1453_v1 }
 0x2fe   : > { %1521 = vst [vmem:[%s3396_s2 + $0x88] sm:$0xff] %v1445_v59 }
 0x308   : > { %v1917_v31 = vpop.f32.mrb[36].mxu1 }
 0x309   : > { %v1466_v54 = vadd.f32 %v1917_v31, %v3391_v30  ;;  %v1457_v23 = vpop.f32.mrb[37].mxu1 }
 0x30a   : > { %v1458_v20 = vadd.f32 %v3391_v30, %v1457_v23  ;;  %v1918_v9 = vpop.f32.mrb[38].mxu1 }
 0x30b   : > { %1526 = vst [vmem:[%s3396_s2 + $0xb0] sm:$0xff] %v1466_v54  ;;  %v1469_v15 = vadd.f32 %v1918_v9, %v3391_v30  ;;  %v1460_v10 = vpop.f32.mrb[39].mxu1 }
 0x30c   : > { %1524 = vst [vmem:[%s3396_s2 + $0xa0] sm:$0xff] %v1458_v20  ;;  %v1461_v21 = vadd.f32 %v3391_v30, %v1460_v10 }
 0x30d   : > { %1527 = vst [vmem:[%s3396_s2 + $0xb8] sm:$0xff] %v1469_v15 }
 0x30e   : > { %1525 = vst [vmem:[%s3396_s2 + $0xa8] sm:$0xff] %v1461_v21 }
 0x310   : > { %v1921_v16 = vpop.f32.mrb[40].mxu1 }
 0x311   : > { %v1482_v7 = vadd.f32 %v1921_v16, %v3391_v30  ;;  %v1473_v26 = vpop.f32.mrb[41].mxu1 }
 0x312   : > { %v1474_v6 = vadd.f32 %v3391_v30, %v1473_v26  ;;  %v1922_v43 = vpop.f32.mrb[42].mxu1 }
 0x313   : > { %1530 = vst [vmem:[%s3396_s2 + $0xd0] sm:$0xff] %v1482_v7  ;;  %v1485_v52 = vadd.f32 %v1922_v43, %v3391_v30  ;;  %v1476_v63 = vpop.f32.mrb[43].mxu1 }
 0x314   : > { %1528 = vst [vmem:[%s3396_s2 + $0xc0] sm:$0xff] %v1474_v6  ;;  %v1477_v14 = vadd.f32 %v3391_v30, %v1476_v63 }
 0x315   : > { %1531 = vst [vmem:[%s3396_s2 + $0xd8] sm:$0xff] %v1485_v52 }
 0x316   : > { %1529 = vst [vmem:[%s3396_s2 + $0xc8] sm:$0xff] %v1477_v14 }
 0x318   : > { %v1925_v44 = vpop.f32.mrb[44].mxu1 }
 0x319   : > { %v1498_v11 = vadd.f32 %v1925_v44, %v3391_v30  ;;  %v1489_v28 = vpop.f32.mrb[45].mxu1 }
 0x31a   : > { %v1490_v57 = vadd.f32 %v3391_v30, %v1489_v28  ;;  %v1926_v50 = vpop.f32.mrb[46].mxu1 }
 0x31b   : > { %1534 = vst [vmem:[%s3396_s2 + $0xf0] sm:$0xff] %v1498_v11  ;;  %v1501_v58 = vadd.f32 %v1926_v50, %v3391_v30  ;;  %v1492_v53 = vpop.f32.mrb[47].mxu1 }
 0x31c   : > { %1532 = vst [vmem:[%s3396_s2 + $0xe0] sm:$0xff] %v1490_v57  ;;  %v1493_v25 = vadd.f32 %v3391_v30, %v1492_v53 }
 0x31d   : > { %1535 = vst [vmem:[%s3396_s2 + $0xf8] sm:$0xff] %v1501_v58 }
 0x31e   : > { %1533 = vst [vmem:[%s3396_s2 + $0xe8] sm:$0xff] %v1493_v25 }
 0x31f   : > { %2383 = shalt.err (!%p2380_p8)
}
 0x320   : > { %s2384_s25 = scalar_lea.hbm %s3464_s0, 4096  ;;  %s2388_s29 = scalar_lea.hbm %s3522_s7, 8192 }
 0x321   : > { %p2385_p11 = scmp.ne.s32.totalorder %s3464_s0, %s2384_s25  ;;  %p2389_p1 = scmp.lt.u32.totalorder %s3464_s0, %s3522_s7 }
 0x322   : > { %p2390_p6 = scmp.lt.u32.totalorder %s2388_s29, %s2384_s25  ;;  %p2392_p4 = scmp.lt.u32.totalorder %s2384_s25, %s3464_s0 }
 0x323   : > { %p2386_p2 = pnand %p2385_p11, %p3608_p13 }
 0x324   : > { %p2391_p10 = por %p2390_p6, %p2389_p1 }
 0x325   : > { %p2387_p12 = pneg %p2386_p2 }
 0x326   : > { %p2393_p7 = por %p2392_p4, %p2391_p10 }
 0x328   : > { %p2394_p3 = pnand %p2393_p7, %p2387_p12 }
 0x32a   : > { %2397 = shalt.err (!%p2394_p3)
}
 0x32b   : > { %1971 = dma.vmem_to_hbm [thread:$0]  (%p3608_p13), %s3466_s18, 4096, %s3464_s0, %s1569_s13, %s2463_s15, %s2463_s15, %s2464_s3  }
 0x32c PF: > { %s1618_s2 = sand.u32 1, %s2440_s27   ;;  %p3609_p5 = scmp.ne.s32.totalorder %s3555_s12, 0 }
 0x32d   : > { %p3610_p9 = scmp.ge.s32.totalorder %s2452_s30, 2  ;;  %s1619_s20 = scalar_lea.sflag [#allocation4], %s1618_s2 }
 0x32f   : > { %p1990_p0 = pnand %p3610_p9, %p3609_p5 }
 0x331   : > { %2431 = dma.done.wait (!%p1990_p0), %s1619_s20, 4096  }
 0x332   : > { %2433 = vsyncadd (!%p1990_p0), %s1619_s20, 4294963200  ;;  %s1628_s26 = scalar_lea.sflag [#allocation12], %s1618_s2 }
 0x333   : > { %2435 = dma.done.wait (!%p1990_p0), %s1628_s26, 4096  }
 0x334   : > { %2437 = vsyncadd (!%p1990_p0), %s1628_s26, 4294963200  ;;  %s3611_s10 = sld [smem:[#allocation19_spill]]  ;;  %s3612_s29 = sld [smem:[#allocation20_spill]] }
 0x335   : > { %p29_p13 = scmp.ge.s32.totalorder %s2624_s22, 4   ;;  %s3613_s27 = smov %s2444_s28 }
 0x336   : > { %s3615_s30 = smov %s2624_s22 }
 0x337   :  { %31 = sbr.rel (!%p29_p13) target bundleno = 14 (0xe), region = 131 }
 0x33a   : > { %s3614_s28 = smov %s3611_s10 }
 0x33e   :  { %1633 = vsyncpa [#allocation3], 1 }
 0x33f   :  { %1635 = vsyncpa [#allocation3 + $0x1], 1 }
 0x340   :  { %1636 = vsyncpa [#allocation6], 1 }
 0x341   :  { %1638 = vsyncpa [#allocation6 + $0x1], 1 }
 0x342   :  { %1639 = vsyncpa [#allocation9], 1 }
 0x343   :  { %1640 = vsyncpa [#allocation4], 1 }
 0x344   :  { %1642 = vsyncpa [#allocation4 + $0x1], 1 }
 0x345   :  { %1643 = vsyncpa [#allocation12], 1 }
 0x346   :  { %1645 = vsyncpa [#allocation12 + $0x1], 1 }

</bundles_post_ra>
